<compile_context>
chip_gen: v7x
topology: tpu7x:2x2x1
jax: 0.10.0
libtpu: 0.0.40
codegen_flags: <defaults>
</compile_context>

<pallas_src>
import functools

import jax
import jax.numpy as jnp
from jax import lax
from jax.experimental import pallas as pl
from jax.experimental.pallas import tpu as pltpu

EPS = 1e-5
LANE = 128
VMEM_FALLBACK = 48 * 1024 * 1024


def _round_up(x, m):
    return ((x + m - 1) // m) * m


def _pad2d(a, rows, cols):
    r, c = a.shape
    if r == rows and c == cols:
        return a
    return jnp.pad(a, ((0, rows - r), (0, cols - c)))


def _pad1d(a, n):
    return a if a.shape[0] == n else jnp.pad(a, (0, n - a.shape[0]))


def _row_tile(m, tm):
    """Pick a row-tile (multiple of 8); keep >=2 grid steps so both v7x TCs get work."""
    m8 = _round_up(m, 8)
    tm_eff = min(tm, m8)
    if tm_eff >= m8 and m8 >= 16:
        tm_eff = _round_up((m8 + 1) // 2, 8)
    mp = _round_up(m, tm_eff)
    return tm_eff, mp


@functools.lru_cache(maxsize=None)
def _vmem_limit_bytes():
    # ~96 MiB scoped VMEM on v5e/v6e (128 MiB physical), ~48 MiB on v7x (64 MiB).
    try:
        cap = int(pltpu.get_tpu_info().vmem_capacity_bytes)
    except Exception:
        return VMEM_FALLBACK
    return int(min(max(cap - 32 * 1024 * 1024, cap * 3 // 4), 100 * 1024 * 1024))


def _compiler_params():
    return pltpu.CompilerParams(dimension_semantics=("parallel",),
                                vmem_limit_bytes=_vmem_limit_bytes())


# ----------------------------------------------------------------------------
# Kernels
# ----------------------------------------------------------------------------
def _stage1_kernel(x_ref, s_ref, b_ref, w1_ref, o1_ref, sum_ref, ssq_ref,
                   *, tm, m_valid, mp):
    a = jnp.maximum(x_ref[...].astype(jnp.float32) * s_ref[...] + b_ref[...], 0.0)
    if mp > m_valid:  # zero rows past the true row count so the fused stats stay exact
        rows = pl.program_id(0) * tm + lax.broadcasted_iota(jnp.int32, a.shape, 0)
        a = jnp.where(rows < m_valid, a, 0.0)
    o1 = jnp.dot(a.astype(jnp.bfloat16), w1_ref[...],
                 preferred_element_type=jnp.float32)
    o1b = o1.astype(jnp.bfloat16)
    o1_ref[...] = o1b
    o1f = o1b.astype(jnp.float32)           # stats from the rounded values stage 2 reads
    pp = o1f.shape[1]
    sum_ref[...] = jnp.sum(o1f, axis=0, keepdims=True).reshape(1, 1, pp)
    ssq_ref[...] = jnp.sum(o1f * o1f, axis=0, keepdims=True).reshape(1, 1, pp)


def _stage1_sc_kernel(x_ref, s_ref, b_ref, w1_ref, ws_ref,
                      o1_ref, sc_ref, sum_ref, ssq_ref, *, tm, m_valid, mp):
    # Same as above plus the fused shortcut 1x1 conv (stride==1 case).
    a = jnp.maximum(x_ref[...].astype(jnp.float32) * s_ref[...] + b_ref[...], 0.0)
    if mp > m_valid:
        rows = pl.program_id(0) * tm + lax.broadcasted_iota(jnp.int32, a.shape, 0)
        a = jnp.where(rows < m_valid, a, 0.0)
    ab = a.astype(jnp.bfloat16)
    o1 = jnp.dot(ab, w1_ref[...], preferred_element_type=jnp.float32)
    o1b = o1.astype(jnp.bfloat16)
    o1_ref[...] = o1b
    sc_ref[...] = jnp.dot(ab, ws_ref[...],
                          preferred_element_type=jnp.float32).astype(sc_ref.dtype)
    o1f = o1b.astype(jnp.float32)
    pp = o1f.shape[1]
    sum_ref[...] = jnp.sum(o1f, axis=0, keepdims=True).reshape(1, 1, pp)
    ssq_ref[...] = jnp.sum(o1f * o1f, axis=0, keepdims=True).reshape(1, 1, pp)


def _conv2_kernel(x_ref, s_ref, b_ref, w_ref, o_ref, sum_ref, ssq_ref, pad_ref,
                  *, H, W, pp, stride, ho, Wp, R3):
    # bn2+ReLU fused with the 3x3 conv.  The padded activation lives in a VMEM
    # scratch with row pitch Wp (multiple of 8); the 9 taps are contiguous
    # row-offset slices of the flattened scratch -- no strided merge-reshape copies.
    # TODO(synk): tile H (halo) / M for very large feature maps and to keep both v7x
    #             TensorCores busy when the per-device batch is 1; concatenate the 9
    #             taps into a single K=9*pp matmul on v6e/v7x (256-deep MXU).
    s = s_ref[...].reshape(1, 1, pp)
    b = b_ref[...].reshape(1, 1, pp)
    a = jnp.maximum(x_ref[0].astype(jnp.float32) * s + b, 0.0)           # (H, W, pp)

    # Re-zero only the thin border slabs every step (interior is fully overwritten;
    # this stays correct when the grid axis is sharded across cores).
    pad_ref[0:1, :, :] = jnp.zeros((1, Wp, pp), pad_ref.dtype)
    pad_ref[H + 1:R3, :, :] = jnp.zeros((R3 - H - 1, Wp, pp), pad_ref.dtype)
    pad_ref[1:H + 1, 0:1, :] = jnp.zeros((H, 1, pp), pad_ref.dtype)
    pad_ref[1:H + 1, W + 1:Wp, :] = jnp.zeros((H, Wp - W - 1, pp), pad_ref.dtype)
    pad_ref[1:H + 1, 1:W + 1, :] = a.astype(pad_ref.dtype)

    flat = pad_ref[...].reshape(R3 * Wp, pp)       # layout-preserving (Wp % 8 == 0)
    nrow = ho * stride * Wp
    acc = jnp.zeros((nrow, pp), jnp.float32)
    for ky in range(3):
        for kx in range(3):
            off = ky * Wp + kx
            tap = flat[off:off + nrow, :]          # contiguous row-offset slice
            acc = acc + jnp.dot(tap, w_ref[ky * 3 + kx],
                                preferred_element_type=jnp.float32)

    # y-subsample (stride fused for rows) + drop pad columns; x-subsample for
    # stride>1 happens outside on the already-halved block.
    accy = acc.reshape(ho, stride, Wp, pp)[:, 0]                          # (ho, Wp, pp)
    o2 = accy[:, :W, :]                                                   # (ho, W, pp)
    o2b = o2.astype(jnp.bfloat16)
    o_ref[...] = o2b.reshape(1, ho, W, pp)

    # bn3 batch stats over the strided output positions, from the bf16-rounded
    # values stage 3 will actually normalise.
    o2f = o2b.astype(jnp.float32)
    if stride > 1:
        xmask = (lax.broadcasted_iota(jnp.int32, (ho, W, pp), 1) % stride) == 0
        o2f = jnp.where(xmask, o2f, 0.0)
    sum_ref[...] = jnp.sum(o2f, axis=(0, 1), keepdims=True)
    ssq_ref[...] = jnp.sum(o2f * o2f, axis=(0, 1), keepdims=True)


def _stage3_res_kernel(x_ref, s_ref, b_ref, w_ref, r_ref, o_ref):
    a = jnp.maximum(x_ref[...].astype(jnp.float32) * s_ref[...] + b_ref[...], 0.0)
    o_ref[...] = (jnp.dot(a.astype(jnp.bfloat16), w_ref[...],
                          preferred_element_type=jnp.float32)
                  + r_ref[...].astype(jnp.float32)).astype(o_ref.dtype)


def _stage3_sc_kernel(x_ref, s3_ref, b3_ref, w3_ref,
                      xs_ref, s1_ref, b1_ref, ws_ref, o_ref):
    # bn3+relu -> conv3 fused with the strided shortcut: bn1+relu -> 1x1 conv.
    a = jnp.maximum(x_ref[...].astype(jnp.float32) * s3_ref[...] + b3_ref[...], 0.0)
    sc = jnp.maximum(xs_ref[...].astype(jnp.float32) * s1_ref[...] + b1_ref[...], 0.0)
    out = jnp.dot(a.astype(jnp.bfloat16), w3_ref[...],
                  preferred_element_type=jnp.float32)
    out = out + jnp.dot(sc.astype(jnp.bfloat16), ws_ref[...],
                        preferred_element_type=jnp.float32)
    o_ref[...] = out.astype(o_ref.dtype)


# ----------------------------------------------------------------------------
# pallas_call wrappers
# ----------------------------------------------------------------------------
def stage1(x_flat, scale1, shift1, w1, ws, tm):
    """relu(x*s+b) @ w1 (and optionally @ ws) + (1,1,C) column stats per tile."""
    m, k = x_flat.shape
    pp = w1.shape[1]
    tm_eff, mp = _row_tile(m, tm)
    g = mp // tm_eff
    xp = _pad2d(x_flat, mp, k)

    in_specs = [pl.BlockSpec((tm_eff, k), lambda i: (i, 0)),
                pl.BlockSpec((1, k), lambda i: (0, 0)),
                pl.BlockSpec((1, k), lambda i: (0, 0)),
                pl.BlockSpec((k, pp), lambda i: (0, 0))]
    args = [xp, scale1, shift1, w1]
    out_shape = [jax.ShapeDtypeStruct((mp, pp), jnp.bfloat16)]
    out_specs = [pl.BlockSpec((tm_eff, pp), lambda i: (i, 0))]

    if ws is not None:
        ep = ws.shape[1]
        in_specs.append(pl.BlockSpec((k, ep), lambda i: (0, 0)))
        args.append(ws)
        out_shape.append(jax.ShapeDtypeStruct((mp, ep), jnp.bfloat16))
        out_specs.append(pl.BlockSpec((tm_eff, ep), lambda i: (i, 0)))
        kernel = functools.partial(_stage1_sc_kernel, tm=tm_eff, m_valid=m, mp=mp)
    else:
        kernel = functools.partial(_stage1_kernel, tm=tm_eff, m_valid=m, mp=mp)

    out_shape += [jax.ShapeDtypeStruct((g, 1, pp), jnp.float32)] * 2
    out_specs += [pl.BlockSpec((1, 1, pp), lambda i: (i, 0, 0))] * 2

    outs = pl.pallas_call(
        kernel,
        grid=(g,),
        in_specs=in_specs,
        out_specs=out_specs,
        out_shape=out_shape,
        compiler_params=_compiler_params(),
    )(*args)

    if ws is not None:
        o1, sc, psum, pssq = outs
    else:
        o1, psum, pssq = outs
        sc = None
    return o1, sc, jnp.sum(psum, axis=(0, 1)), jnp.sum(pssq, axis=(0, 1))


def conv2_3x3(out1_img, scale2, shift2, w2, stride):
    """bn2+ReLU -> 3x3 conv (pad=1) with in-kernel y-subsample and bn3 stats."""
    n, h, w, pp = out1_img.shape
    ho = (h - 1) // stride + 1
    wp = _round_up(w + 2, 8)              # row pitch of the flat padded scratch
    r3 = ho * stride + 3
    kernel = functools.partial(_conv2_kernel, H=h, W=w, pp=pp, stride=stride,
                               ho=ho, Wp=wp, R3=r3)
    out, psum, pssq = pl.pallas_call(
        kernel,
        grid=(n,),
        in_specs=[pl.BlockSpec((1, h, w, pp), lambda i: (i, 0, 0, 0)),
                  pl.BlockSpec((1, pp), lambda i: (0, 0)),
                  pl.BlockSpec((1, pp), lambda i: (0, 0)),
                  pl.BlockSpec((9, pp, pp), lambda i: (0, 0, 0))],
        out_specs=[pl.BlockSpec((1, ho, w, pp), lambda i: (i, 0, 0, 0)),
                   pl.BlockSpec((1, 1, pp), lambda i: (i, 0, 0)),
                   pl.BlockSpec((1, 1, pp), lambda i: (i, 0, 0))],
        out_shape=[jax.ShapeDtypeStruct((n, ho, w, pp), jnp.bfloat16),
                   jax.ShapeDtypeStruct((n, 1, pp), jnp.float32),
                   jax.ShapeDtypeStruct((n, 1, pp), jnp.float32)],
        scratch_shapes=[pltpu.VMEM((r3, wp, pp), jnp.bfloat16)],
        compiler_params=_compiler_params(),
    )(out1_img, scale2, shift2, w2)
    return out, jnp.sum(psum, axis=(0, 1)), jnp.sum(pssq, axis=(0, 1))


def stage3(x, scale3, shift3, w3, res=None, shortcut=None, tm=1024):
    """relu(bn3(x)) @ w3 + residual (bf16) or fused strided shortcut conv."""
    m, k = x.shape
    nc = w3.shape[1]
    tm_eff, mp = _row_tile(m, tm)
    g = mp // tm_eff
    xp = _pad2d(x, mp, k)
    in_specs = [pl.BlockSpec((tm_eff, k), lambda i: (i, 0)),
                pl.BlockSpec((1, k), lambda i: (0, 0)),
                pl.BlockSpec((1, k), lambda i: (0, 0)),
                pl.BlockSpec((k, nc), lambda i: (0, 0))]
    args = [xp, scale3, shift3, w3]
    if shortcut is not None:
        xs, s1, b1, ws = shortcut
        ks = xs.shape[1]
        xsp = xs if xs.shape == (mp, ks) else _pad2d(xs[:m], mp, ks)
        in_specs += [pl.BlockSpec((tm_eff, ks), lambda i: (i, 0)),
                     pl.BlockSpec((1, ks), lambda i: (0, 0)),
                     pl.BlockSpec((1, ks), lambda i: (0, 0)),
                     pl.BlockSpec((ks, nc), lambda i: (0, 0))]
        args += [xsp, s1, b1, ws]
        kernel = _stage3_sc_kernel
    else:
        resp = res if res.shape == (mp, nc) else _pad2d(res[:m], mp, nc)
        in_specs.append(pl.BlockSpec((tm_eff, nc), lambda i: (i, 0)))
        args.append(resp)
        kernel = _stage3_res_kernel
    out = pl.pallas_call(
        kernel,
        grid=(g,),
        in_specs=in_specs,
        out_specs=pl.BlockSpec((tm_eff, nc), lambda i: (i, 0)),
        out_shape=jax.ShapeDtypeStruct((mp, nc), jnp.float32),
        compiler_params=_compiler_params(),
    )(*args)
    return out[:m]


# ----------------------------------------------------------------------------
# PreActBottleneck forward built from the kernels above
# ----------------------------------------------------------------------------
def preact_bottleneck_pallas(x_nchw, params, in_planes, planes, stride, tm=1024):
    expansion = 4
    exp_planes = expansion * planes
    has_shortcut = (stride != 1) or (in_planes != exp_planes)

    n, cin, h, w = x_nchw.shape
    assert cin == in_planes
    ho = (h - 1) // stride + 1
    wo = (w - 1) // stride + 1
    m = n * h * w
    m2 = n * ho * wo

    cin_p = _round_up(cin, LANE)
    p_p = _round_up(planes, LANE)
    e_p = _round_up(exp_planes, LANE)

    # TODO(synk): the NCHW<->NHWC transposes and the separate bn1 stats pass vanish
    # if the surrounding model keeps NHWC/bf16 activations and the previous block
    # emits its output column sums (same trick used for bn2/bn3 inside this block).
    x = jnp.transpose(x_nchw, (0, 2, 3, 1)).astype(jnp.bfloat16)      # NHWC bf16
    x_flat = x.reshape(m, cin)

    # bn1 batch stats from the same bf16 values the kernels normalise (one fused pass).
    xf = x_flat.astype(jnp.float32)
    mean1 = jnp.mean(xf, axis=0)
    var1 = jnp.maximum(jnp.mean(xf * xf, axis=0) - mean1 * mean1, 0.0)
    sc1 = params["g1"] / jnp.sqrt(var1 + EPS)
    sh1 = params["b1"] - mean1 * sc1
    scale1 = _pad1d(sc1, cin_p).reshape(1, cin_p).astype(jnp.float32)
    shift1 = _pad1d(sh1, cin_p).reshape(1, cin_p).astype(jnp.float32)

    # Weights in (K, N) layout, zero-padded to lane multiples, cast to bf16.
    w1m = _pad2d(params["w1"][:, :, 0, 0].T, cin_p, p_p).astype(jnp.bfloat16)
    w2r = jnp.transpose(params["w2"], (2, 3, 1, 0)).reshape(9, planes, planes)
    w2m = jnp.pad(w2r, ((0, 0), (0, p_p - planes), (0, p_p - planes))).astype(jnp.bfloat16)
    w3m = _pad2d(params["w3"][:, :, 0, 0].T, p_p, e_p).astype(jnp.bfloat16)
    wsm = None
    if has_shortcut:
        wsm = _pad2d(params["ws"][:, :, 0, 0].T, cin_p, e_p).astype(jnp.bfloat16)

    xcp = _pad2d(x_flat, m, cin_p)                     # column-padded bf16 input stream

    # Stage 1: bn1+relu -> conv1 (+ fused shortcut when stride==1) + bn2 stats.
    fuse_sc = has_shortcut and stride == 1
    o1_full, sc_full, s1, q1 = stage1(xcp, scale1, shift1, w1m,
                                      wsm if fuse_sc else None, tm)

    mean2 = s1 / m
    var2 = jnp.maximum(q1 / m - mean2 * mean2, 0.0)
    sc2v = _pad1d(params["g2"], p_p) / jnp.sqrt(var2 + EPS)
    scale2 = sc2v.reshape(1, p_p).astype(jnp.float32)
    shift2 = (_pad1d(params["b2"], p_p) - mean2 * sc2v).reshape(1, p_p).astype(jnp.float32)

    # Stage 2: bn2+relu -> 3x3 conv (flat contiguous taps, bn3 stats in-kernel).
    out1_img = o1_full[:m].reshape(n, h, w, p_p)
    out2y, s2, q2 = conv2_3x3(out1_img, scale2, shift2, w2m, stride)
    # TODO(synk): fuse the x-subsample into the kernel as well (column-strided taps).
    out2_img = out2y if stride == 1 else out2y[:, :, ::stride, :]
    out2_flat = out2_img.reshape(m2, p_p)

    mean3 = s2 / m2
    var3 = jnp.maximum(q2 / m2 - mean3 * mean3, 0.0)
    sc3v = _pad1d(params["g3"], p_p) / jnp.sqrt(var3 + EPS)
    scale3 = sc3v.reshape(1, p_p).astype(jnp.float32)
    shift3 = (_pad1d(params["b3"], p_p) - mean3 * sc3v).reshape(1, p_p).astype(jnp.float32)

    # Stage 3: bn3+relu -> conv3 + residual (or fused strided shortcut conv).
    if not has_shortcut:
        out = stage3(out2_flat, scale3, shift3, w3m, res=xcp, tm=tm)
    elif stride == 1:
        out = stage3(out2_flat, scale3, shift3, w3m, res=sc_full, tm=tm)
    else:
        xs = x[:, ::stride, ::stride, :].reshape(m2, cin)
        xsp = _pad2d(xs, m2, cin_p)
        out = stage3(out2_flat, scale3, shift3, w3m,
                     shortcut=(xsp, scale1, shift1, wsm), tm=tm)

    out = out[:, :exp_planes].reshape(n, ho, wo, exp_planes)
    return jnp.transpose(out, (0, 3, 1, 2))                           # back to NCHW


# ----------------------------------------------------------------------------
# Pure-JAX reference (mirrors the PyTorch module, NCHW / OIHW)
# ----------------------------------------------------------------------------
def reference(x, params, in_planes, planes, stride):
    expansion = 4
    exp_planes = expansion * planes
    has_shortcut = (stride != 1) or (in_planes != exp_planes)

    def bn(z, g, b):
        mean = z.mean(axis=(0, 2, 3), keepdims=True)
        var = ((z - mean) ** 2).mean(axis=(0, 2, 3), keepdims=True)
        zn = (z - mean) / jnp.sqrt(var + EPS)
        return zn * g.reshape(1, -1, 1, 1) + b.reshape(1, -1, 1, 1)

    def conv(z, w, s=1, p=0):
        return lax.conv_general_dilated(
            z, w, (s, s), [(p, p), (p, p)],
            dimension_numbers=("NCHW", "OIHW", "NCHW"))

    out = jax.nn.relu(bn(x, params["g1"], params["b1"]))
    shortcut = conv(out, params["ws"], stride) if has_shortcut else x
    out = conv(out, params["w1"])
    out = conv(jax.nn.relu(bn(out, params["g2"], params["b2"])), params["w2"], stride, 1)
    out = conv(jax.nn.relu(bn(out, params["g3"], params["b3"])), params["w3"])
    return out + shortcut


def init_params(key, in_planes, planes, stride):
    expansion = 4
    exp_planes = expansion * planes
    ks = jax.random.split(key, 10)
    p = {
        "g1": 1.0 + 0.1 * jax.random.normal(ks[0], (in_planes,), jnp.float32),
        "b1": 0.1 * jax.random.normal(ks[1], (in_planes,), jnp.float32),
        "w1": 0.2 * jax.random.normal(ks[2], (planes, in_planes, 1, 1), jnp.float32),
        "g2": 1.0 + 0.1 * jax.random.normal(ks[3], (planes,), jnp.float32),
        "b2": 0.1 * jax.random.normal(ks[4], (planes,), jnp.float32),
        "w2": 0.2 * jax.random.normal(ks[5], (planes, planes, 3, 3), jnp.float32),
        "g3": 1.0 + 0.1 * jax.random.normal(ks[6], (planes,), jnp.float32),
        "b3": 0.1 * jax.random.normal(ks[7], (planes,), jnp.float32),
        "w3": 0.2 * jax.random.normal(ks[8], (exp_planes, planes, 1, 1), jnp.float32),
    }
    if stride != 1 or in_planes != exp_planes:
        p["ws"] = 0.2 * jax.random.normal(ks[9], (exp_planes, in_planes, 1, 1), jnp.float32)
    return p


if __name__ == "__main__":
    key = jax.random.PRNGKey(0)
    configs = [
        # (N, H, W, in_planes, planes, stride)
        (2, 16, 16, 4, 4, 1),   # conv shortcut, stride 1 (shortcut fused into stage 1)
        (2, 8, 8, 16, 4, 2),    # conv shortcut, stride 2 (shortcut fused into stage 3)
        (2, 8, 8, 16, 4, 1),    # identity shortcut
    ]
    for idx, (n, h, w, in_planes, planes, stride) in enumerate(configs):
        kx, kp, key = jax.random.split(key, 3)
        x = jax.random.normal(kx, (n, in_planes, h, w), jnp.float32)
        params = init_params(kp, in_planes, planes, stride)

        fwd = jax.jit(functools.partial(preact_bottleneck_pallas,
                                        in_planes=in_planes, planes=planes,
                                        stride=stride))
        out = jax.block_until_ready(fwd(x, params))

        ref = reference(x, params, in_planes, planes, stride)
        assert out.shape == ref.shape, (out.shape, ref.shape)
        err = float(jnp.max(jnp.abs(out - ref)))
        # bf16 activation streams + bf16 MXU operands (f32 accumulation).
        assert err < 5e-2, f"config {idx}: max abs err {err}"

    print("KERNEL_OK")
</pallas_src>

<mosaic_0001>
module attributes {stable_mosaic.version = 11 : i64} {
  func.func @_stage1_sc_kernel(%arg0: i32, %arg1: memref<256x128xbf16, #tpu.memory_space<vmem>>, %arg2: memref<1x128xf32, #tpu.memory_space<vmem>>, %arg3: memref<1x128xf32, #tpu.memory_space<vmem>>, %arg4: memref<128x128xbf16, #tpu.memory_space<vmem>>, %arg5: memref<128x128xbf16, #tpu.memory_space<vmem>>, %arg6: memref<256x128xbf16, #tpu.memory_space<vmem>>, %arg7: memref<256x128xbf16, #tpu.memory_space<vmem>>, %arg8: memref<1x1x128xf32, #tpu.memory_space<vmem>>, %arg9: memref<1x1x128xf32, #tpu.memory_space<vmem>>) attributes {dimension_semantics = [#tpu.dimension_semantics<parallel>], iteration_bounds = array<i64: 2>, scalar_prefetch = 0 : i64, scratch_operands = 0 : i64, tpu.core_type = #tpu.core_type<tc>, window_params = [{transform_indices = @transform_0, window_bounds = array<i64: 256, 128>}, {pipeline_mode = #tpu.pipeline_mode<synchronous>, transform_indices = @transform_1, window_bounds = array<i64: 1, 128>}, {pipeline_mode = #tpu.pipeline_mode<synchronous>, transform_indices = @transform_2, window_bounds = array<i64: 1, 128>}, {pipeline_mode = #tpu.pipeline_mode<synchronous>, transform_indices = @transform_3, window_bounds = array<i64: 128, 128>}, {pipeline_mode = #tpu.pipeline_mode<synchronous>, transform_indices = @transform_4, window_bounds = array<i64: 128, 128>}, {transform_indices = @transform_5, window_bounds = array<i64: 256, 128>}, {transform_indices = @transform_6, window_bounds = array<i64: 256, 128>}, {transform_indices = @transform_7, window_bounds = array<i64: 1, 1, 128>}, {transform_indices = @transform_8, window_bounds = array<i64: 1, 1, 128>}]} {
    %c0 = arith.constant 0 : index
    %c0_0 = arith.constant 0 : index
    %0 = vector.load %arg1[%c0, %c0_0] : memref<256x128xbf16, #tpu.memory_space<vmem>>, vector<256x128xbf16>
    %1 = arith.extf %0 : vector<256x128xbf16> to vector<256x128xf32>
    %c0_1 = arith.constant 0 : index
    %c0_2 = arith.constant 0 : index
    %2 = vector.load %arg2[%c0_1, %c0_2] : memref<1x128xf32, #tpu.memory_space<vmem>>, vector<1x128xf32>
    %3 = vector.broadcast %2 : vector<1x128xf32> to vector<256x128xf32>
    %4 = arith.mulf %1, %3 : vector<256x128xf32>
    %c0_3 = arith.constant 0 : index
    %c0_4 = arith.constant 0 : index
    %5 = vector.load %arg3[%c0_3, %c0_4] : memref<1x128xf32, #tpu.memory_space<vmem>>, vector<1x128xf32>
    %6 = vector.broadcast %5 : vector<1x128xf32> to vector<256x128xf32>
    %7 = arith.addf %4, %6 : vector<256x128xf32>
    %cst = arith.constant 0.000000e+00 : f32
    %8 = vector.broadcast %cst : f32 to vector<256x128xf32>
    %9 = arith.maximumf %7, %8 : vector<256x128xf32>
    %10 = arith.truncf %9 : vector<256x128xf32> to vector<256x128xbf16>
    %c0_5 = arith.constant 0 : index
    %c0_6 = arith.constant 0 : index
    %11 = vector.load %arg4[%c0_5, %c0_6] : memref<128x128xbf16, #tpu.memory_space<vmem>>, vector<128x128xbf16>
    %cst_7 = arith.constant dense<0.000000e+00> : vector<256x128xf32>
    %12 = tpu.matmul %10, %11, %cst_7 {dimension_numbers = #tpu.dot_dimension_numbers<[1], [0], [0], [1], [0, 0, 1, 1], [], []>} : vector<256x128xbf16>, vector<128x128xbf16>, vector<256x128xf32> -> vector<256x128xf32>
    %13 = arith.truncf %12 : vector<256x128xf32> to vector<256x128xbf16>
    %c0_8 = arith.constant 0 : index
    %c0_9 = arith.constant 0 : index
    %14 = vector.load %arg6[%c0_8, %c0_9] : memref<256x128xbf16, #tpu.memory_space<vmem>>, vector<256x128xbf16>
    tpu.vector_store %arg6[%c0_8, %c0_9], %13 {strides = array<i32>} : memref<256x128xbf16, #tpu.memory_space<vmem>>, vector<256x128xbf16>,
    %c0_10 = arith.constant 0 : index
    %c0_11 = arith.constant 0 : index
    %15 = vector.load %arg5[%c0_10, %c0_11] : memref<128x128xbf16, #tpu.memory_space<vmem>>, vector<128x128xbf16>
    %cst_12 = arith.constant dense<0.000000e+00> : vector<256x128xf32>
    %16 = tpu.matmul %10, %15, %cst_12 {dimension_numbers = #tpu.dot_dimension_numbers<[1], [0], [0], [1], [0, 0, 1, 1], [], []>} : vector<256x128xbf16>, vector<128x128xbf16>, vector<256x128xf32> -> vector<256x128xf32>
    %17 = arith.truncf %16 : vector<256x128xf32> to vector<256x128xbf16>
    %c0_13 = arith.constant 0 : index
    %c0_14 = arith.constant 0 : index
    %18 = vector.load %arg7[%c0_13, %c0_14] : memref<256x128xbf16, #tpu.memory_space<vmem>>, vector<256x128xbf16>
    tpu.vector_store %arg7[%c0_13, %c0_14], %17 {strides = array<i32>} : memref<256x128xbf16, #tpu.memory_space<vmem>>, vector<256x128xbf16>,
    %19 = arith.extf %13 : vector<256x128xbf16> to vector<256x128xf32>
    %cst_15 = arith.constant dense<0.000000e+00> : vector<128xf32>
    %20 = vector.multi_reduction <add>, %19, %cst_15 [0] : vector<256x128xf32> to vector<128xf32>
    %21 = vector.shape_cast %20 : vector<128xf32> to vector<1x128xf32>
    %22 = vector.shape_cast %21 : vector<1x128xf32> to vector<1x1x128xf32>
    %c0_16 = arith.constant 0 : index
    %c0_17 = arith.constant 0 : index
    %c0_18 = arith.constant 0 : index
    %23 = vector.load %arg8[%c0_16, %c0_17, %c0_18] : memref<1x1x128xf32, #tpu.memory_space<vmem>>, vector<1x1x128xf32>
    tpu.vector_store %arg8[%c0_16, %c0_17, %c0_18], %22 {strides = array<i32>} : memref<1x1x128xf32, #tpu.memory_space<vmem>>, vector<1x1x128xf32>,
    %24 = arith.mulf %19, %19 : vector<256x128xf32>
    %cst_19 = arith.constant dense<0.000000e+00> : vector<128xf32>
    %25 = vector.multi_reduction <add>, %24, %cst_19 [0] : vector<256x128xf32> to vector<128xf32>
    %26 = vector.shape_cast %25 : vector<128xf32> to vector<1x128xf32>
    %27 = vector.shape_cast %26 : vector<1x128xf32> to vector<1x1x128xf32>
    %c0_20 = arith.constant 0 : index
    %c0_21 = arith.constant 0 : index
    %c0_22 = arith.constant 0 : index
    %28 = vector.load %arg9[%c0_20, %c0_21, %c0_22] : memref<1x1x128xf32, #tpu.memory_space<vmem>>, vector<1x1x128xf32>
    tpu.vector_store %arg9[%c0_20, %c0_21, %c0_22], %27 {strides = array<i32>} : memref<1x1x128xf32, #tpu.memory_space<vmem>>, vector<1x1x128xf32>,
    return
  }
  func.func @transform_0(%arg0: i32) -> (i32, i32) {
    %c0_i32 = arith.constant 0 : i32
    %c0_i32_0 = arith.constant 0 : i32
    return %arg0, %c0_i32 : i32, i32
  }
  func.func @transform_1(%arg0: i32) -> (i32, i32) {
    %c0_i32 = arith.constant 0 : i32
    %c0_i32_0 = arith.constant 0 : i32
    %c0_i32_1 = arith.constant 0 : i32
    return %c0_i32, %c0_i32_0 : i32, i32
  }
  func.func @transform_2(%arg0: i32) -> (i32, i32) {
    %c0_i32 = arith.constant 0 : i32
    %c0_i32_0 = arith.constant 0 : i32
    %c0_i32_1 = arith.constant 0 : i32
    return %c0_i32, %c0_i32_0 : i32, i32
  }
  func.func @transform_3(%arg0: i32) -> (i32, i32) {
    %c0_i32 = arith.constant 0 : i32
    %c0_i32_0 = arith.constant 0 : i32
    %c0_i32_1 = arith.constant 0 : i32
    return %c0_i32, %c0_i32_0 : i32, i32
  }
  func.func @transform_4(%arg0: i32) -> (i32, i32) {
    %c0_i32 = arith.constant 0 : i32
    %c0_i32_0 = arith.constant 0 : i32
    %c0_i32_1 = arith.constant 0 : i32
    return %c0_i32, %c0_i32_0 : i32, i32
  }
  func.func @transform_5(%arg0: i32) -> (i32, i32) {
    %c0_i32 = arith.constant 0 : i32
    %c0_i32_0 = arith.constant 0 : i32
    return %arg0, %c0_i32 : i32, i32
  }
  func.func @transform_6(%arg0: i32) -> (i32, i32) {
    %c0_i32 = arith.constant 0 : i32
    %c0_i32_0 = arith.constant 0 : i32
    return %arg0, %c0_i32 : i32, i32
  }
  func.func @transform_7(%arg0: i32) -> (i32, i32, i32) {
    %c0_i32 = arith.constant 0 : i32
    %c0_i32_0 = arith.constant 0 : i32
    %c0_i32_1 = arith.constant 0 : i32
    return %arg0, %c0_i32, %c0_i32_0 : i32, i32, i32
  }
  func.func @transform_8(%arg0: i32) -> (i32, i32, i32) {
    %c0_i32 = arith.constant 0 : i32
    %c0_i32_0 = arith.constant 0 : i32
    %c0_i32_1 = arith.constant 0 : i32
    return %arg0, %c0_i32, %c0_i32_0 : i32, i32, i32
  }
}

module attributes {stable_mosaic.version = 11 : i64} {
  func.func @_conv2_kernel(%arg0: i32, %arg1: memref<1x16x16x128xbf16, #tpu.memory_space<vmem>>, %arg2: memref<1x128xf32, #tpu.memory_space<vmem>>, %arg3: memref<1x128xf32, #tpu.memory_space<vmem>>, %arg4: memref<9x128x128xbf16, #tpu.memory_space<vmem>>, %arg5: memref<1x16x16x128xbf16, #tpu.memory_space<vmem>>, %arg6: memref<1x1x128xf32, #tpu.memory_space<vmem>>, %arg7: memref<1x1x128xf32, #tpu.memory_space<vmem>>, %arg8: memref<19x24x128xbf16, #tpu.memory_space<vmem>>) attributes {dimension_semantics = [#tpu.dimension_semantics<parallel>], iteration_bounds = array<i64: 2>, scalar_prefetch = 0 : i64, scratch_operands = 1 : i64, tpu.core_type = #tpu.core_type<tc>, window_params = [{transform_indices = @transform_0, window_bounds = array<i64: 1, 16, 16, 128>}, {pipeline_mode = #tpu.pipeline_mode<synchronous>, transform_indices = @transform_1, window_bounds = array<i64: 1, 128>}, {pipeline_mode = #tpu.pipeline_mode<synchronous>, transform_indices = @transform_2, window_bounds = array<i64: 1, 128>}, {pipeline_mode = #tpu.pipeline_mode<synchronous>, transform_indices = @transform_3, window_bounds = array<i64: 9, 128, 128>}, {transform_indices = @transform_4, window_bounds = array<i64: 1, 16, 16, 128>}, {transform_indices = @transform_5, window_bounds = array<i64: 1, 1, 128>}, {transform_indices = @transform_6, window_bounds = array<i64: 1, 1, 128>}]} {
    %c0 = arith.constant 0 : index
    %c0_0 = arith.constant 0 : index
    %0 = vector.load %arg2[%c0, %c0_0] : memref<1x128xf32, #tpu.memory_space<vmem>>, vector<1x128xf32>
    %1 = vector.shape_cast %0 : vector<1x128xf32> to vector<1x1x128xf32>
    %c0_1 = arith.constant 0 : index
    %c0_2 = arith.constant 0 : index
    %2 = vector.load %arg3[%c0_1, %c0_2] : memref<1x128xf32, #tpu.memory_space<vmem>>, vector<1x128xf32>
    %3 = vector.shape_cast %2 : vector<1x128xf32> to vector<1x1x128xf32>
    %c0_3 = arith.constant 0 : index
    %c0_4 = arith.constant 0 : index
    %c0_5 = arith.constant 0 : index
    %c0_6 = arith.constant 0 : index
    %4 = vector.load %arg1[%c0_3, %c0_4, %c0_5, %c0_6] : memref<1x16x16x128xbf16, #tpu.memory_space<vmem>>, vector<1x16x16x128xbf16>
    %5 = vector.shape_cast %4 : vector<1x16x16x128xbf16> to vector<16x16x128xbf16>
    %6 = arith.extf %5 : vector<16x16x128xbf16> to vector<16x16x128xf32>
    %7 = vector.broadcast %1 : vector<1x1x128xf32> to vector<16x16x128xf32>
    %8 = arith.mulf %6, %7 : vector<16x16x128xf32>
    %9 = vector.broadcast %3 : vector<1x1x128xf32> to vector<16x16x128xf32>
    %10 = arith.addf %8, %9 : vector<16x16x128xf32>
    %cst = arith.constant 0.000000e+00 : f32
    %11 = vector.broadcast %cst : f32 to vector<16x16x128xf32>
    %12 = arith.maximumf %10, %11 : vector<16x16x128xf32>
    %cst_7 = arith.constant 0.000000e+00 : bf16
    %13 = vector.broadcast %cst_7 : bf16 to vector<1x24x128xbf16>
    %c0_8 = arith.constant 0 : index
    %c0_9 = arith.constant 0 : index
    %c0_10 = arith.constant 0 : index
    %14 = vector.load %arg8[%c0_8, %c0_9, %c0_10] : memref<19x24x128xbf16, #tpu.memory_space<vmem>>, vector<1x24x128xbf16>
    tpu.vector_store %arg8[%c0_8, %c0_9, %c0_10], %13 {strides = array<i32>} : memref<19x24x128xbf16, #tpu.memory_space<vmem>>, vector<1x24x128xbf16>,
    %cst_11 = arith.constant 0.000000e+00 : bf16
    %15 = vector.broadcast %cst_11 : bf16 to vector<2x24x128xbf16>
    %c17 = arith.constant 17 : index
    %c0_12 = arith.constant 0 : index
    %c0_13 = arith.constant 0 : index
    %16 = vector.load %arg8[%c17, %c0_12, %c0_13] : memref<19x24x128xbf16, #tpu.memory_space<vmem>>, vector<2x24x128xbf16>
    tpu.vector_store %arg8[%c17, %c0_12, %c0_13], %15 {strides = array<i32>} : memref<19x24x128xbf16, #tpu.memory_space<vmem>>, vector<2x24x128xbf16>,
    %cst_14 = arith.constant 0.000000e+00 : bf16
    %17 = vector.broadcast %cst_14 : bf16 to vector<16x1x128xbf16>
    %c1 = arith.constant 1 : index
    %c0_15 = arith.constant 0 : index
    %c0_16 = arith.constant 0 : index
    %18 = vector.load %arg8[%c1, %c0_15, %c0_16] : memref<19x24x128xbf16, #tpu.memory_space<vmem>>, vector<16x1x128xbf16>
    tpu.vector_store %arg8[%c1, %c0_15, %c0_16], %17 {strides = array<i32>} : memref<19x24x128xbf16, #tpu.memory_space<vmem>>, vector<16x1x128xbf16>,
    %cst_17 = arith.constant 0.000000e+00 : bf16
    %19 = vector.broadcast %cst_17 : bf16 to vector<16x7x128xbf16>
    %c1_18 = arith.constant 1 : index
    %c17_19 = arith.constant 17 : index
    %c0_20 = arith.constant 0 : index
    %20 = vector.load %arg8[%c1_18, %c17_19, %c0_20] : memref<19x24x128xbf16, #tpu.memory_space<vmem>>, vector<16x7x128xbf16>
    tpu.vector_store %arg8[%c1_18, %c17_19, %c0_20], %19 {strides = array<i32>} : memref<19x24x128xbf16, #tpu.memory_space<vmem>>, vector<16x7x128xbf16>,
    %21 = arith.truncf %12 : vector<16x16x128xf32> to vector<16x16x128xbf16>
    %c1_21 = arith.constant 1 : index
    %c1_22 = arith.constant 1 : index
    %c0_23 = arith.constant 0 : index
    %22 = vector.load %arg8[%c1_21, %c1_22, %c0_23] : memref<19x24x128xbf16, #tpu.memory_space<vmem>>, vector<16x16x128xbf16>
    tpu.vector_store %arg8[%c1_21, %c1_22, %c0_23], %21 {strides = array<i32>} : memref<19x24x128xbf16, #tpu.memory_space<vmem>>, vector<16x16x128xbf16>,
    %c0_24 = arith.constant 0 : index
    %c0_25 = arith.constant 0 : index
    %c0_26 = arith.constant 0 : index
    %23 = vector.load %arg8[%c0_24, %c0_25, %c0_26] : memref<19x24x128xbf16, #tpu.memory_space<vmem>>, vector<19x24x128xbf16>
    %24 = vector.shape_cast %23 : vector<19x24x128xbf16> to vector<456x128xbf16>
    %cst_27 = arith.constant 0.000000e+00 : f32
    %25 = vector.broadcast %cst_27 : f32 to vector<384x128xf32>
    %26 = vector.extract_strided_slice %24 {offsets = [0, 0], sizes = [384, 128], strides = [1, 1]} : vector<456x128xbf16> to vector<384x128xbf16>
    %c0_28 = arith.constant 0 : index
    %c0_29 = arith.constant 0 : index
    %c0_30 = arith.constant 0 : index
    %27 = vector.load %arg4[%c0_28, %c0_29, %c0_30] : memref<9x128x128xbf16, #tpu.memory_space<vmem>>, vector<1x128x128xbf16>
    %28 = vector.shape_cast %27 : vector<1x128x128xbf16> to vector<128x128xbf16>
    %cst_31 = arith.constant dense<0.000000e+00> : vector<384x128xf32>
    %29 = tpu.matmul %26, %28, %cst_31 {dimension_numbers = #tpu.dot_dimension_numbers<[1], [0], [0], [1], [0, 0, 1, 1], [], []>} : vector<384x128xbf16>, vector<128x128xbf16>, vector<384x128xf32> -> vector<384x128xf32>
    %30 = arith.addf %25, %29 : vector<384x128xf32>
    %31 = vector.extract_strided_slice %24 {offsets = [1, 0], sizes = [384, 128], strides = [1, 1]} : vector<456x128xbf16> to vector<384x128xbf16>
    %c1_32 = arith.constant 1 : index
    %c0_33 = arith.constant 0 : index
    %c0_34 = arith.constant 0 : index
    %32 = vector.load %arg4[%c1_32, %c0_33, %c0_34] : memref<9x128x128xbf16, #tpu.memory_space<vmem>>, vector<1x128x128xbf16>
    %33 = vector.shape_cast %32 : vector<1x128x128xbf16> to vector<128x128xbf16>
    %cst_35 = arith.constant dense<0.000000e+00> : vector<384x128xf32>
    %34 = tpu.matmul %31, %33, %cst_35 {dimension_numbers = #tpu.dot_dimension_numbers<[1], [0], [0], [1], [0, 0, 1, 1], [], []>} : vector<384x128xbf16>, vector<128x128xbf16>, vector<384x128xf32> -> vector<384x128xf32>
    %35 = arith.addf %30, %34 : vector<384x128xf32>
    %36 = vector.extract_strided_slice %24 {offsets = [2, 0], sizes = [384, 128], strides = [1, 1]} : vector<456x128xbf16> to vector<384x128xbf16>
    %c2 = arith.constant 2 : index
    %c0_36 = arith.constant 0 : index
    %c0_37 = arith.constant 0 : index
    %37 = vector.load %arg4[%c2, %c0_36, %c0_37] : memref<9x128x128xbf16, #tpu.memory_space<vmem>>, vector<1x128x128xbf16>
    %38 = vector.shape_cast %37 : vector<1x128x128xbf16> to vector<128x128xbf16>
    %cst_38 = arith.constant dense<0.000000e+00> : vector<384x128xf32>
    %39 = tpu.matmul %36, %38, %cst_38 {dimension_numbers = #tpu.dot_dimension_numbers<[1], [0], [0], [1], [0, 0, 1, 1], [], []>} : vector<384x128xbf16>, vector<128x128xbf16>, vector<384x128xf32> -> vector<384x128xf32>
    %40 = arith.addf %35, %39 : vector<384x128xf32>
    %41 = vector.extract_strided_slice %24 {offsets = [24, 0], sizes = [384, 128], strides = [1, 1]} : vector<456x128xbf16> to vector<384x128xbf16>
    %c3 = arith.constant 3 : index
    %c0_39 = arith.constant 0 : index
    %c0_40 = arith.constant 0 : index
    %42 = vector.load %arg4[%c3, %c0_39, %c0_40] : memref<9x128x128xbf16, #tpu.memory_space<vmem>>, vector<1x128x128xbf16>
    %43 = vector.shape_cast %42 : vector<1x128x128xbf16> to vector<128x128xbf16>
    %cst_41 = arith.constant dense<0.000000e+00> : vector<384x128xf32>
    %44 = tpu.matmul %41, %43, %cst_41 {dimension_numbers = #tpu.dot_dimension_numbers<[1], [0], [0], [1], [0, 0, 1, 1], [], []>} : vector<384x128xbf16>, vector<128x128xbf16>, vector<384x128xf32> -> vector<384x128xf32>
    %45 = arith.addf %40, %44 : vector<384x128xf32>
    %46 = vector.extract_strided_slice %24 {offsets = [25, 0], sizes = [384, 128], strides = [1, 1]} : vector<456x128xbf16> to vector<384x128xbf16>
    %c4 = arith.constant 4 : index
    %c0_42 = arith.constant 0 : index
    %c0_43 = arith.constant 0 : index
    %47 = vector.load %arg4[%c4, %c0_42, %c0_43] : memref<9x128x128xbf16, #tpu.memory_space<vmem>>, vector<1x128x128xbf16>
    %48 = vector.shape_cast %47 : vector<1x128x128xbf16> to vector<128x128xbf16>
    %cst_44 = arith.constant dense<0.000000e+00> : vector<384x128xf32>
    %49 = tpu.matmul %46, %48, %cst_44 {dimension_numbers = #tpu.dot_dimension_numbers<[1], [0], [0], [1], [0, 0, 1, 1], [], []>} : vector<384x128xbf16>, vector<128x128xbf16>, vector<384x128xf32> -> vector<384x128xf32>
    %50 = arith.addf %45, %49 : vector<384x128xf32>
    %51 = vector.extract_strided_slice %24 {offsets = [26, 0], sizes = [384, 128], strides = [1, 1]} : vector<456x128xbf16> to vector<384x128xbf16>
    %c5 = arith.constant 5 : index
    %c0_45 = arith.constant 0 : index
    %c0_46 = arith.constant 0 : index
    %52 = vector.load %arg4[%c5, %c0_45, %c0_46] : memref<9x128x128xbf16, #tpu.memory_space<vmem>>, vector<1x128x128xbf16>
    %53 = vector.shape_cast %52 : vector<1x128x128xbf16> to vector<128x128xbf16>
    %cst_47 = arith.constant dense<0.000000e+00> : vector<384x128xf32>
    %54 = tpu.matmul %51, %53, %cst_47 {dimension_numbers = #tpu.dot_dimension_numbers<[1], [0], [0], [1], [0, 0, 1, 1], [], []>} : vector<384x128xbf16>, vector<128x128xbf16>, vector<384x128xf32> -> vector<384x128xf32>
    %55 = arith.addf %50, %54 : vector<384x128xf32>
    %56 = vector.extract_strided_slice %24 {offsets = [48, 0], sizes = [384, 128], strides = [1, 1]} : vector<456x128xbf16> to vector<384x128xbf16>
    %c6 = arith.constant 6 : index
    %c0_48 = arith.constant 0 : index
    %c0_49 = arith.constant 0 : index
    %57 = vector.load %arg4[%c6, %c0_48, %c0_49] : memref<9x128x128xbf16, #tpu.memory_space<vmem>>, vector<1x128x128xbf16>
    %58 = vector.shape_cast %57 : vector<1x128x128xbf16> to vector<128x128xbf16>
    %cst_50 = arith.constant dense<0.000000e+00> : vector<384x128xf32>
    %59 = tpu.matmul %56, %58, %cst_50 {dimension_numbers = #tpu.dot_dimension_numbers<[1], [0], [0], [1], [0, 0, 1, 1], [], []>} : vector<384x128xbf16>, vector<128x128xbf16>, vector<384x128xf32> -> vector<384x128xf32>
    %60 = arith.addf %55, %59 : vector<384x128xf32>
    %61 = vector.extract_strided_slice %24 {offsets = [49, 0], sizes = [384, 128], strides = [1, 1]} : vector<456x128xbf16> to vector<384x128xbf16>
    %c7 = arith.constant 7 : index
    %c0_51 = arith.constant 0 : index
    %c0_52 = arith.constant 0 : index
    %62 = vector.load %arg4[%c7, %c0_51, %c0_52] : memref<9x128x128xbf16, #tpu.memory_space<vmem>>, vector<1x128x128xbf16>
    %63 = vector.shape_cast %62 : vector<1x128x128xbf16> to vector<128x128xbf16>
    %cst_53 = arith.constant dense<0.000000e+00> : vector<384x128xf32>
    %64 = tpu.matmul %61, %63, %cst_53 {dimension_numbers = #tpu.dot_dimension_numbers<[1], [0], [0], [1], [0, 0, 1, 1], [], []>} : vector<384x128xbf16>, vector<128x128xbf16>, vector<384x128xf32> -> vector<384x128xf32>
    %65 = arith.addf %60, %64 : vector<384x128xf32>
    %66 = vector.extract_strided_slice %24 {offsets = [50, 0], sizes = [384, 128], strides = [1, 1]} : vector<456x128xbf16> to vector<384x128xbf16>
    %c8 = arith.constant 8 : index
    %c0_54 = arith.constant 0 : index
    %c0_55 = arith.constant 0 : index
    %67 = vector.load %arg4[%c8, %c0_54, %c0_55] : memref<9x128x128xbf16, #tpu.memory_space<vmem>>, vector<1x128x128xbf16>
    %68 = vector.shape_cast %67 : vector<1x128x128xbf16> to vector<128x128xbf16>
    %cst_56 = arith.constant dense<0.000000e+00> : vector<384x128xf32>
    %69 = tpu.matmul %66, %68, %cst_56 {dimension_numbers = #tpu.dot_dimension_numbers<[1], [0], [0], [1], [0, 0, 1, 1], [], []>} : vector<384x128xbf16>, vector<128x128xbf16>, vector<384x128xf32> -> vector<384x128xf32>
    %70 = arith.addf %65, %69 : vector<384x128xf32>
    %71 = vector.shape_cast %70 : vector<384x128xf32> to vector<16x1x24x128xf32>
    %72 = vector.shape_cast %71 : vector<16x1x24x128xf32> to vector<16x24x128xf32>
    %73 = vector.extract_strided_slice %72 {offsets = [0, 0, 0], sizes = [16, 16, 128], strides = [1, 1, 1]} : vector<16x24x128xf32> to vector<16x16x128xf32>
    %74 = arith.truncf %73 : vector<16x16x128xf32> to vector<16x16x128xbf16>
    %75 = vector.shape_cast %74 : vector<16x16x128xbf16> to vector<1x16x16x128xbf16>
    %c0_57 = arith.constant 0 : index
    %c0_58 = arith.constant 0 : index
    %c0_59 = arith.constant 0 : index
    %c0_60 = arith.constant 0 : index
    %76 = vector.load %arg5[%c0_57, %c0_58, %c0_59, %c0_60] : memref<1x16x16x128xbf16, #tpu.memory_space<vmem>>, vector<1x16x16x128xbf16>
    tpu.vector_store %arg5[%c0_57, %c0_58, %c0_59, %c0_60], %75 {strides = array<i32>} : memref<1x16x16x128xbf16, #tpu.memory_space<vmem>>, vector<1x16x16x128xbf16>,
    %77 = arith.extf %74 : vector<16x16x128xbf16> to vector<16x16x128xf32>
    %cst_61 = arith.constant dense<0.000000e+00> : vector<128xf32>
    %78 = vector.multi_reduction <add>, %77, %cst_61 [0, 1] : vector<16x16x128xf32> to vector<128xf32>
    %79 = vector.shape_cast %78 : vector<128xf32> to vector<1x1x128xf32>
    %c0_62 = arith.constant 0 : index
    %c0_63 = arith.constant 0 : index
    %c0_64 = arith.constant 0 : index
    %80 = vector.load %arg6[%c0_62, %c0_63, %c0_64] : memref<1x1x128xf32, #tpu.memory_space<vmem>>, vector<1x1x128xf32>
    tpu.vector_store %arg6[%c0_62, %c0_63, %c0_64], %79 {strides = array<i32>} : memref<1x1x128xf32, #tpu.memory_space<vmem>>, vector<1x1x128xf32>,
    %81 = arith.mulf %77, %77 : vector<16x16x128xf32>
    %cst_65 = arith.constant dense<0.000000e+00> : vector<128xf32>
    %82 = vector.multi_reduction <add>, %81, %cst_65 [0, 1] : vector<16x16x128xf32> to vector<128xf32>
    %83 = vector.shape_cast %82 : vector<128xf32> to vector<1x1x128xf32>
    %c0_66 = arith.constant 0 : index
    %c0_67 = arith.constant 0 : index
    %c0_68 = arith.constant 0 : index
    %84 = vector.load %arg7[%c0_66, %c0_67, %c0_68] : memref<1x1x128xf32, #tpu.memory_space<vmem>>, vector<1x1x128xf32>
    tpu.vector_store %arg7[%c0_66, %c0_67, %c0_68], %83 {strides = array<i32>} : memref<1x1x128xf32, #tpu.memory_space<vmem>>, vector<1x1x128xf32>,
    return
  }
  func.func @transform_0(%arg0: i32) -> (i32, i32, i32, i32) {
    %c0_i32 = arith.constant 0 : i32
    %c0_i32_0 = arith.constant 0 : i32
    %c0_i32_1 = arith.constant 0 : i32
    %c0_i32_2 = arith.constant 0 : i32
    return %arg0, %c0_i32, %c0_i32_0, %c0_i32_1 : i32, i32, i32, i32
  }
  func.func @transform_1(%arg0: i32) -> (i32, i32) {
    %c0_i32 = arith.constant 0 : i32
    %c0_i32_0 = arith.constant 0 : i32
    %c0_i32_1 = arith.constant 0 : i32
    return %c0_i32, %c0_i32_0 : i32, i32
  }
  func.func @transform_2(%arg0: i32) -> (i32, i32) {
    %c0_i32 = arith.constant 0 : i32
    %c0_i32_0 = arith.constant 0 : i32
    %c0_i32_1 = arith.constant 0 : i32
    return %c0_i32, %c0_i32_0 : i32, i32
  }
  func.func @transform_3(%arg0: i32) -> (i32, i32, i32) {
    %c0_i32 = arith.constant 0 : i32
    %c0_i32_0 = arith.constant 0 : i32
    %c0_i32_1 = arith.constant 0 : i32
    %c0_i32_2 = arith.constant 0 : i32
    return %c0_i32, %c0_i32_0, %c0_i32_1 : i32, i32, i32
  }
  func.func @transform_4(%arg0: i32) -> (i32, i32, i32, i32) {
    %c0_i32 = arith.constant 0 : i32
    %c0_i32_0 = arith.constant 0 : i32
    %c0_i32_1 = arith.constant 0 : i32
    %c0_i32_2 = arith.constant 0 : i32
    return %arg0, %c0_i32, %c0_i32_0, %c0_i32_1 : i32, i32, i32, i32
  }
  func.func @transform_5(%arg0: i32) -> (i32, i32, i32) {
    %c0_i32 = arith.constant 0 : i32
    %c0_i32_0 = arith.constant 0 : i32
    %c0_i32_1 = arith.constant 0 : i32
    return %arg0, %c0_i32, %c0_i32_0 : i32, i32, i32
  }
  func.func @transform_6(%arg0: i32) -> (i32, i32, i32) {
    %c0_i32 = arith.constant 0 : i32
    %c0_i32_0 = arith.constant 0 : i32
    %c0_i32_1 = arith.constant 0 : i32
    return %arg0, %c0_i32, %c0_i32_0 : i32, i32, i32
  }
}

module attributes {stable_mosaic.version = 11 : i64} {
  func.func @_stage3_res_kernel(%arg0: i32, %arg1: memref<256x128xbf16, #tpu.memory_space<vmem>>, %arg2: memref<1x128xf32, #tpu.memory_space<vmem>>, %arg3: memref<1x128xf32, #tpu.memory_space<vmem>>, %arg4: memref<128x128xbf16, #tpu.memory_space<vmem>>, %arg5: memref<256x128xbf16, #tpu.memory_space<vmem>>, %arg6: memref<256x128xf32, #tpu.memory_space<vmem>>) attributes {dimension_semantics = [#tpu.dimension_semantics<parallel>], iteration_bounds = array<i64: 2>, scalar_prefetch = 0 : i64, scratch_operands = 0 : i64, tpu.core_type = #tpu.core_type<tc>, window_params = [{transform_indices = @transform_0, window_bounds = array<i64: 256, 128>}, {pipeline_mode = #tpu.pipeline_mode<synchronous>, transform_indices = @transform_1, window_bounds = array<i64: 1, 128>}, {pipeline_mode = #tpu.pipeline_mode<synchronous>, transform_indices = @transform_2, window_bounds = array<i64: 1, 128>}, {pipeline_mode = #tpu.pipeline_mode<synchronous>, transform_indices = @transform_3, window_bounds = array<i64: 128, 128>}, {transform_indices = @transform_4, window_bounds = array<i64: 256, 128>}, {transform_indices = @transform_5, window_bounds = array<i64: 256, 128>}]} {
    %c0 = arith.constant 0 : index
    %c0_0 = arith.constant 0 : index
    %0 = vector.load %arg1[%c0, %c0_0] : memref<256x128xbf16, #tpu.memory_space<vmem>>, vector<256x128xbf16>
    %1 = arith.extf %0 : vector<256x128xbf16> to vector<256x128xf32>
    %c0_1 = arith.constant 0 : index
    %c0_2 = arith.constant 0 : index
    %2 = vector.load %arg2[%c0_1, %c0_2] : memref<1x128xf32, #tpu.memory_space<vmem>>, vector<1x128xf32>
    %3 = vector.broadcast %2 : vector<1x128xf32> to vector<256x128xf32>
    %4 = arith.mulf %1, %3 : vector<256x128xf32>
    %c0_3 = arith.constant 0 : index
    %c0_4 = arith.constant 0 : index
    %5 = vector.load %arg3[%c0_3, %c0_4] : memref<1x128xf32, #tpu.memory_space<vmem>>, vector<1x128xf32>
    %6 = vector.broadcast %5 : vector<1x128xf32> to vector<256x128xf32>
    %7 = arith.addf %4, %6 : vector<256x128xf32>
    %cst = arith.constant 0.000000e+00 : f32
    %8 = vector.broadcast %cst : f32 to vector<256x128xf32>
    %9 = arith.maximumf %7, %8 : vector<256x128xf32>
    %10 = arith.truncf %9 : vector<256x128xf32> to vector<256x128xbf16>
    %c0_5 = arith.constant 0 : index
    %c0_6 = arith.constant 0 : index
    %11 = vector.load %arg4[%c0_5, %c0_6] : memref<128x128xbf16, #tpu.memory_space<vmem>>, vector<128x128xbf16>
    %cst_7 = arith.constant dense<0.000000e+00> : vector<256x128xf32>
    %12 = tpu.matmul %10, %11, %cst_7 {dimension_numbers = #tpu.dot_dimension_numbers<[1], [0], [0], [1], [0, 0, 1, 1], [], []>} : vector<256x128xbf16>, vector<128x128xbf16>, vector<256x128xf32> -> vector<256x128xf32>
    %c0_8 = arith.constant 0 : index
    %c0_9 = arith.constant 0 : index
    %13 = vector.load %arg5[%c0_8, %c0_9] : memref<256x128xbf16, #tpu.memory_space<vmem>>, vector<256x128xbf16>
    %14 = arith.extf %13 : vector<256x128xbf16> to vector<256x128xf32>
    %15 = arith.addf %12, %14 : vector<256x128xf32>
    %c0_10 = arith.constant 0 : index
    %c0_11 = arith.constant 0 : index
    %16 = vector.load %arg6[%c0_10, %c0_11] : memref<256x128xf32, #tpu.memory_space<vmem>>, vector<256x128xf32>
    tpu.vector_store %arg6[%c0_10, %c0_11], %15 {strides = array<i32>} : memref<256x128xf32, #tpu.memory_space<vmem>>, vector<256x128xf32>,
    return
  }
  func.func @transform_0(%arg0: i32) -> (i32, i32) {
    %c0_i32 = arith.constant 0 : i32
    %c0_i32_0 = arith.constant 0 : i32
    return %arg0, %c0_i32 : i32, i32
  }
  func.func @transform_1(%arg0: i32) -> (i32, i32) {
    %c0_i32 = arith.constant 0 : i32
    %c0_i32_0 = arith.constant 0 : i32
    %c0_i32_1 = arith.constant 0 : i32
    return %c0_i32, %c0_i32_0 : i32, i32
  }
  func.func @transform_2(%arg0: i32) -> (i32, i32) {
    %c0_i32 = arith.constant 0 : i32
    %c0_i32_0 = arith.constant 0 : i32
    %c0_i32_1 = arith.constant 0 : i32
    return %c0_i32, %c0_i32_0 : i32, i32
  }
  func.func @transform_3(%arg0: i32) -> (i32, i32) {
    %c0_i32 = arith.constant 0 : i32
    %c0_i32_0 = arith.constant 0 : i32
    %c0_i32_1 = arith.constant 0 : i32
    return %c0_i32, %c0_i32_0 : i32, i32
  }
  func.func @transform_4(%arg0: i32) -> (i32, i32) {
    %c0_i32 = arith.constant 0 : i32
    %c0_i32_0 = arith.constant 0 : i32
    return %arg0, %c0_i32 : i32, i32
  }
  func.func @transform_5(%arg0: i32) -> (i32, i32) {
    %c0_i32 = arith.constant 0 : i32
    %c0_i32_0 = arith.constant 0 : i32
    return %arg0, %c0_i32 : i32, i32
  }
}

</mosaic_0001>

<bundles_post_ra>
// kernel: preact_bottleneck_pallas.5
= control target key start
LH: loop header
LB: loop body
LE: loop exit
PB: predicated region body
PF: predicated region fallthrough
CT: control target
= control target key end

     0   :  { %s1153_s18 = smov 0   ;;  %s1349_s0 = inlined_call_operand.vmem [shape: bf16[512,128], index: 0, kind: input, shape index: {}]   ;;  %s1350_s1 = inlined_call_operand.vmem [shape: f32[1,128], index: 1, kind: input, shape index: {}]   ;;  %s1351_s2 = inlined_call_operand.vmem [shape: f32[1,128], index: 2, kind: input, shape index: {}]   ;;  %s1352_s3 = inlined_call_operand.vmem [shape: bf16[128,128], index: 3, kind: input, shape index: {}]   ;;  %s1353_s4 = inlined_call_operand.vmem [shape: bf16[512,128], index: 4, kind: input, shape index: {}]   ;;  %s1354_s5 = inlined_call_operand.vmem [shape: f32[512,128], index: 5, kind: output, shape index: {}]  }
   0x1 LB: > { %s830_s19 = sadd.s32 4294967295, %s1121_s18   ;;  %p834_p0 = scmp.ge.s32.totalorder %s1121_s18, 1  ;;  %s1121_s18 = sphi %s1153_s18, %s15_s18  }
   0x2   : > { %p199_p1 = scmp.lt.s32.totalorder %s1121_s18, 3 }
   0x4   : > { %p200_p2 = pnand %p834_p0, %p199_p1 }
   0x5   : > { %v1107_v0 = vld [vmem:[%s1352_s3] sm:$0xff] (!%p200_p2)   ;;  %s835_s22 = sshll.u32 (!%p200_p2), %s830_s19, 5  ;;  %v1108_v1 = vld [vmem:[%s1352_s3 + $0x8] sm:$0xff] (!%p200_p2)   ;;  %v1109_v2 = vld [vmem:[%s1352_s3 + $0x10] sm:$0xff] (!%p200_p2)  }
   0x6   : > { %203 = sbr.rel (%p200_p2) target bundleno = 281 (0x119), region = 40  ;;  %p233_p3 = scmp.lt.s32.totalorder (!%p200_p2), %s835_s22, 63  ;;  %1035 = vmatprep.subr.bf16.mxu0 (!%p200_p2), %v1107_v0  ;;  %1083 = vmatprep.subr.bf16.mxu1 (!%p200_p2), %v1107_v0  ;;  %v1110_v3 = vld [vmem:[%s1352_s3 + $0x18] sm:$0xff] (!%p200_p2)   ;;  %v1187_v5 = vld [vmem:[%s1350_s1] ss:$0 sm:$0xff] (!%p200_p2)  ;;  %v1112_v37 = vld [vmem:[%s1352_s3 + $0x28] sm:$0xff] (!%p200_p2)  }
   0x7   : > { %1036 = vmatpush3.bf16.msra.mxu0 (!%p200_p2), %v1107_v0  ;;  %1091 = vmatpush3.bf16.msra.mxu1 (!%p200_p2), %v1107_v0  ;;  %v1195_v11 = vld [vmem:[%s1351_s2] ss:$0 sm:$0xff] (!%p200_p2)  ;;  %v1113_v54 = vld [vmem:[%s1352_s3 + $0x30] sm:$0xff] (!%p200_p2)  }
   0x8   : > { %1037 = vmatprep.subr.bf16.mxu0 (!%p200_p2), %v1108_v1  ;;  %1084 = vmatprep.subr.bf16.mxu1 (!%p200_p2), %v1108_v1  ;;  %v1111_v21 = vld [vmem:[%s1352_s3 + $0x20] sm:$0xff] (!%p200_p2)  }
   0xb   : > { %1038 = vmatpush3.bf16.msra.mxu0 (!%p200_p2), %v1108_v1  ;;  %1092 = vmatpush3.bf16.msra.mxu1 (!%p200_p2), %v1108_v1 }
   0xc   : > { %1039 = vmatprep.subr.bf16.mxu0 (!%p200_p2), %v1109_v2  ;;  %1085 = vmatprep.subr.bf16.mxu1 (!%p200_p2), %v1109_v2 }
   0xd   : > { %s1356_s22 = smov (!%p233_p3, %s835_s22), 63 }
   0xe   : > { %s836_s27 = sshll.u32 %s1356_s22, 2  ;;  %s840_s25 = sshll.u32 %s1356_s22, 3 }
   0xf   : > { %s1178_s30 = scalar_lea.vmem %s1349_s0, %s836_s27  ;;  %1040 = vmatpush3.bf16.msra.mxu0 %v1109_v2  ;;  %1093 = vmatpush3.bf16.msra.mxu1 %v1109_v2  ;;  %s1290_s24 = scalar_lea.vmem %s1353_s4, %s836_s27 }
  0x10   : > { %v854_v4 = vld [vmem:[%s1178_s30] sm:$0xff]   ;;  %v981_v9 = vld [vmem:[%s1178_s30 + $0x8] sm:$0xff]   ;;  %v982_v20 = vld [vmem:[%s1178_s30 + $0x10] sm:$0xff]   ;;  %1041 = vmatprep.subr.bf16.mxu0 %v1110_v3  ;;  %1086 = vmatprep.subr.bf16.mxu1 %v1110_v3  ;;  %s1300_s28 = scalar_lea.vmem %s1354_s5, %s840_s25 }
  0x11   : > { %v855_v6 = vunpack.c.l.bf16 %v854_v4  ;;  %v856_v7 = vunpack.c.h.bf16 %v854_v4  ;;  %v988_v8 = vld [vmem:[%s1178_s30 + $0x40] sm:$0xff]   ;;  %v989_v10 = vld [vmem:[%s1178_s30 + $0x48] sm:$0xff]   ;;  %v859_v14 = vunpack.c.l.bf16 %v981_v9  ;;  %v860_v15 = vunpack.c.h.bf16 %v981_v9  ;;  %v990_v36 = vld [vmem:[%s1178_s30 + $0x50] sm:$0xff]  }
  0x12   : > { %v887_v12 = vunpack.c.l.bf16 %v988_v8  ;;  %v888_v13 = vunpack.c.h.bf16 %v988_v8  ;;  %v891_v18 = vunpack.c.l.bf16 %v989_v10  ;;  %v892_v19 = vunpack.c.h.bf16 %v989_v10  ;;  %v983_v41 = vld [vmem:[%s1178_s30 + $0x18] sm:$0xff]   ;;  %v984_v63 = vld [vmem:[%s1178_s30 + $0x20] sm:$0xff]  }
  0x13   : > { %v322_v16 = vmul.f32 %v855_v6, %v1187_v5  ;;  %v323_v17 = vmul.f32 %v856_v7, %v1187_v5  ;;  %v324_v24 = vmul.f32 %v859_v14, %v1187_v5  ;;  %v325_v27 = vmul.f32 %v860_v15, %v1187_v5  ;;  %1042 = vmatpush3.bf16.msra.mxu0 %v1110_v3  ;;  %v991_v49 = vld [vmem:[%s1178_s30 + $0x58] sm:$0xff]   ;;  %v992_v15 = vld [vmem:[%s1178_s30 + $0x60] sm:$0xff]  }
  0x14   : > { %v338_v22 = vmul.f32 %v887_v12, %v1187_v5  ;;  %v339_v23 = vmul.f32 %v888_v13, %v1187_v5  ;;  %v340_v28 = vmul.f32 %v891_v18, %v1187_v5  ;;  %v863_v32 = vunpack.c.l.bf16 %v982_v20  ;;  %1094 = vmatpush3.bf16.msra.mxu1 %v1110_v3  ;;  %1043 = vmatprep.subr.bf16.mxu0 %v1111_v21  ;;  %v1114_v9 = vld [vmem:[%s1352_s3 + $0x38] sm:$0xff]  }
  0x15   : > { %v361_v25 = vadd.f32 %v1195_v11, %v322_v16  ;;  %v362_v26 = vadd.f32 %v1195_v11, %v323_v17  ;;  %v363_v31 = vadd.f32 %v1195_v11, %v324_v24  ;;  %v341_v35 = vmul.f32 %v892_v19, %v1187_v5  ;;  %1087 = vmatprep.subr.bf16.mxu1 %v1111_v21 }
  0x16   : > { %v377_v29 = vadd.f32 %v1195_v11, %v338_v22  ;;  %v378_v30 = vadd.f32 %v1195_v11, %v339_v23  ;;  %v364_v40 = vadd.f32 %v1195_v11, %v325_v27  ;;  %v379_v43 = vadd.f32 %v1195_v11, %v340_v28  ;;  %v985_v22 = vld [vmem:[%s1178_s30 + $0x28] sm:$0xff]  }
  0x17   : > { %v393_v33 = vmax.f32 %v361_v25, 0.0  ;;  %v394_v34 = vmax.f32 %v362_v26, 0.0  ;;  %v864_v44 = vunpack.c.h.bf16 %v982_v20  ;;  %v395_v46 = vmax.f32 %v363_v31, 0.0  ;;  %1044 = vmatpush3.bf16.msra.mxu0 %v1111_v21  ;;  %v993_v27 = vld [vmem:[%s1178_s30 + $0x68] sm:$0xff]  }
  0x18   : > { %v409_v38 = vmax.f32 %v377_v29, 0.0  ;;  %v410_v39 = vmax.f32 %v378_v30, 0.0  ;;  %v326_v47 = vmul.f32 %v863_v32, %v1187_v5  ;;  %v895_v48 = vunpack.c.l.bf16 %v990_v36  ;;  %1095 = vmatpush3.bf16.msra.mxu1 %v1111_v21  ;;  %1045 = vmatprep.subr.bf16.mxu0 %v1112_v37 }
  0x19   : > { %v425_v42 = vpack.c.bf16 %v394_v34, %v393_v33  ;;  %v380_v50 = vadd.f32 %v1195_v11, %v341_v35  ;;  %v327_v51 = vmul.f32 %v864_v44, %v1187_v5  ;;  %v896_v52 = vunpack.c.h.bf16 %v990_v36  ;;  %1088 = vmatprep.subr.bf16.mxu1 %v1112_v37  ;;  %v986_v36 = vld [vmem:[%s1178_s30 + $0x30] sm:$0xff]  }
  0x1a   : > { %v433_v45 = vpack.c.bf16 %v410_v39, %v409_v38  ;;  %v867_v53 = vunpack.c.l.bf16 %v983_v41  ;;  %v396_v55 = vmax.f32 %v364_v40, 0.0  ;;  %v365_v56 = vadd.f32 %v1195_v11, %v326_v47 }
  0x1b   : > { %v342_v57 = vmul.f32 %v895_v48, %v1187_v5  ;;  %v868_v58 = vunpack.c.h.bf16 %v983_v41  ;;  %1051 = vmatprep.mubr.bf16.mxu0 %v425_v42  ;;  %v366_v59 = vadd.f32 %v1195_v11, %v327_v51  ;;  %v343_v60 = vmul.f32 %v896_v52, %v1187_v5  ;;  %1046 = vmatpush3.bf16.msra.mxu0 %v1112_v37  ;;  %v994_v52 = vld [vmem:[%s1178_s30 + $0x70] sm:$0xff]  }
  0x1c   : > { %1067 = vmatprep.mubr.bf16.mxu1 %v433_v45  ;;  %v328_v61 = vmul.f32 %v867_v53, %v1187_v5  ;;  %v899_v62 = vunpack.c.l.bf16 %v991_v49  ;;  %v411_v0 = vmax.f32 %v379_v43, 0.0  ;;  %v900_v3 = vunpack.c.h.bf16 %v991_v49  ;;  %1096 = vmatpush3.bf16.msra.mxu1 %v1112_v37 }
  0x1d   : > { %v381_v1 = vadd.f32 %v1195_v11, %v342_v57  ;;  %v329_v2 = vmul.f32 %v868_v58, %v1187_v5  ;;  %v412_v4 = vmax.f32 %v380_v50, 0.0  ;;  %v397_v6 = vmax.f32 %v365_v56, 0.0  ;;  %1047 = vmatprep.subr.bf16.mxu0 %v1113_v54  ;;  %1089 = vmatprep.subr.bf16.mxu1 %v1113_v54 }
  0x1e   : > { %v398_v7 = vmax.f32 %v366_v59, 0.0  ;;  %v382_v8 = vadd.f32 %v1195_v11, %v343_v60  ;;  %v367_v10 = vadd.f32 %v1195_v11, %v328_v61  ;;  %v344_v12 = vmul.f32 %v899_v62, %v1187_v5  ;;  %v987_v60 = vld [vmem:[%s1178_s30 + $0x38] sm:$0xff]  }
  0x1f   : > { %v345_v13 = vmul.f32 %v900_v3, %v1187_v5  ;;  %v871_v14 = vunpack.c.l.bf16 %v984_v63  ;;  %v426_v16 = vpack.c.bf16 %v396_v55, %v395_v46  ;;  %v413_v17 = vmax.f32 %v381_v1, 0.0  ;;  %1048 = vmatpush3.bf16.msra.mxu0 %v1113_v54 }
  0x20   : > { %v414_v18 = vmax.f32 %v382_v8, 0.0  ;;  %v368_v19 = vadd.f32 %v1195_v11, %v329_v2  ;;  %v872_v20 = vunpack.c.h.bf16 %v984_v63  ;;  %1097 = vmatpush3.bf16.msra.mxu1 %v1113_v54  ;;  %v434_v23 = vpack.c.bf16 %v412_v4, %v411_v0  ;;  %1049 = vmatprep.subr.bf16.mxu0 %v1114_v9 }
  0x21   : > { %v330_v21 = vmul.f32 %v871_v14, %v1187_v5  ;;  %v427_v24 = vpack.c.bf16 %v398_v7, %v397_v6  ;;  %v903_v25 = vunpack.c.l.bf16 %v992_v15  ;;  %v904_v26 = vunpack.c.h.bf16 %v992_v15  ;;  %1090 = vmatprep.subr.bf16.mxu1 %v1114_v9  ;;  %v995_v6 = vld [vmem:[%s1178_s30 + $0x78] sm:$0xff]  }
  0x22   : > { %v399_v28 = vmax.f32 %v367_v10, 0.0  ;;  %v383_v29 = vadd.f32 %v1195_v11, %v344_v12  ;;  %v384_v30 = vadd.f32 %v1195_v11, %v345_v13  ;;  %v331_v31 = vmul.f32 %v872_v20, %v1187_v5 }
  0x23   : > { %v346_v32 = vmul.f32 %v903_v25, %v1187_v5  ;;  %v347_v33 = vmul.f32 %v904_v26, %v1187_v5  ;;  %v875_v34 = vunpack.c.l.bf16 %v985_v22  ;;  %v876_v35 = vunpack.c.h.bf16 %v985_v22  ;;  %1050 = vmatpush3.bf16.msra.mxu0 %v1114_v9 }
  0x24   : > { %v435_v37 = vpack.c.bf16 %v414_v18, %v413_v17  ;;  %v400_v38 = vmax.f32 %v368_v19, 0.0  ;;  %v369_v39 = vadd.f32 %v1195_v11, %v330_v21  ;;  %v907_v40 = vunpack.c.l.bf16 %v993_v27  ;;  %1098 = vmatpush3.bf16.msra.mxu1 %v1114_v9 }
  0x25   : > { %v370_v41 = vadd.f32 %v1195_v11, %v331_v31  ;;  %v385_v42 = vadd.f32 %v1195_v11, %v346_v32  ;;  %v386_v43 = vadd.f32 %v1195_v11, %v347_v33  ;;  %v908_v44 = vunpack.c.h.bf16 %v993_v27 }
  0x26   : > { %v332_v45 = vmul.f32 %v875_v34, %v1187_v5  ;;  %v333_v46 = vmul.f32 %v876_v35, %v1187_v5  ;;  %v879_v47 = vunpack.c.l.bf16 %v986_v36  ;;  %v415_v48 = vmax.f32 %v383_v29, 0.0  ;;  %1052 = vmatmul.mubr.bf16.vlgmr.msra.gmra.mrb[0].mxu0 %v426_v16 }
  0x27   : > { %v416_v49 = vmax.f32 %v384_v30, 0.0  ;;  %v348_v50 = vmul.f32 %v907_v40, %v1187_v5  ;;  %v349_v51 = vmul.f32 %v908_v44, %v1187_v5  ;;  %1068 = vmatmul.mubr.bf16.vlgmr.msra.gmra.mrb[0].mxu1 %v434_v23  ;;  %v428_v53 = vpack.c.bf16 %v400_v38, %v399_v28  ;;  %1055 = vmatprep.mubr.bf16.mxu0 %v427_v24 }
  0x28   : > { %v401_v54 = vmax.f32 %v369_v39, 0.0  ;;  %v880_v55 = vunpack.c.h.bf16 %v986_v36  ;;  %1071 = vmatprep.mubr.bf16.mxu1 %v435_v37  ;;  %v402_v56 = vmax.f32 %v370_v41, 0.0  ;;  %v417_v57 = vmax.f32 %v385_v42, 0.0 }
  0x29   : > { %v418_v58 = vmax.f32 %v386_v43, 0.0  ;;  %v334_v59 = vmul.f32 %v879_v47, %v1187_v5  ;;  %v371_v61 = vadd.f32 %v1195_v11, %v332_v45  ;;  %v372_v62 = vadd.f32 %v1195_v11, %v333_v46  ;;  %v1004_v45 = vld [vmem:[%s1290_s24 + $0x48] sm:$0xff]   ;;  %v918_v46 = vld [vmem:[%s1290_s24] sm:$0xff]  }
  0x2a   : > { %v335_v63 = vmul.f32 %v880_v55, %v1187_v5  ;;  %v911_v0 = vunpack.c.l.bf16 %v994_v52  ;;  %v436_v1 = vpack.c.bf16 %v416_v49, %v415_v48  ;;  %v387_v2 = vadd.f32 %v1195_v11, %v348_v50  ;;  %v1003_v47 = vld [vmem:[%s1290_s24 + $0x40] sm:$0xff]  }
  0x2b   : > { %v388_v3 = vadd.f32 %v1195_v11, %v349_v51  ;;  %v912_v4 = vunpack.c.h.bf16 %v994_v52  ;;  %v373_v7 = vadd.f32 %v1195_v11, %v334_v59  ;;  %v883_v9 = vunpack.c.l.bf16 %v987_v60 }
  0x2c   : > { %v350_v8 = vmul.f32 %v911_v0, %v1187_v5  ;;  %v884_v10 = vunpack.c.h.bf16 %v987_v60  ;;  %v429_v12 = vpack.c.bf16 %v402_v56, %v401_v54  ;;  %v437_v13 = vpack.c.bf16 %v418_v58, %v417_v57 }
  0x2d   : > { %v374_v14 = vadd.f32 %v1195_v11, %v335_v63  ;;  %v351_v15 = vmul.f32 %v912_v4, %v1187_v5  ;;  %v403_v16 = vmax.f32 %v371_v61, 0.0  ;;  %v404_v17 = vmax.f32 %v372_v62, 0.0 }
  0x2e   : > { %v389_v18 = vadd.f32 %v1195_v11, %v350_v8  ;;  %v915_v19 = vunpack.c.l.bf16 %v995_v6  ;;  %v419_v20 = vmax.f32 %v387_v2, 0.0  ;;  %v420_v21 = vmax.f32 %v388_v3, 0.0  ;;  %1056 = vmatmul.mubr.bf16.gmra.mrb[4].mxu0 %v428_v53  ;;  %v998_v2 = vld [vmem:[%s1290_s24 + $0x18] sm:$0xff]  }
  0x2f   : > { %v390_v22 = vadd.f32 %v1195_v11, %v351_v15  ;;  %v916_v23 = vunpack.c.h.bf16 %v995_v6  ;;  %1072 = vmatmul.mubr.bf16.gmra.mrb[4].mxu1 %v436_v1  ;;  %v405_v24 = vmax.f32 %v373_v7, 0.0  ;;  %v336_v25 = vmul.f32 %v883_v9, %v1187_v5  ;;  %1059 = vmatprep.mubr.bf16.mxu0 %v429_v12  ;;  %v1006_v3 = vld [vmem:[%s1290_s24 + $0x58] sm:$0xff]   ;;  %v997_v9 = vld [vmem:[%s1290_s24 + $0x10] sm:$0xff]  }
  0x30   : > { %v337_v26 = vmul.f32 %v884_v10, %v1187_v5  ;;  %v352_v27 = vmul.f32 %v915_v19, %v1187_v5  ;;  %1075 = vmatprep.mubr.bf16.mxu1 %v437_v13  ;;  %v406_v28 = vmax.f32 %v374_v14, 0.0  ;;  %v421_v29 = vmax.f32 %v389_v18, 0.0  ;;  %v1005_v10 = vld [vmem:[%s1290_s24 + $0x50] sm:$0xff]  }
  0x31   : > { %v422_v30 = vmax.f32 %v390_v22, 0.0  ;;  %v353_v31 = vmul.f32 %v916_v23, %v1187_v5  ;;  %v430_v32 = vpack.c.bf16 %v404_v17, %v403_v16  ;;  %v438_v33 = vpack.c.bf16 %v420_v21, %v419_v20 }
  0x32   : > { %v375_v34 = vadd.f32 %v1195_v11, %v336_v25  ;;  %v376_v35 = vadd.f32 %v1195_v11, %v337_v26  ;;  %v391_v36 = vadd.f32 %v1195_v11, %v352_v27  ;;  %v431_v38 = vpack.c.bf16 %v406_v28, %v405_v24 }
  0x33   : > { %v392_v37 = vadd.f32 %v1195_v11, %v353_v31  ;;  %v439_v39 = vpack.c.bf16 %v422_v30, %v421_v29  ;;  %v996_v11 = vld [vmem:[%s1290_s24 + $0x8] sm:$0xff]   ;;  %v955_v49 = vunpack.c.l.bf16 %v1004_v45  ;;  %v919_v50 = vunpack.c.l.bf16 %v918_v46 }
  0x34   : > { %v407_v40 = vmax.f32 %v375_v34, 0.0  ;;  %v408_v41 = vmax.f32 %v376_v35, 0.0  ;;  %v423_v42 = vmax.f32 %v391_v36, 0.0  ;;  %v923_v48 = vunpack.c.l.bf16 %v996_v11 }
  0x35   : > { %v424_v5 = vmax.f32 %v392_v37, 0.0  ;;  %v951_v51 = vunpack.c.l.bf16 %v1003_v47  ;;  %v924_v52 = vunpack.c.h.bf16 %v996_v11  ;;  %v956_v53 = vunpack.c.h.bf16 %v1004_v45 }
  0x36   : > { %1060 = vmatmul.mubr.bf16.gmra.mrb[8].mxu0 %v430_v32  ;;  %v432_v43 = vpack.c.bf16 %v408_v41, %v407_v40  ;;  %v920_v56 = vunpack.c.h.bf16 %v918_v46  ;;  %v952_v57 = vunpack.c.h.bf16 %v1003_v47  ;;  %v931_v14 = vunpack.c.l.bf16 %v998_v2  ;;  %v1000_v32 = vld [vmem:[%s1290_s24 + $0x28] sm:$0xff]  }
  0x37   : > { %1076 = vmatmul.mubr.bf16.gmra.mrb[8].mxu1 %v438_v33  ;;  %1063 = vmatprep.mubr.bf16.mxu0 %v431_v38  ;;  %v440_v44 = vpack.c.bf16 %v424_v5, %v423_v42  ;;  %v963_v15 = vunpack.c.l.bf16 %v1006_v3  ;;  %v927_v16 = vunpack.c.l.bf16 %v997_v9  ;;  %v959_v17 = vunpack.c.l.bf16 %v1005_v10  ;;  %v1008_v33 = vld [vmem:[%s1290_s24 + $0x68] sm:$0xff]   ;;  %v999_v38 = vld [vmem:[%s1290_s24 + $0x20] sm:$0xff]  }
  0x38   : > { %1079 = vmatprep.mubr.bf16.mxu1 %v439_v39  ;;  %v932_v18 = vunpack.c.h.bf16 %v998_v2  ;;  %v964_v19 = vunpack.c.h.bf16 %v1006_v3  ;;  %v928_v22 = vunpack.c.h.bf16 %v997_v9  ;;  %v960_v23 = vunpack.c.h.bf16 %v1005_v10  ;;  %v1007_v39 = vld [vmem:[%s1290_s24 + $0x60] sm:$0xff]  }
  0x39   : > { %v939_v42 = vunpack.c.l.bf16 %v1000_v32  ;;  %v971_v5 = vunpack.c.l.bf16 %v1008_v33  ;;  %v940_v11 = vunpack.c.h.bf16 %v1000_v32  ;;  %v972_v45 = vunpack.c.h.bf16 %v1008_v33 }
  0x3e   : > { %1064 = vmatmul.mubr.bf16.gmra.mrb[12].mxu0 %v432_v43  ;;  %v935_v43 = vunpack.c.l.bf16 %v999_v38 }
  0x3f   : > { %1080 = vmatmul.mubr.bf16.gmra.mrb[12].mxu1 %v440_v44  ;;  %v967_v44 = vunpack.c.l.bf16 %v1007_v39 }
  0xf9   : > { %v1053_v54 = vpop.f32.mrb[0].mxu0 }
  0xfa   : > { %v1069_v55 = vpop.f32.mrb[0].mxu1  ;;  %v612_v58 = vadd.f32 %v1053_v54, %v923_v48  ;;  %v603_v60 = vpop.f32.mrb[1].mxu0  ;;  %v936_v48 = vunpack.c.h.bf16 %v999_v38 }
  0xfb   : > { %v676_v59 = vadd.f32 %v1069_v55, %v955_v49  ;;  %v667_v61 = vpop.f32.mrb[1].mxu1  ;;  %v604_v62 = vadd.f32 %v919_v50, %v603_v60  ;;  %v1054_v0 = vpop.f32.mrb[2].mxu0  ;;  %v968_v49 = vunpack.c.h.bf16 %v1007_v39 }
  0xfc   : > { %v668_v63 = vadd.f32 %v951_v51, %v667_v61  ;;  %v1070_v1 = vpop.f32.mrb[2].mxu1  ;;  %732 = vst [vmem:[%s1300_s28 + $0x10] sm:$0xff] %v612_v58  ;;  %v615_v4 = vadd.f32 %v1054_v0, %v924_v52  ;;  %v606_v7 = vpop.f32.mrb[3].mxu0  ;;  %v1002_v58 = vld [vmem:[%s1290_s24 + $0x38] sm:$0xff]   ;;  %v1001_v0 = vld [vmem:[%s1290_s24 + $0x30] sm:$0xff]  }
  0xfd   : > { %748 = vst [vmem:[%s1300_s28 + $0x90] sm:$0xff] %v676_v59  ;;  %v679_v6 = vadd.f32 %v1070_v1, %v956_v53  ;;  %v670_v8 = vpop.f32.mrb[3].mxu1  ;;  %730 = vst [vmem:[%s1300_s28] sm:$0xff] %v604_v62  ;;  %v607_v12 = vadd.f32 %v920_v56, %v606_v7  ;;  %v1010_v59 = vld [vmem:[%s1290_s24 + $0x78] sm:$0xff]   ;;  %v1009_v1 = vld [vmem:[%s1290_s24 + $0x70] sm:$0xff]   ;;  %v943_v7 = vunpack.c.l.bf16 %v1001_v0  ;;  %v948_v9 = vunpack.c.h.bf16 %v1002_v58 }
  0xfe   : > { %746 = vst [vmem:[%s1300_s28 + $0x80] sm:$0xff] %v668_v63  ;;  %v671_v13 = vadd.f32 %v952_v57, %v670_v8  ;;  %733 = vst [vmem:[%s1300_s28 + $0x18] sm:$0xff] %v615_v4  ;;  %v947_v4 = vunpack.c.l.bf16 %v1002_v58  ;;  %v975_v8 = vunpack.c.l.bf16 %v1009_v1  ;;  %v980_v10 = vunpack.c.h.bf16 %v1010_v59 }
  0xff   : > { %749 = vst [vmem:[%s1300_s28 + $0x98] sm:$0xff] %v679_v6  ;;  %731 = vst [vmem:[%s1300_s28 + $0x8] sm:$0xff] %v607_v12  ;;  %v979_v6 = vunpack.c.l.bf16 %v1010_v59 }
 0x100   : > { %747 = vst [vmem:[%s1300_s28 + $0x88] sm:$0xff] %v671_v13 }
 0x101   : > { %v1057_v20 = vpop.f32.mrb[4].mxu0 }
 0x102   : > { %v1073_v21 = vpop.f32.mrb[4].mxu1  ;;  %v628_v24 = vadd.f32 %v1057_v20, %v931_v14  ;;  %v619_v26 = vpop.f32.mrb[5].mxu0  ;;  %v944_v14 = vunpack.c.h.bf16 %v1001_v0 }
 0x103   : > { %v692_v25 = vadd.f32 %v1073_v21, %v963_v15  ;;  %v683_v27 = vpop.f32.mrb[5].mxu1  ;;  %v620_v28 = vadd.f32 %v927_v16, %v619_v26  ;;  %v1058_v30 = vpop.f32.mrb[6].mxu0  ;;  %v976_v15 = vunpack.c.h.bf16 %v1009_v1 }
 0x104   : > { %v684_v29 = vadd.f32 %v959_v17, %v683_v27  ;;  %v1074_v31 = vpop.f32.mrb[6].mxu1  ;;  %736 = vst [vmem:[%s1300_s28 + $0x30] sm:$0xff] %v628_v24  ;;  %v631_v34 = vadd.f32 %v1058_v30, %v932_v18  ;;  %v622_v36 = vpop.f32.mrb[7].mxu0 }
 0x105   : > { %752 = vst [vmem:[%s1300_s28 + $0xb0] sm:$0xff] %v692_v25  ;;  %v695_v35 = vadd.f32 %v1074_v31, %v964_v19  ;;  %v686_v37 = vpop.f32.mrb[7].mxu1  ;;  %734 = vst [vmem:[%s1300_s28 + $0x20] sm:$0xff] %v620_v28  ;;  %v623_v40 = vadd.f32 %v928_v22, %v622_v36 }
 0x106   : > { %750 = vst [vmem:[%s1300_s28 + $0xa0] sm:$0xff] %v684_v29  ;;  %v687_v41 = vadd.f32 %v960_v23, %v686_v37  ;;  %737 = vst [vmem:[%s1300_s28 + $0x38] sm:$0xff] %v631_v34 }
 0x107   : > { %753 = vst [vmem:[%s1300_s28 + $0xb8] sm:$0xff] %v695_v35  ;;  %735 = vst [vmem:[%s1300_s28 + $0x28] sm:$0xff] %v623_v40 }
 0x108   : > { %751 = vst [vmem:[%s1300_s28 + $0xa8] sm:$0xff] %v687_v41 }
 0x109   : > { %v1061_v46 = vpop.f32.mrb[8].mxu0 }
 0x10a   : > { %v1077_v47 = vpop.f32.mrb[8].mxu1  ;;  %v644_v50 = vadd.f32 %v1061_v46, %v939_v42  ;;  %v635_v52 = vpop.f32.mrb[9].mxu0 }
 0x10b   : > { %v708_v51 = vadd.f32 %v1077_v47, %v971_v5  ;;  %v699_v53 = vpop.f32.mrb[9].mxu1  ;;  %v636_v54 = vadd.f32 %v935_v43, %v635_v52  ;;  %v1062_v56 = vpop.f32.mrb[10].mxu0 }
 0x10c   : > { %v700_v55 = vadd.f32 %v967_v44, %v699_v53  ;;  %v1078_v57 = vpop.f32.mrb[10].mxu1  ;;  %740 = vst [vmem:[%s1300_s28 + $0x50] sm:$0xff] %v644_v50  ;;  %v647_v60 = vadd.f32 %v1062_v56, %v940_v11  ;;  %v638_v62 = vpop.f32.mrb[11].mxu0 }
 0x10d   : > { %756 = vst [vmem:[%s1300_s28 + $0xd0] sm:$0xff] %v708_v51  ;;  %v711_v61 = vadd.f32 %v1078_v57, %v972_v45  ;;  %v702_v63 = vpop.f32.mrb[11].mxu1  ;;  %738 = vst [vmem:[%s1300_s28 + $0x40] sm:$0xff] %v636_v54  ;;  %v639_v2 = vadd.f32 %v936_v48, %v638_v62 }
 0x10e   : > { %754 = vst [vmem:[%s1300_s28 + $0xc0] sm:$0xff] %v700_v55  ;;  %v703_v3 = vadd.f32 %v968_v49, %v702_v63  ;;  %741 = vst [vmem:[%s1300_s28 + $0x58] sm:$0xff] %v647_v60 }
 0x10f   : > { %757 = vst [vmem:[%s1300_s28 + $0xd8] sm:$0xff] %v711_v61  ;;  %739 = vst [vmem:[%s1300_s28 + $0x48] sm:$0xff] %v639_v2 }
 0x110   : > { %755 = vst [vmem:[%s1300_s28 + $0xc8] sm:$0xff] %v703_v3 }
 0x111   : > { %v1065_v12 = vpop.f32.mrb[12].mxu0 }
 0x112   : > { %v1081_v13 = vpop.f32.mrb[12].mxu1  ;;  %v660_v16 = vadd.f32 %v1065_v12, %v947_v4  ;;  %v651_v18 = vpop.f32.mrb[13].mxu0 }
 0x113   : > { %v724_v17 = vadd.f32 %v1081_v13, %v979_v6  ;;  %v715_v19 = vpop.f32.mrb[13].mxu1  ;;  %v652_v20 = vadd.f32 %v943_v7, %v651_v18  ;;  %v1066_v22 = vpop.f32.mrb[14].mxu0 }
 0x114   : > { %v716_v21 = vadd.f32 %v975_v8, %v715_v19  ;;  %v1082_v23 = vpop.f32.mrb[14].mxu1  ;;  %744 = vst [vmem:[%s1300_s28 + $0x70] sm:$0xff] %v660_v16  ;;  %v663_v24 = vadd.f32 %v1066_v22, %v948_v9  ;;  %v654_v26 = vpop.f32.mrb[15].mxu0 }
 0x115   : > { %760 = vst [vmem:[%s1300_s28 + $0xf0] sm:$0xff] %v724_v17  ;;  %v727_v25 = vadd.f32 %v1082_v23, %v980_v10  ;;  %v718_v27 = vpop.f32.mrb[15].mxu1  ;;  %742 = vst [vmem:[%s1300_s28 + $0x60] sm:$0xff] %v652_v20  ;;  %v655_v28 = vadd.f32 %v944_v14, %v654_v26 }
 0x116   : > { %758 = vst [vmem:[%s1300_s28 + $0xe0] sm:$0xff] %v716_v21  ;;  %v719_v29 = vadd.f32 %v976_v15, %v718_v27  ;;  %745 = vst [vmem:[%s1300_s28 + $0x78] sm:$0xff] %v663_v24 }
 0x117   : > { %761 = vst [vmem:[%s1300_s28 + $0xf8] sm:$0xff] %v727_v25  ;;  %743 = vst [vmem:[%s1300_s28 + $0x68] sm:$0xff] %v655_v28 }
 0x118   : > { %759 = vst [vmem:[%s1300_s28 + $0xe8] sm:$0xff] %v719_v29 }
 0x119 PF: > { %s15_s18 = sadd.s32 1, %s1121_s18  }
 0x11a   : > { %p12_p4 = scmp.ge.s32.totalorder %s15_s18, 4  }
 0x11c   :  { %14 = sbr.rel (!%p12_p4) target bundleno = 1 (0x1), region = 73 }

// kernel: preact_bottleneck_pallas.3
= control target key start
LH: loop header
LB: loop body
LE: loop exit
PB: predicated region body
PF: predicated region fallthrough
CT: control target
= control target key end

     0   :  { %s2229_s27 = smov 0   ;;  %s2445_s0 = inlined_call_operand.vmem [shape: bf16[512,128], index: 0, kind: input, shape index: {}]   ;;  %s2446_s1 = inlined_call_operand.vmem [shape: f32[1,128], index: 1, kind: input, shape index: {}]   ;;  %s2447_s2 = inlined_call_operand.vmem [shape: f32[1,128], index: 2, kind: input, shape index: {}]   ;;  %s2448_s3 = inlined_call_operand.vmem [shape: bf16[128,128], index: 3, kind: input, shape index: {}]   ;;  %s2449_s4 = inlined_call_operand.vmem [shape: bf16[128,128], index: 4, kind: input, shape index: {}]   ;;  %s2450_s5 = inlined_call_operand.vmem [shape: bf16[512,128], index: 5, kind: output, shape index: {0}]   ;;  %s2451_s6 = inlined_call_operand.vmem [shape: bf16[512,128], index: 6, kind: output, shape index: {1}]   ;;  %s2452_s7 = inlined_call_operand.vmem [shape: f32[2,1,128], index: 7, kind: output, shape index: {2}]   ;;  %s2453_s8 = inlined_call_operand.vmem [shape: f32[2,1,128], index: 8, kind: output, shape index: {3}]  }
   0x1 LB: > { %s2235_s28 = sadd.s32 4294967295, %s2182_s27   ;;  %p1584_p0 = scmp.ge.s32.totalorder %s2182_s27, 1  ;;  %s2182_s27 = sphi %s2229_s27, %s19_s27  }
   0x2   : > { %p270_p1 = scmp.lt.s32.totalorder %s2182_s27, 3 }
   0x4   : > { %p271_p2 = pnand %p1584_p0, %p270_p1 }
   0x5   : > { %v2160_v0 = vld [vmem:[%s2448_s3] sm:$0xff] (!%p271_p2)   ;;  %s1585_s9 = sshll.u32 (!%p271_p2), %s2235_s28, 5  ;;  %v2161_v1 = vld [vmem:[%s2448_s3 + $0x8] sm:$0xff] (!%p271_p2)   ;;  %v2162_v2 = vld [vmem:[%s2448_s3 + $0x10] sm:$0xff] (!%p271_p2)   ;;  %p333_p4 = scmp.lt.s32.totalorder (!%p271_p2), %s2235_s28, 1 }
   0x6   : > { %274 = sbr.rel (%p271_p2) target bundleno = 336 (0x150), region = 40  ;;  %p316_p3 = scmp.lt.s32.totalorder (!%p271_p2), %s1585_s9, 63  ;;  %2056 = vmatprep.subr.bf16.mxu0 (!%p271_p2), %v2160_v0  ;;  %v2166_v3 = vld [vmem:[%s2449_s4] sm:$0xff] (!%p271_p2)   ;;  %v2163_v4 = vld [vmem:[%s2448_s3 + $0x18] sm:$0xff] (!%p271_p2)   ;;  %v2168_v5 = vld [vmem:[%s2449_s4 + $0x8] sm:$0xff] (!%p271_p2)  }
   0x7   : > { %2057 = vmatpush3.bf16.msra.mxu0 (!%p271_p2), %v2160_v0  ;;  %2104 = vmatprep.subr.bf16.mxu1 (!%p271_p2), %v2166_v3  ;;  %v2170_v6 = vld [vmem:[%s2449_s4 + $0x10] sm:$0xff] (!%p271_p2)   ;;  %v2164_v7 = vld [vmem:[%s2448_s3 + $0x20] sm:$0xff] (!%p271_p2)   ;;  %v2171_v18 = vld [vmem:[%s2449_s4 + $0x18] sm:$0xff] (!%p271_p2)  }
   0x8   : > { %2058 = vmatprep.subr.bf16.mxu0 (!%p271_p2), %v2161_v1  ;;  %2105 = vmatpush3.bf16.msra.mxu1 (!%p271_p2), %v2166_v3  ;;  %v2276_v9 = vld [vmem:[%s2446_s1] ss:$0 sm:$0xff] (!%p271_p2)  ;;  %v2165_v22 = vld [vmem:[%s2448_s3 + $0x28] sm:$0xff] (!%p271_p2)   ;;  %v2167_v33 = vld [vmem:[%s2448_s3 + $0x30] sm:$0xff] (!%p271_p2)  }
   0x9   : > { %2106 = vmatprep.subr.bf16.mxu1 (!%p271_p2), %v2168_v5  ;;  %v2282_v13 = vld [vmem:[%s2447_s2] ss:$0 sm:$0xff] (!%p271_p2)  ;;  %v2173_v40 = vld [vmem:[%s2449_s4 + $0x28] sm:$0xff] (!%p271_p2)   ;;  %v2169_v45 = vld [vmem:[%s2448_s3 + $0x38] sm:$0xff] (!%p271_p2)  }
   0xa   : > { %v2172_v29 = vld [vmem:[%s2449_s4 + $0x20] sm:$0xff] (!%p271_p2)   ;;  %v2174_v50 = vld [vmem:[%s2449_s4 + $0x30] sm:$0xff] (!%p271_p2)   ;;  %v2175_v62 = vld [vmem:[%s2449_s4 + $0x38] sm:$0xff] (!%p271_p2)  }
   0xb   : > { %2059 = vmatpush3.bf16.msra.mxu0 (!%p271_p2), %v2161_v1 }
   0xc   : > { %2060 = vmatprep.subr.bf16.mxu0 (!%p271_p2), %v2162_v2  ;;  %2107 = vmatpush3.bf16.msra.mxu1 (!%p271_p2), %v2168_v5 }
   0xd   : > { %s2455_s9 = smov (!%p316_p3, %s1585_s9), 63  ;;  %2108 = vmatprep.subr.bf16.mxu1 %v2170_v6  ;;  %s2457_s28 = smov (!%p333_p4, %s2235_s28), 1 }
   0xe   : > { %s2249_s14 = sshll.u32 %s2455_s9, 2  ;;  %s335_s17 = scalar_lea.vmem %s2452_s7, %s2457_s28 }
   0xf   : > { %s2264_s23 = scalar_lea.vmem %s2445_s0, %s2249_s14  ;;  %2061 = vmatpush3.bf16.msra.mxu0 %v2162_v2  ;;  %s2394_s11 = scalar_lea.vmem %s2450_s5, %s2249_s14 }
  0x10   : > { %v1740_v8 = vld [vmem:[%s2264_s23] sm:$0xff]   ;;  %2062 = vmatprep.subr.bf16.mxu0 %v2163_v4  ;;  %v1963_v12 = vld [vmem:[%s2264_s23 + $0x8] sm:$0xff]   ;;  %v1964_v19 = vld [vmem:[%s2264_s23 + $0x10] sm:$0xff]   ;;  %2109 = vmatpush3.bf16.msra.mxu1 %v2170_v6  ;;  %s2402_s15 = scalar_lea.vmem %s2451_s6, %s2249_s14  ;;  %s338_s20 = scalar_lea.vmem %s2453_s8, %s2457_s28 }
  0x11   : > { %v1741_v10 = vunpack.c.l.bf16 %v1740_v8  ;;  %v1742_v11 = vunpack.c.h.bf16 %v1740_v8  ;;  %v1745_v16 = vunpack.c.l.bf16 %v1963_v12  ;;  %v1746_v17 = vunpack.c.h.bf16 %v1963_v12  ;;  %2110 = vmatprep.subr.bf16.mxu1 %v2171_v18  ;;  %v1965_v30 = vld [vmem:[%s2264_s23 + $0x18] sm:$0xff]   ;;  %v1966_v35 = vld [vmem:[%s2264_s23 + $0x20] sm:$0xff]   ;;  %v1967_v51 = vld [vmem:[%s2264_s23 + $0x28] sm:$0xff]  }
  0x12   : > { %v1749_v20 = vunpack.c.l.bf16 %v1964_v19  ;;  %v1750_v21 = vunpack.c.h.bf16 %v1964_v19  ;;  %v1753_v36 = vunpack.c.l.bf16 %v1965_v30  ;;  %v1754_v37 = vunpack.c.h.bf16 %v1965_v30  ;;  %v1968_v56 = vld [vmem:[%s2264_s23 + $0x30] sm:$0xff]  }
  0x13   : > { %v411_v14 = vmul.f32 %v1741_v10, %v2276_v9  ;;  %v412_v15 = vmul.f32 %v1742_v11, %v2276_v9  ;;  %2063 = vmatpush3.bf16.msra.mxu0 %v2163_v4  ;;  %v413_v27 = vmul.f32 %v1745_v16, %v2276_v9  ;;  %v414_v28 = vmul.f32 %v1746_v17, %v2276_v9  ;;  %v1970_v17 = vld [vmem:[%s2264_s23 + $0x40] sm:$0xff]  }
  0x14   : > { %2064 = vmatprep.subr.bf16.mxu0 %v2164_v7  ;;  %v415_v31 = vmul.f32 %v1749_v20, %v2276_v9  ;;  %v416_v32 = vmul.f32 %v1750_v21, %v2276_v9  ;;  %2111 = vmatpush3.bf16.msra.mxu1 %v2171_v18  ;;  %v1757_v43 = vunpack.c.l.bf16 %v1966_v35  ;;  %v1758_v44 = vunpack.c.h.bf16 %v1966_v35 }
  0x15   : > { %v450_v23 = vadd.f32 %v2282_v13, %v411_v14  ;;  %v451_v24 = vadd.f32 %v2282_v13, %v412_v15  ;;  %v452_v38 = vadd.f32 %v2282_v13, %v413_v27  ;;  %v453_v39 = vadd.f32 %v2282_v13, %v414_v28  ;;  %2112 = vmatprep.subr.bf16.mxu1 %v2172_v29  ;;  %v1977_v28 = vld [vmem:[%s2264_s23 + $0x78] sm:$0xff]  }
  0x16   : > { %v454_v41 = vadd.f32 %v2282_v13, %v415_v31  ;;  %v455_v42 = vadd.f32 %v2282_v13, %v416_v32  ;;  %v417_v46 = vmul.f32 %v1753_v36, %v2276_v9  ;;  %v418_v47 = vmul.f32 %v1754_v37, %v2276_v9  ;;  %v1972_v36 = vld [vmem:[%s2264_s23 + $0x50] sm:$0xff]  }
  0x17   : > { %v482_v25 = vmax.f32 %v450_v23, 0.0  ;;  %v483_v26 = vmax.f32 %v451_v24, 0.0  ;;  %2065 = vmatpush3.bf16.msra.mxu0 %v2164_v7  ;;  %v484_v48 = vmax.f32 %v452_v38, 0.0  ;;  %v485_v49 = vmax.f32 %v453_v39, 0.0  ;;  %v1969_v7 = vld [vmem:[%s2264_s23 + $0x38] sm:$0xff]  }
  0x18   : > { %2066 = vmatprep.subr.bf16.mxu0 %v2165_v22  ;;  %2113 = vmatpush3.bf16.msra.mxu1 %v2172_v29  ;;  %v486_v52 = vmax.f32 %v454_v41, 0.0  ;;  %v487_v53 = vmax.f32 %v455_v42, 0.0  ;;  %v419_v54 = vmul.f32 %v1757_v43, %v2276_v9  ;;  %v420_v55 = vmul.f32 %v1758_v44, %v2276_v9 }
  0x19   : > { %v514_v34 = vpack.c.bf16 %v483_v26, %v482_v25  ;;  %2114 = vmatprep.subr.bf16.mxu1 %v2173_v40  ;;  %v456_v57 = vadd.f32 %v2282_v13, %v417_v46  ;;  %v457_v58 = vadd.f32 %v2282_v13, %v418_v47  ;;  %v1761_v59 = vunpack.c.l.bf16 %v1967_v51 }
  0x1a   : > { %v515_v60 = vpack.c.bf16 %v485_v49, %v484_v48  ;;  %v1762_v61 = vunpack.c.h.bf16 %v1967_v51  ;;  %v1765_v63 = vunpack.c.l.bf16 %v1968_v56  ;;  %v1766_v0 = vunpack.c.h.bf16 %v1968_v56 }
  0x1b   : > { %2072 = vmatprep.mubr.bf16.mxu0 %v514_v34  ;;  %2067 = vmatpush3.bf16.msra.mxu0 %v2165_v22  ;;  %v516_v1 = vpack.c.bf16 %v487_v53, %v486_v52  ;;  %v458_v2 = vadd.f32 %v2282_v13, %v419_v54  ;;  %v459_v3 = vadd.f32 %v2282_v13, %v420_v55  ;;  %v488_v4 = vmax.f32 %v456_v57, 0.0 }
  0x1c   : > { %2120 = vmatprep.mubr.bf16.mxu1 %v514_v34  ;;  %2068 = vmatprep.subr.bf16.mxu0 %v2167_v33  ;;  %v489_v5 = vmax.f32 %v457_v58, 0.0  ;;  %v421_v6 = vmul.f32 %v1761_v59, %v2276_v9  ;;  %v422_v8 = vmul.f32 %v1762_v61, %v2276_v9  ;;  %v423_v10 = vmul.f32 %v1765_v63, %v2276_v9 }
  0x1d   : > { %2115 = vmatpush3.bf16.msra.mxu1 %v2173_v40  ;;  %v424_v11 = vmul.f32 %v1766_v0, %v2276_v9  ;;  %v490_v12 = vmax.f32 %v458_v2, 0.0  ;;  %v491_v14 = vmax.f32 %v459_v3, 0.0  ;;  %v1769_v15 = vunpack.c.l.bf16 %v1969_v7  ;;  %v1974_v0 = vld [vmem:[%s2264_s23 + $0x60] sm:$0xff]  }
  0x1e   : > { %2116 = vmatprep.subr.bf16.mxu1 %v2174_v50  ;;  %v1770_v16 = vunpack.c.h.bf16 %v1969_v7  ;;  %v517_v18 = vpack.c.bf16 %v489_v5, %v488_v4  ;;  %v460_v19 = vadd.f32 %v2282_v13, %v421_v6  ;;  %v461_v20 = vadd.f32 %v2282_v13, %v422_v8 }
  0x1f   : > { %2069 = vmatpush3.bf16.msra.mxu0 %v2167_v33  ;;  %v462_v21 = vadd.f32 %v2282_v13, %v423_v10  ;;  %v463_v22 = vadd.f32 %v2282_v13, %v424_v11  ;;  %v518_v23 = vpack.c.bf16 %v491_v14, %v490_v12  ;;  %v1773_v24 = vunpack.c.l.bf16 %v1970_v17  ;;  %v1971_v33 = vld [vmem:[%s2264_s23 + $0x48] sm:$0xff]  }
  0x20   : > { %2070 = vmatprep.subr.bf16.mxu0 %v2169_v45  ;;  %v1774_v25 = vunpack.c.h.bf16 %v1970_v17  ;;  %v425_v26 = vmul.f32 %v1769_v15, %v2276_v9  ;;  %v426_v27 = vmul.f32 %v1770_v16, %v2276_v9  ;;  %v492_v29 = vmax.f32 %v460_v19, 0.0 }
  0x21   : > { %2117 = vmatpush3.bf16.msra.mxu1 %v2174_v50  ;;  %v493_v30 = vmax.f32 %v461_v20, 0.0  ;;  %v494_v31 = vmax.f32 %v462_v21, 0.0  ;;  %v495_v32 = vmax.f32 %v463_v22, 0.0  ;;  %v427_v34 = vmul.f32 %v1773_v24, %v2276_v9  ;;  %v1975_v22 = vld [vmem:[%s2264_s23 + $0x68] sm:$0xff]  }
  0x22   : > { %2118 = vmatprep.subr.bf16.mxu1 %v2175_v62  ;;  %v428_v35 = vmul.f32 %v1774_v25, %v2276_v9  ;;  %v1801_v37 = vunpack.c.l.bf16 %v1977_v28  ;;  %v464_v38 = vadd.f32 %v2282_v13, %v425_v26  ;;  %v465_v39 = vadd.f32 %v2282_v13, %v426_v27 }
  0x23   : > { %2071 = vmatpush3.bf16.msra.mxu0 %v2169_v45  ;;  %v1777_v40 = vunpack.c.l.bf16 %v1971_v33  ;;  %v1778_v41 = vunpack.c.h.bf16 %v1971_v33  ;;  %v1802_v42 = vunpack.c.h.bf16 %v1977_v28  ;;  %v519_v44 = vpack.c.bf16 %v493_v30, %v492_v29 }
  0x24   : > { %v441_v43 = vmul.f32 %v1801_v37, %v2276_v9  ;;  %v520_v45 = vpack.c.bf16 %v495_v32, %v494_v31  ;;  %v1781_v46 = vunpack.c.l.bf16 %v1972_v36  ;;  %v1782_v47 = vunpack.c.h.bf16 %v1972_v36 }
  0x25   : > { %2119 = vmatpush3.bf16.msra.mxu1 %v2175_v62  ;;  %v466_v48 = vadd.f32 %v2282_v13, %v427_v34  ;;  %v467_v49 = vadd.f32 %v2282_v13, %v428_v35  ;;  %v442_v50 = vmul.f32 %v1802_v42, %v2276_v9  ;;  %v429_v52 = vmul.f32 %v1777_v40, %v2276_v9 }
  0x26   : > { %2073 = vmatmul.mubr.bf16.vlgmr.msra.gmra.mrb[0].mxu0 %v515_v60  ;;  %v480_v51 = vadd.f32 %v2282_v13, %v441_v43  ;;  %v430_v53 = vmul.f32 %v1778_v41, %v2276_v9  ;;  %v496_v56 = vmax.f32 %v464_v38, 0.0  ;;  %v497_v57 = vmax.f32 %v465_v39, 0.0 }
  0x27   : > { %2076 = vmatprep.mubr.bf16.mxu0 %v516_v1  ;;  %v481_v54 = vadd.f32 %v2282_v13, %v442_v50  ;;  %v431_v58 = vmul.f32 %v1781_v46, %v2276_v9  ;;  %v432_v59 = vmul.f32 %v1782_v47, %v2276_v9  ;;  %v498_v61 = vmax.f32 %v466_v48, 0.0 }
  0x28   : > { %2121 = vmatmul.mubr.bf16.vlgmr.msra.gmra.mrb[0].mxu1 %v515_v60  ;;  %v512_v55 = vmax.f32 %v480_v51, 0.0  ;;  %v1973_v60 = vld [vmem:[%s2264_s23 + $0x58] sm:$0xff]   ;;  %v499_v62 = vmax.f32 %v467_v49, 0.0  ;;  %v469_v2 = vadd.f32 %v2282_v13, %v430_v53  ;;  %v521_v5 = vpack.c.bf16 %v497_v57, %v496_v56 }
  0x29   : > { %2124 = vmatprep.mubr.bf16.mxu1 %v516_v1  ;;  %v513_v63 = vmax.f32 %v481_v54, 0.0  ;;  %v468_v1 = vadd.f32 %v2282_v13, %v429_v52  ;;  %v1785_v3 = vunpack.c.l.bf16 %v1973_v60  ;;  %v470_v6 = vadd.f32 %v2282_v13, %v431_v58 }
  0x2a   : > { %v471_v7 = vadd.f32 %v2282_v13, %v432_v59  ;;  %v1786_v8 = vunpack.c.h.bf16 %v1973_v60  ;;  %v522_v10 = vpack.c.bf16 %v499_v62, %v498_v61  ;;  %v1789_v11 = vunpack.c.l.bf16 %v1974_v0 }
  0x2b   : > { %v2366_v4 = vpack.c.bf16 %v513_v63, %v512_v55  ;;  %v1790_v12 = vunpack.c.h.bf16 %v1974_v0  ;;  %v500_v14 = vmax.f32 %v468_v1, 0.0  ;;  %v501_v15 = vmax.f32 %v469_v2, 0.0 }
  0x2c   : > { %v433_v16 = vmul.f32 %v1785_v3, %v2276_v9  ;;  %v502_v17 = vmax.f32 %v470_v6, 0.0  ;;  %v434_v19 = vmul.f32 %v1786_v8, %v2276_v9  ;;  %v435_v20 = vmul.f32 %v1789_v11, %v2276_v9 }
  0x2d   : > { %v436_v21 = vmul.f32 %v1790_v12, %v2276_v9  ;;  %v523_v24 = vpack.c.bf16 %v501_v15, %v500_v14  ;;  %v1793_v28 = vunpack.c.l.bf16 %v1975_v22  ;;  %v1794_v29 = vunpack.c.h.bf16 %v1975_v22 }
  0x2e   : > { %2077 = vmatmul.mubr.bf16.gmra.mrb[4].mxu0 %v517_v18  ;;  %v472_v25 = vadd.f32 %v2282_v13, %v433_v16  ;;  %v473_v27 = vadd.f32 %v2282_v13, %v434_v19  ;;  %v474_v30 = vadd.f32 %v2282_v13, %v435_v20 }
  0x2f   : > { %2080 = vmatprep.mubr.bf16.mxu0 %v518_v23  ;;  %v475_v31 = vadd.f32 %v2282_v13, %v436_v21  ;;  %v437_v36 = vmul.f32 %v1793_v28, %v2276_v9  ;;  %v438_v37 = vmul.f32 %v1794_v29, %v2276_v9 }
  0x30   : > { %2125 = vmatmul.mubr.bf16.gmra.mrb[4].mxu1 %v517_v18  ;;  %v503_v18 = vmax.f32 %v471_v7, 0.0  ;;  %v504_v34 = vmax.f32 %v472_v25, 0.0  ;;  %v505_v35 = vmax.f32 %v473_v27, 0.0  ;;  %v506_v38 = vmax.f32 %v474_v30, 0.0 }
  0x31   : > { %2128 = vmatprep.mubr.bf16.mxu1 %v518_v23  ;;  %v1976_v23 = vld [vmem:[%s2264_s23 + $0x70] sm:$0xff]   ;;  %v507_v39 = vmax.f32 %v475_v31, 0.0  ;;  %v476_v43 = vadd.f32 %v2282_v13, %v437_v36 }
  0x32   : > { %v524_v26 = vpack.c.bf16 %v503_v18, %v502_v17  ;;  %v1797_v32 = vunpack.c.l.bf16 %v1976_v23  ;;  %v1798_v33 = vunpack.c.h.bf16 %v1976_v23  ;;  %v525_v42 = vpack.c.bf16 %v505_v35, %v504_v34 }
  0x33   : > { %v508_v48 = vmax.f32 %v476_v43, 0.0 }
  0x34   : > { %v439_v40 = vmul.f32 %v1797_v32, %v2276_v9  ;;  %v440_v41 = vmul.f32 %v1798_v33, %v2276_v9 }
  0x36   : > { %2081 = vmatmul.mubr.bf16.gmra.mrb[8].mxu0 %v519_v44  ;;  %v478_v46 = vadd.f32 %v2282_v13, %v439_v40  ;;  %v479_v47 = vadd.f32 %v2282_v13, %v440_v41 }
  0x37   : > { %2084 = vmatprep.mubr.bf16.mxu0 %v520_v45 }
  0x38   : > { %2129 = vmatmul.mubr.bf16.gmra.mrb[8].mxu1 %v519_v44  ;;  %v477_v44 = vadd.f32 %v2282_v13, %v438_v37  ;;  %v510_v50 = vmax.f32 %v478_v46, 0.0  ;;  %v511_v51 = vmax.f32 %v479_v47, 0.0 }
  0x39   : > { %2132 = vmatprep.mubr.bf16.mxu1 %v520_v45  ;;  %v526_v45 = vpack.c.bf16 %v507_v39, %v506_v38 }
  0x3a   : > { %v509_v49 = vmax.f32 %v477_v44, 0.0  ;;  %v528_v52 = vpack.c.bf16 %v511_v51, %v510_v50 }
  0x3c   : > { %v527_v9 = vpack.c.bf16 %v509_v49, %v508_v48 }
  0x3e   : > { %2085 = vmatmul.mubr.bf16.gmra.mrb[12].mxu0 %v521_v5 }
  0x3f   : > { %2088 = vmatprep.mubr.bf16.mxu0 %v522_v10 }
  0x40   : > { %2133 = vmatmul.mubr.bf16.gmra.mrb[12].mxu1 %v521_v5 }
  0x41   : > { %2136 = vmatprep.mubr.bf16.mxu1 %v522_v10 }
  0x46   : > { %2089 = vmatmul.mubr.bf16.gmra.mrb[16].mxu0 %v523_v24 }
  0x47   : > { %2092 = vmatprep.mubr.bf16.mxu0 %v524_v26 }
  0x48   : > { %2137 = vmatmul.mubr.bf16.gmra.mrb[16].mxu1 %v523_v24 }
  0x49   : > { %2140 = vmatprep.mubr.bf16.mxu1 %v524_v26 }
  0x4e   : > { %2093 = vmatmul.mubr.bf16.gmra.mrb[20].mxu0 %v525_v42 }
  0x4f   : > { %2096 = vmatprep.mubr.bf16.mxu0 %v526_v45 }
  0x50   : > { %2141 = vmatmul.mubr.bf16.gmra.mrb[20].mxu1 %v525_v42 }
  0x51   : > { %2144 = vmatprep.mubr.bf16.mxu1 %v526_v45 }
  0x56   : > { %2097 = vmatmul.mubr.bf16.gmra.mrb[24].mxu0 %v527_v9 }
  0x57   : > { %2100 = vmatprep.mubr.bf16.mxu0 %v528_v52 }
  0x58   : > { %2145 = vmatmul.mubr.bf16.gmra.mrb[24].mxu1 %v527_v9 }
  0x59   : > { %2148 = vmatprep.mubr.bf16.mxu1 %v528_v52 }
  0x5e   : > { %2101 = vmatmul.mubr.bf16.gmra.mrb[28].mxu0 %v2366_v4 }
  0x60   : > { %2149 = vmatmul.mubr.bf16.gmra.mrb[28].mxu1 %v2366_v4 }
  0xf9   : > { %v2074_v13 = vpop.f32.mrb[0].mxu0 }
  0xfa   : > { %v628_v53 = vpop.f32.mrb[1].mxu0 }
  0xfb   : > { %v2075_v54 = vpop.f32.mrb[2].mxu0  ;;  %v2122_v61 = vpop.f32.mrb[0].mxu1 }
  0xfc   : > { %v756_v55 = vpack.c.bf16 %v2075_v54, %v2074_v13  ;;  %v631_v56 = vpop.f32.mrb[3].mxu0  ;;  %v1013_v62 = vpop.f32.mrb[1].mxu1 }
  0xfd   : > { %v755_v57 = vpack.c.bf16 %v631_v56, %v628_v53  ;;  %v2123_v4 = vpop.f32.mrb[2].mxu1 }
  0xfe   : > { %1978 = vst [vmem:[%s2394_s11 + $0x8] sm:$0xff] %v756_v55   ;;  %v1302_v58 = vunpack.c.l.bf16 %v756_v55  ;;  %v1303_v63 = vunpack.c.h.bf16 %v756_v55  ;;  %v1891_v6 = vpack.c.bf16 %v2123_v4, %v2122_v61  ;;  %v1016_v7 = vpop.f32.mrb[3].mxu1 }
  0xff   : > { %1807 = vst [vmem:[%s2394_s11] sm:$0xff] %v755_v57   ;;  %v1300_v59 = vunpack.c.l.bf16 %v755_v57  ;;  %v1301_v60 = vunpack.c.h.bf16 %v755_v57  ;;  %v1886_v14 = vpack.c.bf16 %v1016_v7, %v1013_v62 }
 0x100   : > { %v1372_v8 = vmul.f32 %v1302_v58, %v1302_v58  ;;  %1993 = vst [vmem:[%s2402_s15 + $0x8] sm:$0xff] %v1891_v6   ;;  %v1373_v17 = vmul.f32 %v1303_v63, %v1303_v63 }
 0x101   : > { %v1332_v0 = vadd.f32 %v1301_v60, %v1300_v59  ;;  %v1370_v1 = vmul.f32 %v1300_v59, %v1300_v59  ;;  %v1371_v2 = vmul.f32 %v1301_v60, %v1301_v60  ;;  %v2078_v3 = vpop.f32.mrb[4].mxu0  ;;  %1887 = vst [vmem:[%s2402_s15] sm:$0xff] %v1886_v14  }
 0x102   : > { %v644_v5 = vpop.f32.mrb[5].mxu0 }
 0x103   : > { %v1333_v10 = vadd.f32 %v1332_v0, %v1302_v58  ;;  %v1402_v11 = vadd.f32 %v1371_v2, %v1370_v1  ;;  %v2079_v12 = vpop.f32.mrb[6].mxu0  ;;  %v2126_v24 = vpop.f32.mrb[4].mxu1 }
 0x104   : > { %v758_v15 = vpack.c.bf16 %v2079_v12, %v2078_v3  ;;  %v647_v16 = vpop.f32.mrb[7].mxu0  ;;  %v1029_v25 = vpop.f32.mrb[5].mxu1 }
 0x105   : > { %v1403_v18 = vadd.f32 %v1402_v11, %v1372_v8  ;;  %v757_v19 = vpack.c.bf16 %v647_v16, %v644_v5  ;;  %v1334_v20 = vadd.f32 %v1333_v10, %v1303_v63  ;;  %v2127_v30 = vpop.f32.mrb[6].mxu1 }
 0x106   : > { %1980 = vst [vmem:[%s2394_s11 + $0x18] sm:$0xff] %v758_v15   ;;  %v1306_v26 = vunpack.c.l.bf16 %v758_v15  ;;  %v1307_v31 = vunpack.c.h.bf16 %v758_v15  ;;  %v1901_v33 = vpack.c.bf16 %v2127_v30, %v2126_v24  ;;  %v1032_v34 = vpop.f32.mrb[7].mxu1 }
 0x107   : > { %1979 = vst [vmem:[%s2394_s11 + $0x10] sm:$0xff] %v757_v19   ;;  %v1304_v21 = vunpack.c.l.bf16 %v757_v19  ;;  %v1305_v22 = vunpack.c.h.bf16 %v757_v19  ;;  %v1404_v23 = vadd.f32 %v1403_v18, %v1373_v17  ;;  %v1896_v39 = vpack.c.bf16 %v1032_v34, %v1029_v25 }
 0x108   : > { %1995 = vst [vmem:[%s2402_s15 + $0x18] sm:$0xff] %v1901_v33   ;;  %v1376_v42 = vmul.f32 %v1306_v26, %v1306_v26  ;;  %v1377_v46 = vmul.f32 %v1307_v31, %v1307_v31 }
 0x109   : > { %v1335_v27 = vadd.f32 %v1334_v20, %v1304_v21  ;;  %v1374_v28 = vmul.f32 %v1304_v21, %v1304_v21  ;;  %v2082_v29 = vpop.f32.mrb[8].mxu0  ;;  %v1375_v36 = vmul.f32 %v1305_v22, %v1305_v22  ;;  %1994 = vst [vmem:[%s2402_s15 + $0x10] sm:$0xff] %v1896_v39  }
 0x10a   : > { %v660_v32 = vpop.f32.mrb[9].mxu0 }
 0x10b   : > { %v1336_v35 = vadd.f32 %v1335_v27, %v1305_v22  ;;  %v1405_v37 = vadd.f32 %v1404_v23, %v1374_v28  ;;  %v2083_v38 = vpop.f32.mrb[10].mxu0  ;;  %v2130_v51 = vpop.f32.mrb[8].mxu1 }
 0x10c   : > { %v760_v40 = vpack.c.bf16 %v2083_v38, %v2082_v29  ;;  %v663_v41 = vpop.f32.mrb[11].mxu0  ;;  %v1045_v9 = vpop.f32.mrb[9].mxu1 }
 0x10d   : > { %v1337_v43 = vadd.f32 %v1336_v35, %v1306_v26  ;;  %v1406_v44 = vadd.f32 %v1405_v37, %v1375_v36  ;;  %v759_v45 = vpack.c.bf16 %v663_v41, %v660_v32  ;;  %v2131_v56 = vpop.f32.mrb[10].mxu1 }
 0x10e   : > { %1982 = vst [vmem:[%s2394_s11 + $0x28] sm:$0xff] %v760_v40   ;;  %v1310_v52 = vunpack.c.l.bf16 %v760_v40  ;;  %v1311_v57 = vunpack.c.h.bf16 %v760_v40  ;;  %v1911_v59 = vpack.c.bf16 %v2131_v56, %v2130_v51  ;;  %v1048_v60 = vpop.f32.mrb[11].mxu1 }
 0x10f   : > { %v1407_v47 = vadd.f32 %v1406_v44, %v1376_v42  ;;  %1981 = vst [vmem:[%s2394_s11 + $0x20] sm:$0xff] %v759_v45   ;;  %v1308_v48 = vunpack.c.l.bf16 %v759_v45  ;;  %v1309_v49 = vunpack.c.h.bf16 %v759_v45  ;;  %v1338_v50 = vadd.f32 %v1337_v43, %v1307_v31 }
 0x110   : > { %v1906_v1 = vpack.c.bf16 %v1048_v60, %v1045_v9  ;;  %1997 = vst [vmem:[%s2402_s15 + $0x28] sm:$0xff] %v1911_v59   ;;  %v1380_v4 = vmul.f32 %v1310_v52, %v1310_v52  ;;  %v1381_v8 = vmul.f32 %v1311_v57, %v1311_v57 }
 0x111   : > { %v1339_v13 = vadd.f32 %v1338_v50, %v1308_v48  ;;  %v1378_v53 = vmul.f32 %v1308_v48, %v1308_v48  ;;  %v1408_v54 = vadd.f32 %v1407_v47, %v1377_v46  ;;  %v2086_v55 = vpop.f32.mrb[12].mxu0  ;;  %v1379_v62 = vmul.f32 %v1309_v49, %v1309_v49 }
 0x112   : > { %v676_v58 = vpop.f32.mrb[13].mxu0  ;;  %1996 = vst [vmem:[%s2402_s15 + $0x20] sm:$0xff] %v1906_v1  }
 0x113   : > { %v1340_v61 = vadd.f32 %v1339_v13, %v1309_v49  ;;  %v1409_v63 = vadd.f32 %v1408_v54, %v1378_v53  ;;  %v2087_v0 = vpop.f32.mrb[14].mxu0  ;;  %v2134_v15 = vpop.f32.mrb[12].mxu1 }
 0x114   : > { %v762_v2 = vpack.c.bf16 %v2087_v0, %v2086_v55  ;;  %v679_v3 = vpop.f32.mrb[15].mxu0  ;;  %v1061_v16 = vpop.f32.mrb[13].mxu1 }
 0x115   : > { %v1341_v5 = vadd.f32 %v1340_v61, %v1310_v52  ;;  %v1410_v6 = vadd.f32 %v1409_v63, %v1379_v62  ;;  %v761_v7 = vpack.c.bf16 %v679_v3, %v676_v58  ;;  %v2135_v22 = vpop.f32.mrb[14].mxu1 }
 0x116   : > { %1984 = vst [vmem:[%s2394_s11 + $0x38] sm:$0xff] %v762_v2   ;;  %v1314_v17 = vunpack.c.l.bf16 %v762_v2  ;;  %v1315_v23 = vunpack.c.h.bf16 %v762_v2  ;;  %v1921_v25 = vpack.c.bf16 %v2135_v22, %v2134_v15  ;;  %v1064_v26 = vpop.f32.mrb[15].mxu1 }
 0x117   : > { %v1411_v10 = vadd.f32 %v1410_v6, %v1380_v4  ;;  %1983 = vst [vmem:[%s2394_s11 + $0x30] sm:$0xff] %v761_v7   ;;  %v1312_v11 = vunpack.c.l.bf16 %v761_v7  ;;  %v1313_v12 = vunpack.c.h.bf16 %v761_v7  ;;  %v1342_v14 = vadd.f32 %v1341_v5, %v1311_v57 }
 0x118   : > { %v1916_v31 = vpack.c.bf16 %v1064_v26, %v1061_v16  ;;  %1999 = vst [vmem:[%s2402_s15 + $0x38] sm:$0xff] %v1921_v25   ;;  %v1384_v34 = vmul.f32 %v1314_v17, %v1314_v17  ;;  %v1385_v38 = vmul.f32 %v1315_v23, %v1315_v23 }
 0x119   : > { %v1343_v18 = vadd.f32 %v1342_v14, %v1312_v11  ;;  %v1382_v19 = vmul.f32 %v1312_v11, %v1312_v11  ;;  %v1412_v20 = vadd.f32 %v1411_v10, %v1381_v8  ;;  %v2090_v21 = vpop.f32.mrb[16].mxu0  ;;  %v1383_v28 = vmul.f32 %v1313_v12, %v1313_v12 }
 0x11a   : > { %v692_v24 = vpop.f32.mrb[17].mxu0  ;;  %1998 = vst [vmem:[%s2402_s15 + $0x30] sm:$0xff] %v1916_v31  }
 0x11b   : > { %v1344_v27 = vadd.f32 %v1343_v18, %v1313_v12  ;;  %v1413_v29 = vadd.f32 %v1412_v20, %v1382_v19  ;;  %v2091_v30 = vpop.f32.mrb[18].mxu0  ;;  %v2138_v43 = vpop.f32.mrb[16].mxu1 }
 0x11c   : > { %v764_v32 = vpack.c.bf16 %v2091_v30, %v2090_v21  ;;  %v695_v33 = vpop.f32.mrb[19].mxu0  ;;  %v1077_v44 = vpop.f32.mrb[17].mxu1 }
 0x11d   : > { %v1345_v35 = vadd.f32 %v1344_v27, %v1314_v17  ;;  %v1414_v36 = vadd.f32 %v1413_v29, %v1383_v28  ;;  %v763_v37 = vpack.c.bf16 %v695_v33, %v692_v24  ;;  %v2139_v50 = vpop.f32.mrb[18].mxu1 }
 0x11e   : > { %1986 = vst [vmem:[%s2394_s11 + $0x48] sm:$0xff] %v764_v32   ;;  %v1318_v45 = vunpack.c.l.bf16 %v764_v32  ;;  %v1319_v51 = vunpack.c.h.bf16 %v764_v32  ;;  %v1931_v52 = vpack.c.bf16 %v2139_v50, %v2138_v43  ;;  %v1080_v13 = vpop.f32.mrb[19].mxu1 }
 0x11f   : > { %v1415_v39 = vadd.f32 %v1414_v36, %v1384_v34  ;;  %1985 = vst [vmem:[%s2394_s11 + $0x40] sm:$0xff] %v763_v37   ;;  %v1316_v40 = vunpack.c.l.bf16 %v763_v37  ;;  %v1317_v41 = vunpack.c.h.bf16 %v763_v37  ;;  %v1346_v42 = vadd.f32 %v1345_v35, %v1315_v23 }
 0x120   : > { %v1926_v57 = vpack.c.bf16 %v1080_v13, %v1077_v44  ;;  %2001 = vst [vmem:[%s2402_s15 + $0x48] sm:$0xff] %v1931_v52   ;;  %v1388_v60 = vmul.f32 %v1318_v45, %v1318_v45  ;;  %v1389_v0 = vmul.f32 %v1319_v51, %v1319_v51 }
 0x121   : > { %v1347_v46 = vadd.f32 %v1346_v42, %v1316_v40  ;;  %v1386_v47 = vmul.f32 %v1316_v40, %v1316_v40  ;;  %v1416_v48 = vadd.f32 %v1415_v39, %v1385_v38  ;;  %v2094_v49 = vpop.f32.mrb[20].mxu0  ;;  %v1387_v54 = vmul.f32 %v1317_v41, %v1317_v41 }
 0x122   : > { %v708_v9 = vpop.f32.mrb[21].mxu0  ;;  %2000 = vst [vmem:[%s2402_s15 + $0x40] sm:$0xff] %v1926_v57  }
 0x123   : > { %v1348_v53 = vadd.f32 %v1347_v46, %v1317_v41  ;;  %v1417_v55 = vadd.f32 %v1416_v48, %v1386_v47  ;;  %v2095_v56 = vpop.f32.mrb[22].mxu0  ;;  %v2142_v5 = vpop.f32.mrb[20].mxu1 }
 0x124   : > { %v766_v58 = vpack.c.bf16 %v2095_v56, %v2094_v49  ;;  %v711_v59 = vpop.f32.mrb[23].mxu0  ;;  %v1093_v6 = vpop.f32.mrb[21].mxu1 }
 0x125   : > { %v1349_v61 = vadd.f32 %v1348_v53, %v1318_v45  ;;  %v1418_v62 = vadd.f32 %v1417_v55, %v1387_v54  ;;  %v765_v63 = vpack.c.bf16 %v711_v59, %v708_v9  ;;  %v2143_v14 = vpop.f32.mrb[22].mxu1 }
 0x126   : > { %1988 = vst [vmem:[%s2394_s11 + $0x58] sm:$0xff] %v766_v58   ;;  %v1322_v7 = vunpack.c.l.bf16 %v766_v58  ;;  %v1323_v15 = vunpack.c.h.bf16 %v766_v58  ;;  %v1941_v17 = vpack.c.bf16 %v2143_v14, %v2142_v5  ;;  %v1096_v18 = vpop.f32.mrb[23].mxu1 }
 0x127   : > { %v1419_v1 = vadd.f32 %v1418_v62, %v1388_v60  ;;  %1987 = vst [vmem:[%s2394_s11 + $0x50] sm:$0xff] %v765_v63   ;;  %v1320_v2 = vunpack.c.l.bf16 %v765_v63  ;;  %v1321_v3 = vunpack.c.h.bf16 %v765_v63  ;;  %v1350_v4 = vadd.f32 %v1349_v61, %v1319_v51 }
 0x128   : > { %v1936_v23 = vpack.c.bf16 %v1096_v18, %v1093_v6  ;;  %2003 = vst [vmem:[%s2402_s15 + $0x58] sm:$0xff] %v1941_v17   ;;  %v1392_v26 = vmul.f32 %v1322_v7, %v1322_v7  ;;  %v1393_v30 = vmul.f32 %v1323_v15, %v1323_v15 }
 0x129   : > { %v1351_v8 = vadd.f32 %v1350_v4, %v1320_v2  ;;  %v1390_v10 = vmul.f32 %v1320_v2, %v1320_v2  ;;  %v1420_v11 = vadd.f32 %v1419_v1, %v1389_v0  ;;  %v2098_v12 = vpop.f32.mrb[24].mxu0  ;;  %v1391_v20 = vmul.f32 %v1321_v3, %v1321_v3 }
 0x12a   : > { %v724_v16 = vpop.f32.mrb[25].mxu0  ;;  %2002 = vst [vmem:[%s2402_s15 + $0x50] sm:$0xff] %v1936_v23  }
 0x12b   : > { %v1352_v19 = vadd.f32 %v1351_v8, %v1321_v3  ;;  %v1421_v21 = vadd.f32 %v1420_v11, %v1390_v10  ;;  %v2099_v22 = vpop.f32.mrb[26].mxu0  ;;  %v2146_v35 = vpop.f32.mrb[24].mxu1 }
 0x12c   : > { %v768_v24 = vpack.c.bf16 %v2099_v22, %v2098_v12  ;;  %v727_v25 = vpop.f32.mrb[27].mxu0  ;;  %v1109_v36 = vpop.f32.mrb[25].mxu1 }
 0x12d   : > { %v1353_v27 = vadd.f32 %v1352_v19, %v1322_v7  ;;  %v1422_v28 = vadd.f32 %v1421_v21, %v1391_v20  ;;  %v767_v29 = vpack.c.bf16 %v727_v25, %v724_v16  ;;  %v2147_v42 = vpop.f32.mrb[26].mxu1 }
 0x12e   : > { %1990 = vst [vmem:[%s2394_s11 + $0x68] sm:$0xff] %v768_v24   ;;  %v1326_v37 = vunpack.c.l.bf16 %v768_v24  ;;  %v1327_v43 = vunpack.c.h.bf16 %v768_v24  ;;  %v1951_v45 = vpack.c.bf16 %v2147_v42, %v2146_v35  ;;  %v1112_v46 = vpop.f32.mrb[27].mxu1 }
 0x12f   : > { %v1423_v31 = vadd.f32 %v1422_v28, %v1392_v26  ;;  %1989 = vst [vmem:[%s2394_s11 + $0x60] sm:$0xff] %v767_v29   ;;  %v1324_v32 = vunpack.c.l.bf16 %v767_v29  ;;  %v1325_v33 = vunpack.c.h.bf16 %v767_v29  ;;  %v1354_v34 = vadd.f32 %v1353_v27, %v1323_v15 }
 0x130   : > { %v1946_v51 = vpack.c.bf16 %v1112_v46, %v1109_v36  ;;  %2005 = vst [vmem:[%s2402_s15 + $0x68] sm:$0xff] %v1951_v45   ;;  %v1396_v13 = vmul.f32 %v1326_v37, %v1326_v37  ;;  %v1397_v56 = vmul.f32 %v1327_v43, %v1327_v43 }
 0x131   : > { %v1355_v38 = vadd.f32 %v1354_v34, %v1324_v32  ;;  %v1394_v39 = vmul.f32 %v1324_v32, %v1324_v32  ;;  %v1424_v40 = vadd.f32 %v1423_v31, %v1393_v30  ;;  %v2102_v41 = vpop.f32.mrb[28].mxu0  ;;  %v1395_v48 = vmul.f32 %v1325_v33, %v1325_v33 }
 0x132   : > { %v740_v44 = vpop.f32.mrb[29].mxu0  ;;  %2004 = vst [vmem:[%s2402_s15 + $0x60] sm:$0xff] %v1946_v51  }
 0x133   : > { %v1356_v47 = vadd.f32 %v1355_v38, %v1325_v33  ;;  %v1425_v49 = vadd.f32 %v1424_v40, %v1394_v39  ;;  %v2103_v50 = vpop.f32.mrb[30].mxu0  ;;  %v2150_v61 = vpop.f32.mrb[28].mxu1 }
 0x134   : > { %v770_v9 = vpack.c.bf16 %v2103_v50, %v2102_v41  ;;  %v743_v52 = vpop.f32.mrb[31].mxu0  ;;  %v1125_v62 = vpop.f32.mrb[29].mxu1 }
 0x135   : > { %v1357_v53 = vadd.f32 %v1356_v47, %v1326_v37  ;;  %v1426_v54 = vadd.f32 %v1425_v49, %v1395_v48  ;;  %v769_v55 = vpack.c.bf16 %v743_v52, %v740_v44  ;;  %v2151_v3 = vpop.f32.mrb[30].mxu1 }
 0x136   : > { %1992 = vst [vmem:[%s2394_s11 + $0x78] sm:$0xff] %v770_v9   ;;  %v1330_v63 = vunpack.c.l.bf16 %v770_v9  ;;  %v1331_v4 = vunpack.c.h.bf16 %v770_v9  ;;  %v1961_v5 = vpack.c.bf16 %v2151_v3, %v2150_v61  ;;  %v1128_v6 = vpop.f32.mrb[31].mxu1 }
 0x137   : > { %v1427_v57 = vadd.f32 %v1426_v54, %v1396_v13  ;;  %1991 = vst [vmem:[%s2394_s11 + $0x70] sm:$0xff] %v769_v55   ;;  %v1328_v58 = vunpack.c.l.bf16 %v769_v55  ;;  %v1329_v59 = vunpack.c.h.bf16 %v769_v55  ;;  %v1358_v60 = vadd.f32 %v1357_v53, %v1327_v43 }
 0x138   : > { %v1956_v11 = vpack.c.bf16 %v1128_v6, %v1125_v62  ;;  %2007 = vst [vmem:[%s2402_s15 + $0x78] sm:$0xff] %v1961_v5   ;;  %v1400_v12 = vmul.f32 %v1330_v63, %v1330_v63  ;;  %v1401_v16 = vmul.f32 %v1331_v4, %v1331_v4 }
 0x139   : > { %v1359_v0 = vadd.f32 %v1358_v60, %v1328_v58  ;;  %v1398_v1 = vmul.f32 %v1328_v58, %v1328_v58  ;;  %v1428_v2 = vadd.f32 %v1427_v57, %v1397_v56  ;;  %v1399_v8 = vmul.f32 %v1329_v59, %v1329_v59 }
 0x13a   : > { %2006 = vst [vmem:[%s2402_s15 + $0x70] sm:$0xff] %v1956_v11  }
 0x13b   : > { %v1360_v7 = vadd.f32 %v1359_v0, %v1329_v59  ;;  %v1429_v10 = vadd.f32 %v1428_v2, %v1398_v1 }
 0x13d   : > { %v1361_v14 = vadd.f32 %v1360_v7, %v1330_v63  ;;  %v1430_v15 = vadd.f32 %v1429_v10, %v1399_v8 }
 0x13f   : > { %v1362_v17 = vadd.f32 %v1361_v14, %v1331_v4  ;;  %v1431_v18 = vadd.f32 %v1430_v15, %v1400_v12 }
 0x141   : > { %v1363_v19 = vrot.slane %v1362_v17, 4  ;;  %v1432_v20 = vadd.f32 %v1431_v18, %v1401_v16 }
 0x143   : > { %v1364_v21 = vadd.f32 %v1363_v19, %v1362_v17  ;;  %v1433_v22 = vrot.slane %v1432_v20, 4 }
 0x145   : > { %v1365_v23 = vrot.slane %v1364_v21, 2  ;;  %v1434_v24 = vadd.f32 %v1433_v22, %v1432_v20 }
 0x147   : > { %v1366_v25 = vadd.f32 %v1365_v23, %v1364_v21  ;;  %v1435_v26 = vrot.slane %v1434_v24, 2 }
 0x149   : > { %v1367_v27 = vrot.slane %v1366_v25, 1  ;;  %v1436_v28 = vadd.f32 %v1435_v26, %v1434_v24 }
 0x14b   : > { %v1368_v29 = vadd.f32 %v1367_v27, %v1366_v25  ;;  %v1437_v30 = vrot.slane %v1436_v28, 1 }
 0x14d   : > { %1369 = vst [vmem:[%s335_s17] sm:$0x1] %v1368_v29  ;;  %v1438_v31 = vadd.f32 %v1437_v30, %v1436_v28 }
 0x14f   : > { %1439 = vst [vmem:[%s338_s20] sm:$0x1] %v1438_v31 }
 0x150 PF: > { %s19_s27 = sadd.s32 1, %s2182_s27  }
 0x151   : > { %p16_p5 = scmp.ge.s32.totalorder %s19_s27, 4  }
 0x153   :  { %18 = sbr.rel (!%p16_p5) target bundleno = 1 (0x1), region = 106 }

// kernel: preact_bottleneck_pallas.4
= control target key start
LH: loop header
LB: loop body
LE: loop exit
PB: predicated region body
PF: predicated region fallthrough
CT: control target
= control target key end

     0   :  { %s7072_s21 = smov 0   ;;  %s8528_s0 = inlined_call_operand.vmem [shape: bf16[2,16,16,128], index: 0, kind: input, shape index: {}]   ;;  %s8529_s1 = inlined_call_operand.vmem [shape: f32[1,128], index: 1, kind: input, shape index: {}]   ;;  %s8530_s2 = inlined_call_operand.vmem [shape: f32[1,128], index: 2, kind: input, shape index: {}]   ;;  %s8531_s3 = inlined_call_operand.vmem [shape: bf16[9,128,128], index: 3, kind: input, shape index: {}]   ;;  %s8532_s4 = inlined_call_operand.vmem [shape: bf16[2,16,16,128], index: 4, kind: output, shape index: {0}]   ;;  %s8533_s5 = inlined_call_operand.vmem [shape: f32[2,1,128], index: 5, kind: output, shape index: {1}]   ;;  %s8534_s6 = inlined_call_operand.vmem [shape: f32[2,1,128], index: 6, kind: output, shape index: {2}]  }
   0x1 LB: > { %s5084_s22 = sadd.s32 4294967295, %s7034_s21   ;;  %p5088_p0 = scmp.ge.s32.totalorder %s7034_s21, 1  ;;  %s7034_s21 = sphi %s7072_s21, %s17_s21  }
   0x2   : > { %p217_p1 = scmp.lt.s32.totalorder %s7034_s21, 3 }
   0x4   : > { %p218_p2 = pnand %p5088_p0, %p217_p1 }
   0x6   : > { %221 = sbr.rel (%p218_p2) target bundleno = 780 (0x30c), region = 36 }
   0xd   : > { %v6912_v0 = vld [vmem:[%s8531_s3 + $0x40] sm:$0xff]   ;;  %v6914_v2 = vld [vmem:[%s8531_s3 + $0x48] sm:$0xff]   ;;  %p7089_p3 = scmp.lt.s32.totalorder %s5084_s22, 1  ;;  %v7036_v3 = vmov 0   ;;  %v6916_v5 = vld [vmem:[%s8531_s3 + $0x50] sm:$0xff]   ;;  %vm455_vm0 = vcmask 1040384  }
   0xe   : > { %v6913_v1 = vld [vmem:[%s8531_s3 + $0x100] sm:$0xff]   ;;  %5943 = vmatprep.subr.bf16.mxu1 %v6912_v0  ;;  %444 = vst [vmem:[#allocation2] sm:$0xf] %v7036_v3  ;;  %445 = vst [vmem:[#allocation2 + $0x4] sm:$0xf] %v7036_v3  ;;  %v6915_v4 = vld [vmem:[%s8531_s3 + $0x108] sm:$0xff]  }
   0xf   : > { %446 = vst [vmem:[#allocation2 + $0x8] sm:$0xf] %v7036_v3  ;;  %448 = vst [vmem:[#allocation2 + $0xcc] sm:$0xf] %v7036_v3  ;;  %6199 = vmatprep.subr.bf16.mxu0 %v6913_v1  ;;  %5944 = vmatpush3.bf16.msra.mxu1 %v6912_v0  ;;  %v6917_v6 = vld [vmem:[%s8531_s3 + $0x110] sm:$0xff]   ;;  %s8653_s22 = smov (!%p7089_p3, %s5084_s22), 1 }
  0x10   : > { %449 = vst [vmem:[#allocation2 + $0xd0] sm:$0xf] %v7036_v3  ;;  %450 = vst [vmem:[#allocation2 + $0xd4] sm:$0xf] %v7036_v3  ;;  %6200 = vmatpush3.bf16.msra.mxu0 %v6913_v1  ;;  %5945 = vmatprep.subr.bf16.mxu1 %v6914_v2  ;;  %v6918_v7 = vld [vmem:[%s8531_s3 + $0x58] sm:$0xff]   ;;  %s5415_s16 = sshll.u32 %s8653_s22, 7  ;;  %s265_s15 = scalar_lea.vmem %s8533_s5, %s8653_s22 }
  0x11   : > { %451 = vst [vmem:[#allocation2 + $0xd8] sm:$0xf] %v7036_v3  ;;  %6201 = vmatprep.subr.bf16.mxu0 %v6915_v4  ;;  %v6919_v8 = vld [vmem:[%s8531_s3 + $0x118] sm:$0xff]   ;;  %v6920_v9 = vld [vmem:[%s8531_s3 + $0x60] sm:$0xff]   ;;  %s7124_s25 = scalar_lea.vmem %s8528_s0, %s5415_s16  ;;  %v6922_v11 = vld [vmem:[%s8531_s3 + $0x68] sm:$0xff]   ;;  %vm506_vm1 = vcmask 1043456   ;;  %s8487_s13 = scalar_lea.vmem %s8532_s4, %s5415_s16 }
  0x12   : > { %v6921_v10 = vld [vmem:[%s8531_s3 + $0x120] sm:$0xff]   ;;  %v6923_v12 = vld [vmem:[%s8531_s3 + $0x128] sm:$0xff]   ;;  %vm456_vm2 = vsmask.f32 256  ;;  %vm507_vm3 = vsmask.f32 7938  ;;  %s268_s19 = scalar_lea.vmem %s8534_s6, %s8653_s22 }
  0x13   : > { %5946 = vmatpush3.bf16.msra.mxu1 %v6914_v2  ;;  %v7135_v13 = vld [vmem:[%s8529_s1] ss:$0 sm:$0xff]  ;;  %v458_v17 = vld [vmem:[#allocation2 + $0xc] sm:$0x1]  ;;  %vm7144_vm4 = vmand %vm455_vm0, %vm456_vm2  ;;  %vm653_vm6 = vsmask.f32 4368 }
  0x14   : > { %6202 = vmatpush3.bf16.msra.mxu0 %v6915_v4  ;;  %5947 = vmatprep.subr.bf16.mxu1 %v6916_v5  ;;  %v7140_v14 = vld [vmem:[%s8530_s2] ss:$0 sm:$0xff]  ;;  %v6924_v20 = vld [vmem:[%s8531_s3 + $0x70] sm:$0xff]   ;;  %v459_v22 = vsel %vm7144_vm4, 0, %v458_v17  ;;  %vm7154_vm5 = vmand %vm506_vm1, %vm507_vm3  ;;  %vm1298_vm8 = vsmask.f32 7424 }
  0x15   : > { %6203 = vmatprep.subr.bf16.mxu0 %v6917_v6  ;;  %v5482_v15 = vld [vmem:[%s7124_s25] sm:$0xff]   ;;  %v6925_v26 = vld [vmem:[%s8531_s3 + $0x130] sm:$0xff]   ;;  %460 = vst [vmem:[#allocation2 + $0xc] sm:$0x1] %v459_v22  ;;  %v5625_v31 = vld [vmem:[%s7124_s25 + $0x8] sm:$0xff]   ;;  %vm2074_vm9 = vcmask 1046528  }
  0x16   : > { %v5483_v16 = vunpack.c.l.bf16 %v5482_v15  ;;  %v5484_v18 = vunpack.c.h.bf16 %v5482_v15  ;;  %v7158_v24 = vld [vmem:[#allocation2] sm:$0xff]   ;;  %v509_v27 = vld [vmem:[#allocation2 + $0x14] sm:$0xf]  ;;  %v5487_v33 = vunpack.c.l.bf16 %v5625_v31  ;;  %v5488_v34 = vunpack.c.h.bf16 %v5625_v31  ;;  %v461_v35 = vld [vmem:[#allocation2 + $0x18] sm:$0x1] }
  0x17   : > { %5948 = vmatpush3.bf16.msra.mxu1 %v6916_v5  ;;  %v1302_v29 = vshll.u32 %v7158_v24, 16  ;;  %v510_v32 = vsel %vm7154_vm5, 0, %v509_v27  ;;  %v6926_v36 = vld [vmem:[%s8531_s3 + $0x78] sm:$0xff]   ;;  %v462_v39 = vsel %vm7144_vm4, 0, %v461_v35  ;;  %v1300_v40 = vshrl.u32 %v7158_v24, 16  ;;  %v5626_v43 = vld [vmem:[%s7124_s25 + $0x10] sm:$0xff]   ;;  %vm7204_vm7 = vmor %vm456_vm2, %vm653_vm6 }
  0x18   : > { %6204 = vmatpush3.bf16.msra.mxu0 %v6917_v6  ;;  %5949 = vmatprep.subr.bf16.mxu1 %v6918_v7  ;;  %v342_v21 = vmul.f32 %v5483_v16, %v7135_v13  ;;  %v343_v25 = vmul.f32 %v5484_v18, %v7135_v13  ;;  %511 = vst [vmem:[#allocation2 + $0x14] sm:$0xf] %v510_v32  ;;  %463 = vst [vmem:[#allocation2 + $0x18] sm:$0x1] %v462_v39  ;;  %v464_v44 = vld [vmem:[#allocation2 + $0x24] sm:$0x1]  ;;  %v5491_v50 = vunpack.c.l.bf16 %v5626_v43 }
  0x19   : > { %6205 = vmatprep.subr.bf16.mxu0 %v6919_v8  ;;  %v344_v41 = vmul.f32 %v5487_v33, %v7135_v13  ;;  %v345_v42 = vmul.f32 %v5488_v34, %v7135_v13  ;;  %v512_v45 = vld [vmem:[#allocation2 + $0x20] sm:$0xf]  ;;  %v6927_v46 = vld [vmem:[%s8531_s3 + $0x138] sm:$0xff]   ;;  %v7182_v48 = vrot.slane %v1302_v29, 1  ;;  %v465_v53 = vsel %vm7144_vm4, 0, %v464_v44  ;;  %v6975_v19 = vld [vmem:[%s8531_s3 + $0x88] sm:$0xff]  }
  0x1a   : > { %v380_v28 = vadd.f32 %v7140_v14, %v342_v21  ;;  %v381_v30 = vadd.f32 %v7140_v14, %v343_v25  ;;  %v513_v54 = vsel %vm7154_vm5, 0, %v512_v45  ;;  %v5627_v55 = vld [vmem:[%s7124_s25 + $0x18] sm:$0xff]   ;;  %466 = vst [vmem:[#allocation2 + $0x24] sm:$0x1] %v465_v53  ;;  %v7194_v60 = vld [vmem:[%s8531_s3] sm:$0xff]   ;;  %v346_v0 = vmul.f32 %v5491_v50, %v7135_v13 }
  0x1b   : > { %5950 = vmatpush3.bf16.msra.mxu1 %v6918_v7  ;;  %v382_v51 = vadd.f32 %v7140_v14, %v344_v41  ;;  %v383_v52 = vadd.f32 %v7140_v14, %v345_v42  ;;  %514 = vst [vmem:[#allocation2 + $0x20] sm:$0xf] %v513_v54  ;;  %v7199_v63 = vld [vmem:[%s8531_s3 + $0x140] sm:$0xff]   ;;  %v5492_v1 = vunpack.c.h.bf16 %v5626_v43  ;;  %v5495_v5 = vunpack.c.l.bf16 %v5627_v55  ;;  %v515_v27 = vld [vmem:[#allocation2 + $0x2c] sm:$0xf] }
  0x1c   : > { %6206 = vmatpush3.bf16.msra.mxu0 %v6919_v8  ;;  %5951 = vmatprep.subr.bf16.mxu1 %v6920_v9  ;;  %v412_v37 = vmax.f32 %v380_v28, 0.0  ;;  %v413_v38 = vmax.f32 %v381_v30, 0.0  ;;  %v5496_v6 = vunpack.c.h.bf16 %v5627_v55  ;;  %v975_v7 = vld [vmem:[#allocation2 + $0xc] sm:$0xf]  ;;  %v516_v43 = vsel %vm7154_vm5, 0, %v515_v27  ;;  %v7227_v53 = vld [vmem:[%s7124_s25 + $0x20] sm:$0xff]  }
  0x1d   : > { %6207 = vmatprep.subr.bf16.mxu0 %v6921_v10  ;;  %v414_v61 = vmax.f32 %v382_v51, 0.0  ;;  %v415_v62 = vmax.f32 %v383_v52, 0.0  ;;  %517 = vst [vmem:[#allocation2 + $0x2c] sm:$0xf] %v516_v43  ;;  %v470_v54 = vld [vmem:[#allocation2 + $0x3c] sm:$0x1] }
  0x1e   : > { %v5417_v47 = vpack.c.bf16 %v412_v37, %v412_v37  ;;  %v5418_v49 = vpack.c.bf16 %v413_v38, %v413_v38  ;;  %v348_v37 = vmul.f32 %v5495_v5, %v7135_v13  ;;  %v518_v38 = vld [vmem:[#allocation2 + $0x38] sm:$0xf]  ;;  %v349_v41 = vmul.f32 %v5496_v6, %v7135_v13 }
  0x1f   : > { %5952 = vmatpush3.bf16.msra.mxu1 %v6920_v9  ;;  %v979_v8 = vld [vmem:[#allocation2 + $0x14] sm:$0x1]  ;;  %v5419_v9 = vpack.c.bf16 %v414_v61, %v414_v61  ;;  %v982_v31 = vld [vmem:[#allocation2 + $0x18] sm:$0xf]  ;;  %v1089_v61 = vld [vmem:[#allocation2 + $0x8] sm:$0xf] }
  0x20   : > { %6208 = vmatpush3.bf16.msra.mxu0 %v6921_v10  ;;  %5953 = vmatprep.subr.bf16.mxu1 %v6922_v11  ;;  %v656_v56 = vshrl.u32 %v5417_v47, 16  ;;  %v659_v57 = vshll.u32 %v5417_v47, 16  ;;  %v664_v58 = vshrl.u32 %v5418_v49, 16  ;;  %v667_v59 = vshll.u32 %v5418_v49, 16 }
  0x21   : > { %6209 = vmatprep.subr.bf16.mxu0 %v6923_v12  ;;  %v5420_v10 = vpack.c.bf16 %v415_v62, %v415_v62  ;;  %v673_v21 = vshrl.u32 %v5419_v9, 16  ;;  %v676_v22 = vshll.u32 %v5419_v9, 16  ;;  %v386_v52 = vadd.f32 %v7140_v14, %v348_v37  ;;  %v989_v5 = vld [vmem:[#allocation2 + $0x24] sm:$0xf] }
  0x22   : > { %v658_v2 = vrot.slane %v656_v56, 7  ;;  %v666_v4 = vrot.slane %v664_v58, 7  ;;  %v986_v35 = vld [vmem:[#allocation2 + $0x20] sm:$0x1]  ;;  %v387_v58 = vadd.f32 %v7140_v14, %v349_v41 }
  0x23   : > { %5954 = vmatpush3.bf16.msra.mxu1 %v6922_v11  ;;  %v384_v11 = vadd.f32 %v7140_v14, %v346_v0  ;;  %v681_v25 = vshrl.u32 %v5420_v10, 16  ;;  %v675_v33 = vrot.slane %v673_v21, 7 }
  0x24   : > { %6210 = vmatpush3.bf16.msra.mxu0 %v6923_v12  ;;  %5955 = vmatprep.subr.bf16.mxu1 %v6924_v20  ;;  %v347_v12 = vmul.f32 %v5492_v1, %v7135_v13  ;;  %v661_v15 = vor.u32 %v659_v57, %v658_v2  ;;  %v662_v16 = vrot.slane %v658_v2, 4  ;;  %v669_v17 = vor.u32 %v667_v59, %v666_v4  ;;  %v7237_v59 = vld [vmem:[%s7124_s25 + $0x28] sm:$0xff]  }
  0x25   : > { %6211 = vmatprep.subr.bf16.mxu0 %v6925_v26  ;;  %v671_v18 = vrot.slane %v666_v4, 4  ;;  %v416_v32 = vmax.f32 %v384_v11, 0.0  ;;  %v683_v34 = vrot.slane %v681_v25, 7  ;;  %v678_v44 = vor.u32 %v676_v22, %v675_v33 }
  0x26   : > { %v976_v28 = vsel %vm7154_vm5, %v661_v15, %v975_v7  ;;  %v670_v29 = vsel %vm7204_vm7, %v662_v16, %v669_v17  ;;  %v679_v45 = vrot.slane %v675_v33, 4  ;;  %v418_v1 = vmax.f32 %v386_v52, 0.0 }
  0x27   : > { %5956 = vmatpush3.bf16.msra.mxu1 %v6924_v20  ;;  %v467_v20 = vld [vmem:[#allocation2 + $0x30] sm:$0x1]  ;;  %v980_v30 = vsel %vm7144_vm4, %v671_v18, %v979_v8  ;;  %977 = vst [vmem:[#allocation2 + $0xc] sm:$0xf] %v976_v28  ;;  %978 = vst [vmem:[#allocation2 + $0x10] sm:$0xf] %v670_v29  ;;  %v5421_v39 = vpack.c.bf16 %v416_v32, %v416_v32  ;;  %v983_v56 = vsel %vm7154_vm5, %v678_v44, %v982_v31 }
  0x28   : > { %6212 = vmatpush3.bf16.msra.mxu0 %v6925_v26  ;;  %5957 = vmatprep.subr.bf16.mxu1 %v6926_v36  ;;  %v684_v26 = vshll.u32 %v5420_v10, 16  ;;  %981 = vst [vmem:[#allocation2 + $0x14] sm:$0x1] %v980_v30  ;;  %v468_v42 = vsel %vm7144_vm4, 0, %v467_v20  ;;  %v688_v47 = vrot.slane %v683_v34, 4  ;;  %v519_v2 = vsel %vm7154_vm5, 0, %v518_v38 }
  0x29   : > { %6213 = vmatprep.subr.bf16.mxu0 %v6927_v46  ;;  %469 = vst [vmem:[#allocation2 + $0x30] sm:$0x1] %v468_v42  ;;  %v690_v49 = vshrl.u32 %v5421_v39, 16  ;;  %v693_v50 = vshll.u32 %v5421_v39, 16  ;;  %984 = vst [vmem:[#allocation2 + $0x18] sm:$0xf] %v983_v56  ;;  %v1305_v4 = vor.u32 %v7182_v48, %v1300_v40  ;;  %v5499_v7 = vunpack.c.l.bf16 %v7227_v53 }
  0x2a   : > { %v987_v57 = vsel %vm7144_vm4, %v688_v47, %v986_v35  ;;  %v419_v6 = vmax.f32 %v387_v58, 0.0  ;;  %520 = vst [vmem:[#allocation2 + $0x38] sm:$0xf] %v519_v2  ;;  %v471_v8 = vsel %vm7144_vm4, 0, %v470_v54  ;;  %v7247_v15 = vpack.c.bf16 %v418_v1, %v418_v1 }
  0x2b   : > { %5958 = vmatpush3.bf16.msra.mxu1 %v6926_v36  ;;  %v385_v36 = vadd.f32 %v7140_v14, %v347_v12  ;;  %v692_v62 = vrot.slane %v690_v49, 7  ;;  %988 = vst [vmem:[#allocation2 + $0x20] sm:$0x1] %v987_v57  ;;  %v5500_v16 = vunpack.c.h.bf16 %v7227_v53  ;;  %472 = vst [vmem:[#allocation2 + $0x3c] sm:$0x1] %v471_v8  ;;  %v5503_v24 = vunpack.c.l.bf16 %v7237_v59  ;;  %v6935_v8 = vld [vmem:[%s8531_s3 + $0x148] sm:$0xff]  }
  0x2c   : > { %6214 = vmatpush3.bf16.msra.mxu0 %v6927_v46  ;;  %6007 = vmatprep.subr.bf16.mxu1 %v7194_v60  ;;  %v686_v46 = vor.u32 %v684_v26, %v683_v34  ;;  %v5504_v18 = vunpack.c.h.bf16 %v7237_v59  ;;  %v707_v33 = vshrl.u32 %v7247_v15, 16  ;;  %v7267_v38 = vpack.c.bf16 %v419_v6, %v419_v6 }
  0x2d   : > { %6263 = vmatprep.subr.bf16.mxu0 %v7199_v63  ;;  %v417_v51 = vmax.f32 %v385_v36, 0.0  ;;  %v695_v12 = vor.u32 %v693_v50, %v692_v62  ;;  %v696_v21 = vrot.slane %v692_v62, 4  ;;  %v350_v39 = vmul.f32 %v5499_v7, %v7135_v13  ;;  %v993_v62 = vld [vmem:[#allocation2 + $0x2c] sm:$0x1] }
  0x2e   : > { %v687_v55 = vsel %vm7204_vm7, %v679_v45, %v686_v46  ;;  %v1090_v9 = vld [vmem:[#allocation2 + $0xc] sm:$0xf]  ;;  %v1091_v10 = vld [vmem:[#allocation2 + $0x10] sm:$0xf] }
  0x2f   : > { %985 = vst [vmem:[#allocation2 + $0x1c] sm:$0xf] %v687_v55  ;;  %v5422_v0 = vpack.c.bf16 %v417_v51, %v417_v51  ;;  %v1092_v11 = vld [vmem:[#allocation2 + $0x14] sm:$0xf]  ;;  %v7251_v40 = vcombine.low %v1089_v61, %v1090_v9  ;;  %v7255_v17 = vcombine.low %v1090_v9, %v1091_v10  ;;  %v990_v20 = vsel %vm7154_vm5, %v695_v12, %v989_v5  ;;  %v6938_v55 = vld [vmem:[%s8531_s3 + $0x8] sm:$0xff]  }
  0x30   : > { %v7253_v48 = vcombine.low %v1091_v10, %v1092_v11  ;;  %991 = vst [vmem:[#allocation2 + $0x24] sm:$0xf] %v990_v20  ;;  %v1093_v36 = vld [vmem:[#allocation2 + $0x18] sm:$0xf]  ;;  %v351_v5 = vmul.f32 %v5500_v16, %v7135_v13  ;;  %v709_v9 = vrot.slane %v707_v33, 7  ;;  %v710_v10 = vshll.u32 %v7247_v15, 16 }
  0x31   : > { %8580 = vst [vmem:[#allocation3_spill] sm:$0xff] %v7255_v17  ;;  %v698_v22 = vshrl.u32 %v5422_v0, 16  ;;  %v701_v25 = vshll.u32 %v5422_v0, 16  ;;  %v1307_v26 = vshll.u32 %v7251_v40, 16  ;;  %v1311_v27 = vshrl.u32 %v7251_v40, 16 }
  0x32   : > { %v1315_v28 = vshll.u32 %v7253_v48, 16  ;;  %v2816_v29 = vshrl.u32 %v7255_v17, 16  ;;  %v2818_v30 = vshll.u32 %v7255_v17, 16  ;;  %v1319_v31 = vshrl.u32 %v7253_v48, 16  ;;  %v1095_v44 = vld [vmem:[#allocation2 + $0x20] sm:$0xf] }
  0x33   : > { %v700_v32 = vrot.slane %v698_v22, 7  ;;  %v1309_v34 = vrot.slane %v1307_v26, 1  ;;  %v7272_v42 = vcombine.low %v1092_v11, %v1093_v36  ;;  %v996_v11 = vld [vmem:[#allocation2 + $0x30] sm:$0xf]  ;;  %v521_v12 = vld [vmem:[#allocation2 + $0x44] sm:$0xf]  ;;  %v712_v15 = vor.u32 %v710_v10, %v709_v9 }
  0x34   : > { %v1317_v35 = vrot.slane %v1315_v28, 1  ;;  %v2820_v43 = vrot.slane %v2818_v30, 1  ;;  %v473_v28 = vld [vmem:[#allocation2 + $0x48] sm:$0x1]  ;;  %v715_v30 = vshrl.u32 %v7267_v38, 16 }
  0x35   : > { %8581 = vst [vmem:[#allocation4_spill] sm:$0xff] %v7272_v42  ;;  %v703_v45 = vor.u32 %v701_v25, %v700_v32  ;;  %v1310_v46 = vsel %vm1298_vm8, %v1305_v4, %v1309_v34  ;;  %v1313_v47 = vor.u32 %v1311_v27, %v1309_v34  ;;  %v2823_v52 = vshll.u32 %v7272_v42, 16 }
  0x36   : > { %v1094_v37 = vld [vmem:[#allocation2 + $0x1c] sm:$0xf]  ;;  %v1321_v50 = vor.u32 %v1319_v31, %v1317_v35  ;;  %5959 = vmatprep.mubr.bf16.mxu1 %v1310_v46  ;;  %v2821_v51 = vor.u32 %v2820_v43, %v2816_v29  ;;  %v2827_v53 = vshrl.u32 %v7272_v42, 16  ;;  %v705_v4 = vrot.slane %v700_v32, 4  ;;  %v7323_v46 = vld [vmem:[%s7124_s25 + $0x30] sm:$0xff]  }
  0x37   : > { %v7270_v41 = vcombine.low %v1093_v36, %v1094_v37  ;;  %v7275_v49 = vcombine.low %v1094_v37, %v1095_v44  ;;  %v1318_v56 = vsel %vm1298_vm8, %v1313_v47, %v1317_v35  ;;  %v704_v61 = vsel %vm7204_vm7, %v696_v21, %v703_v45  ;;  %v1096_v1 = vld [vmem:[#allocation2 + $0x24] sm:$0xf] }
  0x38   : > { %5960 = vmatmul.mubr.bf16.vlgmr.msra.gmra.mrb[0].mxu1 %v1318_v56  ;;  %v2825_v0 = vrot.slane %v2823_v52, 1  ;;  %992 = vst [vmem:[#allocation2 + $0x28] sm:$0xf] %v704_v61  ;;  %v7290_v6 = vcombine.low %v1095_v44, %v1096_v1  ;;  %v713_v27 = vrot.slane %v709_v9, 4  ;;  %v718_v31 = vshll.u32 %v7267_v38, 16  ;;  %v6939_v38 = vld [vmem:[%s8531_s3 + $0x150] sm:$0xff]  }
  0x39   : > { %8582 = vst [vmem:[#allocation5_spill] sm:$0xff] %v7275_v49  ;;  %v1323_v54 = vshll.u32 %v7270_v41, 16  ;;  %v2831_v57 = vshll.u32 %v7275_v49, 16  ;;  %v1327_v58 = vshrl.u32 %v7270_v41, 16  ;;  %6008 = vmatpush3.bf16.msra.mxu1 %v7194_v60  ;;  %v2835_v16 = vshrl.u32 %v7275_v49, 16  ;;  %v6943_v60 = vld [vmem:[%s8531_s3 + $0x10] sm:$0xff]  }
  0x3a   : > { %v2826_v20 = vsel %vm1298_vm8, %v2821_v51, %v2825_v0  ;;  %v2829_v21 = vor.u32 %v2827_v53, %v2825_v0  ;;  %6009 = vmatprep.subr.bf16.mxu1 %v6938_v55  ;;  %v1331_v26 = vshll.u32 %v7290_v6, 16  ;;  %v994_v32 = vsel %vm7144_vm4, %v705_v4, %v993_v62  ;;  %v1000_v51 = vld [vmem:[#allocation2 + $0x38] sm:$0x1] }
  0x3b   : > { %v1325_v2 = vrot.slane %v1323_v54, 1  ;;  %v2833_v7 = vrot.slane %v2831_v57, 1  ;;  %6215 = vmatprep.mubr.bf16.mxu0 %v2826_v20  ;;  %995 = vst [vmem:[#allocation2 + $0x2c] sm:$0x1] %v994_v32  ;;  %v997_v34 = vsel %vm7154_vm5, %v712_v15, %v996_v11  ;;  %v1335_v35 = vshrl.u32 %v7290_v6, 16  ;;  %v6959_v32 = vld [vmem:[%s8531_s3 + $0x28] sm:$0xff]  }
  0x3c   : > { %v1333_v33 = vrot.slane %v1331_v26, 1  ;;  %v388_v36 = vadd.f32 %v7140_v14, %v350_v39  ;;  %v717_v37 = vrot.slane %v715_v30, 7  ;;  %998 = vst [vmem:[#allocation2 + $0x30] sm:$0xf] %v997_v34  ;;  %v389_v43 = vadd.f32 %v7140_v14, %v351_v5  ;;  %v476_v57 = vld [vmem:[#allocation2 + $0x54] sm:$0x1] }
  0x3d   : > { %v1326_v22 = vsel %vm1298_vm8, %v1321_v50, %v1325_v2  ;;  %v1329_v25 = vor.u32 %v1327_v58, %v1325_v2  ;;  %v2834_v29 = vsel %vm1298_vm8, %v2829_v21, %v2833_v7  ;;  %6010 = vmatpush3.bf16.msra.mxu1 %v6938_v55  ;;  %v522_v44 = vsel %vm7154_vm5, 0, %v521_v12  ;;  %v1003_v30 = vld [vmem:[#allocation2 + $0x3c] sm:$0xf] }
  0x3e   : > { %5963 = vmatprep.mubr.bf16.mxu1 %v1326_v22  ;;  %6216 = vmatmul.mubr.bf16.vlgmr.msra.gmra.mrb[0].mxu0 %v2834_v29  ;;  %v352_v45 = vmul.f32 %v5503_v24, %v7135_v13  ;;  %v2837_v50 = vor.u32 %v2835_v16, %v2833_v7  ;;  %v420_v52 = vmax.f32 %v388_v36, 0.0  ;;  %523 = vst [vmem:[#allocation2 + $0x44] sm:$0xf] %v522_v44  ;;  %v474_v53 = vsel %vm7144_vm4, 0, %v473_v28 }
  0x3f   : > { %6264 = vmatpush3.bf16.msra.mxu0 %v7199_v63  ;;  %6011 = vmatprep.subr.bf16.mxu1 %v6943_v60  ;;  %v6950_v63 = vld [vmem:[%s8531_s3 + $0x18] sm:$0xff]   ;;  %v7329_v39 = vsel %vm1298_vm8, %v1329_v25, %v1333_v33  ;;  %v1097_v47 = vld [vmem:[#allocation2 + $0x28] sm:$0xf]  ;;  %v720_v54 = vor.u32 %v718_v31, %v717_v37  ;;  %v722_v55 = vrot.slane %v717_v37, 4  ;;  %v421_v56 = vmax.f32 %v389_v43, 0.0 }
  0x40   : > { %6265 = vmatprep.subr.bf16.mxu0 %v6935_v8  ;;  %8583 = vst [vmem:[#allocation6_spill] sm:$0xff] %v7329_v39  ;;  %5964 = vmatmul.mubr.bf16.gmra.mrb[4].mxu1 %v7329_v39  ;;  %v7334_v24 = vcombine.low %v1096_v1, %v1097_v47  ;;  %475 = vst [vmem:[#allocation2 + $0x48] sm:$0x1] %v474_v53  ;;  %v7336_v58 = vor.u32 %v1335_v35, %v1333_v33  ;;  %v5507_v0 = vunpack.c.l.bf16 %v7323_v46 }
  0x41   : > { %v5425_v61 = vpack.c.bf16 %v420_v52, %v420_v52  ;;  %v390_v62 = vadd.f32 %v7140_v14, %v352_v45  ;;  %6012 = vmatpush3.bf16.msra.mxu1 %v6943_v60  ;;  %v721_v1 = vsel %vm7204_vm7, %v713_v27, %v720_v54  ;;  %v1001_v5 = vsel %vm7144_vm4, %v722_v55, %v1000_v51  ;;  %v6955_v60 = vld [vmem:[%s8531_s3 + $0x20] sm:$0xff]  }
  0x42   : > { %8584 = vst [vmem:[#allocation7_spill] sm:$0xff] %v7334_v24  ;;  %v2839_v2 = vshll.u32 %v7334_v24, 16  ;;  %v2843_v4 = vshrl.u32 %v7334_v24, 16  ;;  %6013 = vmatprep.subr.bf16.mxu1 %v6950_v63  ;;  %999 = vst [vmem:[#allocation2 + $0x34] sm:$0xf] %v721_v1  ;;  %v5426_v7 = vpack.c.bf16 %v421_v56, %v421_v56  ;;  %v353_v21 = vmul.f32 %v5504_v18, %v7135_v13 }
  0x43   : > { %6266 = vmatpush3.bf16.msra.mxu0 %v6935_v8  ;;  %1002 = vst [vmem:[#allocation2 + $0x38] sm:$0x1] %v1001_v5  ;;  %v724_v9 = vshrl.u32 %v5425_v61, 16  ;;  %v727_v10 = vshll.u32 %v5425_v61, 16  ;;  %v6942_v8 = vld [vmem:[%s8531_s3 + $0x158] sm:$0xff]   ;;  %v422_v11 = vmax.f32 %v390_v62, 0.0  ;;  %v354_v22 = vmul.f32 %v5507_v0, %v7135_v13 }
  0x44   : > { %6267 = vmatprep.subr.bf16.mxu0 %v6939_v38  ;;  %v2841_v12 = vrot.slane %v2839_v2, 1  ;;  %v1098_v20 = vld [vmem:[#allocation2 + $0x2c] sm:$0xf]  ;;  %v477_v16 = vsel %vm7144_vm4, 0, %v476_v57  ;;  %v1099_v25 = vld [vmem:[#allocation2 + $0x30] sm:$0xf]  ;;  %v391_v53 = vadd.f32 %v7140_v14, %v353_v21 }
  0x45   : > { %v7358_v26 = vcombine.low %v1097_v47, %v1098_v20  ;;  %v726_v15 = vrot.slane %v724_v9, 7  ;;  %v732_v27 = vshrl.u32 %v5426_v7, 16  ;;  %v735_v28 = vshll.u32 %v5426_v7, 16  ;;  %478 = vst [vmem:[#allocation2 + $0x54] sm:$0x1] %v477_v16  ;;  %6014 = vmatpush3.bf16.msra.mxu1 %v6950_v63  ;;  %v6965_v47 = vld [vmem:[%s8531_s3 + $0x30] sm:$0xff]  }
  0x46   : > { %v2842_v59 = vsel %vm1298_vm8, %v2837_v50, %v2841_v12  ;;  %v7361_v18 = vcombine.low %v1098_v20, %v1099_v25  ;;  %v2845_v29 = vor.u32 %v2843_v4, %v2841_v12  ;;  %v7363_v31 = vpack.c.bf16 %v422_v11, %v422_v11  ;;  %v1007_v37 = vld [vmem:[#allocation2 + $0x44] sm:$0x1]  ;;  %6015 = vmatprep.subr.bf16.mxu1 %v6955_v60  ;;  %v524_v4 = vld [vmem:[#allocation2 + $0x50] sm:$0xf]  ;;  %v6947_v5 = vld [vmem:[%s8531_s3 + $0x168] sm:$0xff]  }
  0x47   : > { %6268 = vmatpush3.bf16.msra.mxu0 %v6939_v38  ;;  %6219 = vmatprep.mubr.bf16.mxu0 %v2842_v59  ;;  %v1339_v33 = vshll.u32 %v7358_v26, 16  ;;  %v1343_v34 = vshrl.u32 %v7358_v26, 16  ;;  %v729_v35 = vor.u32 %v727_v10, %v726_v15  ;;  %v730_v36 = vrot.slane %v726_v15, 4  ;;  %v6944_v38 = vld [vmem:[%s8531_s3 + $0x160] sm:$0xff]   ;;  %v1010_v21 = vld [vmem:[#allocation2 + $0x48] sm:$0xf] }
  0x48   : > { %8585 = vst [vmem:[#allocation8_spill] sm:$0xff] %v7361_v18  ;;  %6269 = vmatprep.subr.bf16.mxu0 %v6942_v8  ;;  %v2847_v43 = vshll.u32 %v7361_v18, 16  ;;  %v2851_v44 = vshrl.u32 %v7361_v18, 16  ;;  %v734_v45 = vrot.slane %v732_v27, 7  ;;  %v741_v63 = vshrl.u32 %v7363_v31, 16 }
  0x49   : > { %v1341_v50 = vrot.slane %v1339_v33, 1  ;;  %v1004_v51 = vsel %vm7154_vm5, %v729_v35, %v1003_v30  ;;  %v744_v52 = vshll.u32 %v7363_v31, 16  ;;  %6016 = vmatpush3.bf16.msra.mxu1 %v6955_v60  ;;  %v1100_v54 = vld [vmem:[#allocation2 + $0x34] sm:$0xf]  ;;  %v392_v62 = vadd.f32 %v7140_v14, %v354_v22  ;;  %v5631_v22 = vld [vmem:[%s7124_s25 + $0x38] sm:$0xff]  }
  0x4a   : > { %v2849_v55 = vrot.slane %v2847_v43, 1  ;;  %v1101_v56 = vld [vmem:[#allocation2 + $0x38] sm:$0xf]  ;;  %v737_v57 = vor.u32 %v735_v28, %v734_v45  ;;  %v739_v61 = vrot.slane %v734_v45, 4  ;;  %1005 = vst [vmem:[#allocation2 + $0x3c] sm:$0xf] %v1004_v51  ;;  %6017 = vmatprep.subr.bf16.mxu1 %v6959_v32  ;;  %v7384_v0 = vcombine.low %v1099_v25, %v1100_v54 }
  0x4b   : > { %6270 = vmatpush3.bf16.msra.mxu0 %v6942_v8  ;;  %v7388_v2 = vsel %vm1298_vm8, %v7336_v58, %v1341_v50  ;;  %v7390_v1 = vcombine.low %v1100_v54, %v1101_v56  ;;  %v5508_v7 = vunpack.c.h.bf16 %v7323_v46  ;;  %v1345_v10 = vor.u32 %v1343_v34, %v1341_v50  ;;  %v6969_v30 = vld [vmem:[%s8531_s3 + $0x38] sm:$0xff]   ;;  %v6951_v35 = vld [vmem:[%s8531_s3 + $0x170] sm:$0xff]  }
  0x4c   : > { %8586 = vst [vmem:[#allocation9_spill] sm:$0xff] %v7388_v2  ;;  %6271 = vmatprep.subr.bf16.mxu0 %v6944_v38  ;;  %v2850_v9 = vsel %vm1298_vm8, %v2845_v29, %v2849_v55  ;;  %5967 = vmatprep.mubr.bf16.mxu1 %v7388_v2  ;;  %v738_v58 = vsel %vm7204_vm7, %v730_v36, %v737_v57  ;;  %v1347_v11 = vshll.u32 %v7384_v0, 16  ;;  %v7406_v16 = vrot.slane %v741_v63, 7 }
  0x4d   : > { %8587 = vst [vmem:[#allocation10_spill] sm:$0xff] %v7390_v1  ;;  %v1008_v8 = vsel %vm7144_vm4, %v739_v61, %v1007_v37  ;;  %6220 = vmatmul.mubr.bf16.gmra.mrb[4].mxu0 %v2850_v9  ;;  %v2853_v12 = vor.u32 %v2851_v44, %v2849_v55  ;;  %v2855_v20 = vshll.u32 %v7390_v1, 16  ;;  %1006 = vst [vmem:[#allocation2 + $0x40] sm:$0xf] %v738_v58  ;;  %v2859_v46 = vshrl.u32 %v7390_v1, 16 }
  0x4e   : > { %1009 = vst [vmem:[#allocation2 + $0x44] sm:$0x1] %v1008_v8  ;;  %6018 = vmatpush3.bf16.msra.mxu1 %v6959_v32  ;;  %v423_v60 = vmax.f32 %v391_v53, 0.0  ;;  %v424_v25 = vmax.f32 %v392_v62, 0.0  ;;  %v525_v15 = vsel %vm7154_vm5, 0, %v524_v4  ;;  %v1349_v27 = vrot.slane %v1347_v11, 1 }
  0x4f   : > { %6272 = vmatpush3.bf16.msra.mxu0 %v6944_v38  ;;  %6019 = vmatprep.subr.bf16.mxu1 %v6965_v47  ;;  %v2857_v28 = vrot.slane %v2855_v20, 1  ;;  %v1351_v59 = vshrl.u32 %v7384_v0, 16  ;;  %526 = vst [vmem:[#allocation2 + $0x50] sm:$0xf] %v525_v15  ;;  %v355_v29 = vmul.f32 %v5508_v7, %v7135_v13  ;;  %v746_v31 = vor.u32 %v744_v52, %v7406_v16  ;;  %v1017_v11 = vld [vmem:[#allocation2 + $0x54] sm:$0xf] }
  0x50   : > { %6273 = vmatprep.subr.bf16.mxu0 %v6947_v5  ;;  %v5428_v32 = vpack.c.bf16 %v423_v60, %v423_v60  ;;  %v5429_v33 = vpack.c.bf16 %v424_v25, %v424_v25  ;;  %v5511_v34 = vunpack.c.l.bf16 %v5631_v22  ;;  %v7420_v36 = vsel %vm1298_vm8, %v1345_v10, %v1349_v27 }
  0x51   : > { %8588 = vst [vmem:[#allocation11_spill] sm:$0xff] %v7420_v36  ;;  %v2858_v37 = vsel %vm1298_vm8, %v2853_v12, %v2857_v28  ;;  %v1102_v38 = vld [vmem:[#allocation2 + $0x3c] sm:$0xf]  ;;  %v7423_v43 = vor.u32 %v2859_v46, %v2857_v28  ;;  %v747_v44 = vrot.slane %v7406_v16, 4  ;;  %5968 = vmatmul.mubr.bf16.gmra.mrb[8].mxu1 %v7420_v36  ;;  %v1011_v63 = vsel %vm7154_vm5, %v746_v31, %v1010_v21  ;;  %v536_v36 = vld [vmem:[#allocation2 + $0x80] sm:$0xf] }
  0x52   : > { %6020 = vmatpush3.bf16.msra.mxu1 %v6965_v47  ;;  %6223 = vmatprep.mubr.bf16.mxu0 %v2858_v37  ;;  %v7427_v45 = vcombine.low %v1101_v56, %v1102_v38  ;;  %v749_v50 = vshrl.u32 %v5428_v32, 16  ;;  %v752_v51 = vshll.u32 %v5428_v32, 16  ;;  %1012 = vst [vmem:[#allocation2 + $0x48] sm:$0xf] %v1011_v63  ;;  %v758_v52 = vshrl.u32 %v5429_v33, 16  ;;  %v6954_v47 = vld [vmem:[%s8531_s3 + $0x178] sm:$0xff]  }
  0x53   : > { %v761_v53 = vshll.u32 %v5429_v33, 16  ;;  %6274 = vmatpush3.bf16.msra.mxu0 %v6947_v5  ;;  %v393_v54 = vadd.f32 %v7140_v14, %v355_v29  ;;  %v5512_v55 = vunpack.c.h.bf16 %v5631_v22  ;;  %6021 = vmatprep.subr.bf16.mxu1 %v6969_v30  ;;  %v6973_v56 = vld [vmem:[%s8531_s3 + $0x80] sm:$0xff]   ;;  %v1353_v62 = vor.u32 %v1351_v59, %v1349_v27  ;;  %v530_v37 = vld [vmem:[#allocation2 + $0x68] sm:$0xf] }
  0x54   : > { %v1103_v57 = vld [vmem:[#allocation2 + $0x40] sm:$0xf]  ;;  %v1355_v4 = vshll.u32 %v7427_v45, 16  ;;  %v1359_v7 = vshrl.u32 %v7427_v45, 16  ;;  %v356_v5 = vmul.f32 %v5511_v34, %v7135_v13  ;;  %6275 = vmatprep.subr.bf16.mxu0 %v6951_v35  ;;  %v751_v58 = vrot.slane %v749_v50, 7 }
  0x55   : > { %v1104_v61 = vld [vmem:[#allocation2 + $0x44] sm:$0xf]  ;;  %v7443_v10 = vcombine.low %v1102_v38, %v1103_v57  ;;  %v7445_v8 = vrot.slane %v758_v52, 7  ;;  %v425_v46 = vmax.f32 %v393_v54, 0.0  ;;  %v357_v21 = vmul.f32 %v5512_v55, %v7135_v13 }
  0x56   : > { %v7441_v9 = vcombine.low %v1103_v57, %v1104_v61  ;;  %6022 = vmatpush3.bf16.msra.mxu1 %v6969_v30  ;;  %v1357_v12 = vrot.slane %v1355_v4, 1  ;;  %v1014_v20 = vld [vmem:[#allocation2 + $0x50] sm:$0x1]  ;;  %v394_v22 = vadd.f32 %v7140_v14, %v356_v5  ;;  %v754_v15 = vor.u32 %v752_v51, %v751_v58  ;;  %v479_v30 = vld [vmem:[#allocation2 + $0x60] sm:$0x1] }
  0x57   : > { %8589 = vst [vmem:[#allocation12_spill] sm:$0xff] %v7443_v10  ;;  %6071 = vmatprep.subr.bf16.mxu1 %v6973_v56  ;;  %v2863_v16 = vshll.u32 %v7443_v10, 16  ;;  %v2867_v25 = vshrl.u32 %v7443_v10, 16  ;;  %6276 = vmatpush3.bf16.msra.mxu0 %v6951_v35  ;;  %v756_v59 = vrot.slane %v751_v58, 4  ;;  %v763_v29 = vor.u32 %v761_v53, %v7445_v8  ;;  %v7457_v13 = vld [vmem:[%s7124_s25 + $0x40] sm:$0xff]  }
  0x58   : > { %v1363_v60 = vshll.u32 %v7441_v9, 16  ;;  %v7453_v27 = vsel %vm1298_vm8, %v1353_v62, %v1357_v12  ;;  %v1361_v28 = vor.u32 %v1359_v7, %v1357_v12  ;;  %6277 = vmatprep.subr.bf16.mxu0 %v6954_v47  ;;  %v755_v33 = vsel %vm7204_vm7, %v747_v44, %v754_v15  ;;  %v527_v35 = vld [vmem:[#allocation2 + $0x5c] sm:$0xf]  ;;  %v7466_v38 = vld [vmem:[%s8531_s3 + $0x180] sm:$0xff]   ;;  %v482_v57 = vld [vmem:[#allocation2 + $0x6c] sm:$0x1] }
  0x59   : > { %8590 = vst [vmem:[#allocation13_spill] sm:$0xff] %v7453_v27  ;;  %v2865_v31 = vrot.slane %v2863_v16, 1  ;;  %5971 = vmatprep.mubr.bf16.mxu1 %v7453_v27  ;;  %v1367_v34 = vshrl.u32 %v7441_v9, 16  ;;  %v1105_v63 = vld [vmem:[#allocation2 + $0x48] sm:$0xf]  ;;  %v1015_v50 = vsel %vm7144_vm4, %v756_v59, %v1014_v20  ;;  %v1018_v51 = vsel %vm7154_vm5, %v763_v29, %v1017_v11 }
  0x5a   : > { %v1365_v32 = vrot.slane %v1363_v60, 1  ;;  %1013 = vst [vmem:[#allocation2 + $0x4c] sm:$0xf] %v755_v33  ;;  %v5430_v52 = vpack.c.bf16 %v425_v46, %v425_v46  ;;  %v764_v44 = vrot.slane %v7445_v8, 4  ;;  %v7478_v55 = vcombine.low %v1104_v61, %v1105_v63  ;;  %1016 = vst [vmem:[#allocation2 + $0x50] sm:$0x1] %v1015_v50 }
  0x5b   : > { %v2866_v53 = vsel %vm1298_vm8, %v7423_v43, %v2865_v31  ;;  %1019 = vst [vmem:[#allocation2 + $0x54] sm:$0xf] %v1018_v51  ;;  %v5515_v56 = vunpack.c.l.bf16 %v7457_v13  ;;  %6278 = vmatpush3.bf16.msra.mxu0 %v6954_v47  ;;  %v2869_v62 = vor.u32 %v2867_v25, %v2865_v31  ;;  %v395_v5 = vadd.f32 %v7140_v14, %v357_v21  ;;  %v7496_v25 = vld [vmem:[%s8529_s1] ss:$0 sm:$0xff]  ;;  %v488_v27 = vld [vmem:[#allocation2 + $0x84] sm:$0x1] }
  0x5c   : > { %v7476_v54 = vsel %vm1298_vm8, %v1361_v28, %v1365_v32  ;;  %8592 = vst [vmem:[#allocation15_spill] sm:$0xff] %v7478_v55  ;;  %6224 = vmatmul.mubr.bf16.gmra.mrb[8].mxu0 %v2866_v53  ;;  %v766_v4 = vshrl.u32 %v5430_v52, 16  ;;  %v769_v7 = vshll.u32 %v5430_v52, 16  ;;  %v2871_v43 = vshll.u32 %v7478_v55, 16  ;;  %6327 = vmatprep.subr.bf16.mxu0 %v7466_v38 }
  0x5d   : > { %8591 = vst [vmem:[#allocation14_spill] sm:$0xff] %v7476_v54  ;;  %5972 = vmatmul.mubr.bf16.gmra.mrb[12].mxu1 %v7476_v54  ;;  %v1369_v58 = vor.u32 %v1367_v34, %v1365_v32  ;;  %v426_v8 = vmax.f32 %v394_v22, 0.0  ;;  %v480_v61 = vsel %vm7144_vm4, 0, %v479_v30  ;;  %v427_v12 = vmax.f32 %v395_v5, 0.0 }
  0x5e   : > { %v768_v11 = vrot.slane %v766_v4, 7  ;;  %481 = vst [vmem:[#allocation2 + $0x60] sm:$0x1] %v480_v61  ;;  %v528_v47 = vsel %vm7154_vm5, 0, %v527_v35  ;;  %v531_v20 = vsel %vm7154_vm5, 0, %v530_v37  ;;  %v2873_v46 = vrot.slane %v2871_v43, 1 }
  0x5f   : > { %v2875_v14 = vshrl.u32 %v7478_v55, 16  ;;  %529 = vst [vmem:[#allocation2 + $0x5c] sm:$0xf] %v528_v47  ;;  %v5431_v21 = vpack.c.bf16 %v426_v8, %v426_v8  ;;  %532 = vst [vmem:[#allocation2 + $0x68] sm:$0xf] %v531_v20  ;;  %v5516_v22 = vunpack.c.h.bf16 %v7457_v13  ;;  %v5432_v60 = vpack.c.bf16 %v427_v12, %v427_v12 }
  0x60   : > { %v771_v16 = vor.u32 %v769_v7, %v768_v11  ;;  %v358_v15 = vmul.f32 %v7496_v25, %v5515_v56  ;;  %v483_v28 = vsel %vm7144_vm4, 0, %v482_v57  ;;  %v2874_v59 = vsel %vm1298_vm8, %v2869_v62, %v2873_v46  ;;  %v7519_v20 = vld [vmem:[%s8530_s2] ss:$0 sm:$0xff] }
  0x61   : > { %v1106_v29 = vld [vmem:[#allocation2 + $0x4c] sm:$0xf]  ;;  %v773_v30 = vrot.slane %v768_v11, 4  ;;  %v775_v31 = vshrl.u32 %v5431_v21, 16  ;;  %v778_v32 = vshll.u32 %v5431_v21, 16  ;;  %6227 = vmatprep.mubr.bf16.mxu0 %v2874_v59  ;;  %v783_v37 = vshrl.u32 %v5432_v60, 16 }
  0x62   : > { %484 = vst [vmem:[#allocation2 + $0x6c] sm:$0x1] %v483_v28  ;;  %v1107_v13 = vld [vmem:[#allocation2 + $0x50] sm:$0xf]  ;;  %v1108_v33 = vld [vmem:[#allocation2 + $0x54] sm:$0xf]  ;;  %v7502_v34 = vcombine.low %v1105_v63, %v1106_v29  ;;  %v772_v35 = vsel %vm7204_vm7, %v764_v44, %v771_v16  ;;  %v2877_v53 = vor.u32 %v2875_v14, %v2873_v46  ;;  %v359_v63 = vmul.f32 %v7496_v25, %v5516_v22 }
  0x63   : > { %v786_v50 = vshll.u32 %v5432_v60, 16  ;;  %v7506_v51 = vcombine.low %v1107_v13, %v1108_v33  ;;  %v7508_v52 = vcombine.low %v1106_v29, %v1107_v13  ;;  %1020 = vst [vmem:[#allocation2 + $0x58] sm:$0xf] %v772_v35  ;;  %v777_v56 = vrot.slane %v775_v31, 7  ;;  %v533_v14 = vld [vmem:[#allocation2 + $0x74] sm:$0xf] }
  0x64   : > { %v1371_v57 = vshll.u32 %v7502_v34, 16  ;;  %v1375_v62 = vshrl.u32 %v7502_v34, 16  ;;  %v785_v4 = vrot.slane %v783_v37, 7  ;;  %v396_v46 = vadd.f32 %v7519_v20, %v358_v15  ;;  %v5633_v37 = vld [vmem:[%s7124_s25 + $0x48] sm:$0xff]  }
  0x65   : > { %8593 = vst [vmem:[#allocation16_spill] sm:$0xff] %v7508_v52  ;;  %v2879_v7 = vshll.u32 %v7508_v52, 16  ;;  %v1379_v44 = vshll.u32 %v7506_v51, 16  ;;  %v2883_v5 = vshrl.u32 %v7508_v52, 16  ;;  %v780_v43 = vor.u32 %v778_v32, %v777_v56  ;;  %v1024_v8 = vld [vmem:[#allocation2 + $0x60] sm:$0xf] }
  0x66   : > { %v1373_v61 = vrot.slane %v1371_v57, 1  ;;  %v781_v11 = vrot.slane %v777_v56, 4  ;;  %v788_v12 = vor.u32 %v786_v50, %v785_v4  ;;  %v1021_v47 = vld [vmem:[#allocation2 + $0x5c] sm:$0x1]  ;;  %v1028_v28 = vld [vmem:[#allocation2 + $0x68] sm:$0x1]  ;;  %v397_v35 = vadd.f32 %v7519_v20, %v359_v63 }
  0x67   : > { %v2881_v21 = vrot.slane %v2879_v7, 1  ;;  %v1381_v22 = vrot.slane %v1379_v44, 1  ;;  %v1022_v16 = vsel %vm7144_vm4, %v773_v30, %v1021_v47  ;;  %v1025_v60 = vsel %vm7154_vm5, %v780_v43, %v1024_v8 }
  0x68   : > { %v7527_v59 = vsel %vm1298_vm8, %v1369_v58, %v1373_v61  ;;  %v1377_v29 = vor.u32 %v1375_v62, %v1373_v61  ;;  %v789_v31 = vsel %vm7204_vm7, %v781_v11, %v788_v12  ;;  %1023 = vst [vmem:[#allocation2 + $0x5c] sm:$0x1] %v1022_v16  ;;  %1026 = vst [vmem:[#allocation2 + $0x60] sm:$0xf] %v1025_v60  ;;  %v790_v15 = vrot.slane %v785_v4, 4  ;;  %v7550_v61 = vld [vmem:[%s7124_s25 + $0x50] sm:$0xff]  }
  0x69   : > { %8594 = vst [vmem:[#allocation17_spill] sm:$0xff] %v7527_v59  ;;  %v2882_v32 = vsel %vm1298_vm8, %v2877_v53, %v2881_v21  ;;  %5975 = vmatprep.mubr.bf16.mxu1 %v7527_v59  ;;  %v2885_v13 = vor.u32 %v2883_v5, %v2881_v21  ;;  %1027 = vst [vmem:[#allocation2 + $0x64] sm:$0xf] %v789_v31  ;;  %v1383_v30 = vshrl.u32 %v7506_v51, 16  ;;  %v428_v57 = vmax.f32 %v396_v46, 0.0 }
  0x6a   : > { %6228 = vmatmul.mubr.bf16.gmra.mrb[12].mxu0 %v2882_v32  ;;  %v7537_v58 = vsel %vm1298_vm8, %v1377_v29, %v1381_v22  ;;  %v1109_v50 = vld [vmem:[#allocation2 + $0x58] sm:$0xf]  ;;  %v1029_v56 = vsel %vm7144_vm4, %v790_v15, %v1028_v28  ;;  %v534_v53 = vsel %vm7154_vm5, 0, %v533_v14  ;;  %v429_v4 = vmax.f32 %v397_v35, 0.0 }
  0x6b   : > { %8595 = vst [vmem:[#allocation18_spill] sm:$0xff] %v7537_v58  ;;  %5976 = vmatmul.mubr.bf16.gmra.mrb[16].mxu1 %v7537_v58  ;;  %v7544_v62 = vcombine.low %v1108_v33, %v1109_v50  ;;  %1030 = vst [vmem:[#allocation2 + $0x68] sm:$0x1] %v1029_v56  ;;  %v3341_v63 = vrot.slane %v7255_v17, 1  ;;  %v8535_v7 = vrot.slane %v7272_v42, 1  ;;  %v5433_v44 = vpack.c.bf16 %v428_v57, %v428_v57 }
  0x6c   : > { %535 = vst [vmem:[#allocation2 + $0x74] sm:$0xf] %v534_v53  ;;  %v5519_v43 = vunpack.c.l.bf16 %v5633_v37  ;;  %v5520_v8 = vunpack.c.h.bf16 %v5633_v37  ;;  %v1385_v33 = vor.u32 %v1383_v30, %v1381_v22  ;;  %v5434_v47 = vpack.c.bf16 %v429_v4, %v429_v4 }
  0x6d   : > { %8596 = vst [vmem:[#allocation19_spill] sm:$0xff] %v7544_v62  ;;  %v2887_v11 = vshll.u32 %v7544_v62, 16  ;;  %v2891_v12 = vshrl.u32 %v7544_v62, 16  ;;  %v792_v46 = vshrl.u32 %v5433_v44, 16  ;;  %v795_v14 = vshll.u32 %v5433_v44, 16 }
  0x6e   : > { %v7557_v21 = vsel %vm2074_vm9, %v3341_v63, %v8535_v7  ;;  %v360_v16 = vmul.f32 %v7496_v25, %v5519_v43  ;;  %v800_v31 = vshrl.u32 %v5434_v47, 16  ;;  %v361_v15 = vmul.f32 %v7496_v25, %v5520_v8  ;;  %v1031_v44 = vld [vmem:[#allocation2 + $0x6c] sm:$0xf] }
  0x6f   : > { %v2889_v60 = vrot.slane %v2887_v11, 1  ;;  %v1110_v28 = vld [vmem:[#allocation2 + $0x5c] sm:$0xf]  ;;  %v1111_v29 = vld [vmem:[#allocation2 + $0x60] sm:$0xf]  ;;  %v5523_v32 = vunpack.c.l.bf16 %v7550_v61  ;;  %v794_v37 = vrot.slane %v792_v46, 7 }
  0x70   : > { %v1112_v35 = vld [vmem:[#allocation2 + $0x64] sm:$0xf]  ;;  %v7562_v22 = vcombine.low %v1109_v50, %v1110_v28  ;;  %v7564_v30 = vcombine.low %v1110_v28, %v1111_v29  ;;  %v803_v56 = vshll.u32 %v5434_v47, 16  ;;  %v802_v63 = vrot.slane %v800_v31, 7 }
  0x71   : > { %v2890_v57 = vsel %vm1298_vm8, %v2885_v13, %v2889_v60  ;;  %v7567_v53 = vcombine.low %v1111_v29, %v1112_v35  ;;  %v2893_v4 = vor.u32 %v2891_v12, %v2889_v60  ;;  %v797_v46 = vor.u32 %v795_v14, %v794_v37  ;;  %v485_v60 = vld [vmem:[#allocation2 + $0x78] sm:$0x1] }
  0x72   : > { %8597 = vst [vmem:[#allocation20_spill] sm:$0xff] %v7564_v30  ;;  %6231 = vmatprep.mubr.bf16.mxu0 %v2890_v57  ;;  %v2895_v43 = vshll.u32 %v7564_v30, 16  ;;  %v1387_v8 = vshll.u32 %v7562_v22, 16  ;;  %v1391_v11 = vshrl.u32 %v7562_v22, 16  ;;  %v7572_v50 = vld [vmem:[#allocation2 + $0x68] sm:$0xf]  ;;  %v805_v57 = vor.u32 %v803_v56, %v802_v63 }
  0x73   : > { %v2899_v28 = vshrl.u32 %v7564_v30, 16  ;;  %v1395_v47 = vshll.u32 %v7567_v53, 16  ;;  %v7577_v13 = vcombine.low %v1112_v35, %v7572_v50  ;;  %v798_v12 = vrot.slane %v794_v37, 4  ;;  %v1035_v5 = vld [vmem:[#allocation2 + $0x74] sm:$0x1] }
  0x74   : > { %v2897_v29 = vrot.slane %v2895_v43, 1  ;;  %v1389_v31 = vrot.slane %v1387_v8, 1  ;;  %v807_v7 = vrot.slane %v802_v63, 4  ;;  %v1032_v59 = vsel %vm7154_vm5, %v797_v46, %v1031_v44 }
  0x75   : > { %v1397_v17 = vrot.slane %v1395_v47, 1  ;;  %v2903_v58 = vshll.u32 %v7577_v13, 16  ;;  %v2907_v54 = vshrl.u32 %v7577_v13, 16  ;;  %1033 = vst [vmem:[#allocation2 + $0x6c] sm:$0xf] %v1032_v59  ;;  %v806_v44 = vsel %vm7204_vm7, %v798_v12, %v805_v57 }
  0x76   : > { %v2898_v35 = vsel %vm1298_vm8, %v2893_v4, %v2897_v29  ;;  %v7585_v14 = vsel %vm1298_vm8, %v1385_v33, %v1389_v31  ;;  %v1393_v37 = vor.u32 %v1391_v11, %v1389_v31  ;;  %v2901_v56 = vor.u32 %v2899_v28, %v2897_v29  ;;  %v539_v4 = vld [vmem:[#allocation2 + $0x8c] sm:$0xf]  ;;  %1034 = vst [vmem:[#allocation2 + $0x70] sm:$0xf] %v806_v44  ;;  %v7601_v28 = vld [vmem:[%s7124_s25 + $0x58] sm:$0xff]  }
  0x77   : > { %8598 = vst [vmem:[#allocation21_spill] sm:$0xff] %v7585_v14  ;;  %6232 = vmatmul.mubr.bf16.gmra.mrb[16].mxu0 %v2898_v35  ;;  %5979 = vmatprep.mubr.bf16.mxu1 %v7585_v14  ;;  %v2905_v63 = vrot.slane %v2903_v58, 1  ;;  %v1036_v43 = vsel %vm7144_vm4, %v807_v7, %v1035_v5  ;;  %v1399_v8 = vshrl.u32 %v7567_v53, 16  ;;  %v398_v59 = vadd.f32 %v7519_v20, %v360_v16 }
  0x78   : > { %v7594_v33 = vsel %vm1298_vm8, %v1393_v37, %v1397_v17  ;;  %1037 = vst [vmem:[#allocation2 + $0x74] sm:$0x1] %v1036_v43  ;;  %v399_v11 = vadd.f32 %v7519_v20, %v361_v15  ;;  %v486_v58 = vsel %vm7144_vm4, 0, %v485_v60  ;;  %v8600_v47 = vrot.slane %v7275_v49, 1 }
  0x79   : > { %8599 = vst [vmem:[#allocation22_spill] sm:$0xff] %v7594_v33  ;;  %5980 = vmatmul.mubr.bf16.gmra.mrb[20].mxu1 %v7594_v33  ;;  %v2906_v7 = vsel %vm1298_vm8, %v2901_v56, %v2905_v63  ;;  %v7605_v5 = vor.u32 %v2907_v54, %v2905_v63  ;;  %v8601_v46 = vrot.slane %v7272_v42, 1  ;;  %487 = vst [vmem:[#allocation2 + $0x78] sm:$0x1] %v486_v58  ;;  %v430_v15 = vmax.f32 %v398_v59, 0.0 }
  0x7a   : > { %v362_v16 = vmul.f32 %v7496_v25, %v5523_v32  ;;  %6235 = vmatprep.mubr.bf16.mxu0 %v2906_v7  ;;  %v431_v60 = vmax.f32 %v399_v11, 0.0  ;;  %v489_v29 = vsel %vm7144_vm4, 0, %v488_v27  ;;  %v537_v54 = vsel %vm7154_vm5, 0, %v536_v36  ;;  %v491_v33 = vld [vmem:[#allocation2 + $0x90] sm:$0x1] }
  0x7b   : > { %v7612_v12 = vsel %vm2074_vm9, %v8601_v46, %v8600_v47  ;;  %490 = vst [vmem:[#allocation2 + $0x84] sm:$0x1] %v489_v29  ;;  %538 = vst [vmem:[#allocation2 + $0x80] sm:$0xf] %v537_v54  ;;  %v3346_v57 = vrot.slane %v7334_v24, 1  ;;  %v8542_v35 = vrot.slane %v7361_v18, 1  ;;  %v5524_v37 = vunpack.c.h.bf16 %v7550_v61 }
  0x7c   : > { %v400_v31 = vadd.f32 %v7519_v20, %v362_v16  ;;  %v1401_v32 = vor.u32 %v1399_v8, %v1397_v17  ;;  %v5435_v56 = vpack.c.bf16 %v430_v15, %v430_v15  ;;  %v5436_v63 = vpack.c.bf16 %v431_v60, %v431_v60  ;;  %v1114_v27 = vld [vmem:[#allocation2 + $0x6c] sm:$0xf] }
  0x7d   : > { %v540_v44 = vsel %vm7154_vm5, 0, %v539_v4  ;;  %v8602_v36 = vmov %v8600_v47  ;;  %v363_v11 = vmul.f32 %v7496_v25, %v5524_v37  ;;  %v5527_v58 = vunpack.c.l.bf16 %v7601_v28  ;;  %v1115_v7 = vld [vmem:[#allocation2 + $0x70] sm:$0xf] }
  0x7e   : > { %v432_v43 = vmax.f32 %v400_v31, 0.0  ;;  %v7628_v59 = vsel %vm2074_vm9, %v8602_v36, %v3346_v57  ;;  %541 = vst [vmem:[#allocation2 + $0x8c] sm:$0xf] %v540_v44  ;;  %v7633_v61 = vcombine.low %v7572_v50, %v1114_v27  ;;  %v809_v17 = vshrl.u32 %v5435_v56, 16 }
  0x7f   : > { %v817_v8 = vshrl.u32 %v5436_v63, 16  ;;  %v7638_v4 = vsel %vm2074_vm9, %v3346_v57, %v8542_v35  ;;  %v7640_v47 = vld [vmem:[#allocation2 + $0x74] sm:$0xf]  ;;  %v812_v46 = vshll.u32 %v5435_v56, 16  ;;  %v820_v16 = vshll.u32 %v5436_v63, 16 }
  0x80   : > { %v5437_v15 = vpack.c.bf16 %v432_v43, %v432_v43  ;;  %v401_v60 = vadd.f32 %v7519_v20, %v363_v11  ;;  %v7644_v29 = vcombine.low %v1115_v7, %v7640_v47  ;;  %v7646_v50 = vcombine.low %v1114_v27, %v1115_v7  ;;  %v1038_v44 = vld [vmem:[#allocation2 + $0x78] sm:$0xf] }
  0x81   : > { %v1403_v54 = vshll.u32 %v7633_v61, 16  ;;  %v1407_v31 = vshrl.u32 %v7633_v61, 16  ;;  %v811_v37 = vrot.slane %v809_v17, 7  ;;  %v819_v57 = vrot.slane %v817_v8, 7 }
  0x82   : > { %v826_v36 = vshrl.u32 %v5437_v15, 16  ;;  %v5528_v35 = vunpack.c.h.bf16 %v7601_v28  ;;  %v2911_v56 = vshll.u32 %v7646_v50, 16  ;;  %v1411_v43 = vshll.u32 %v7644_v29, 16  ;;  %v1042_v24 = vld [vmem:[#allocation2 + $0x80] sm:$0x1] }
  0x83   : > { %v1405_v63 = vrot.slane %v1403_v54, 1  ;;  %v829_v11 = vshll.u32 %v5437_v15, 16  ;;  %v814_v27 = vor.u32 %v812_v46, %v811_v37  ;;  %v815_v7 = vrot.slane %v811_v37, 4  ;;  %v1045_v2 = vld [vmem:[#allocation2 + $0x84] sm:$0xf] }
  0x84   : > { %v822_v49 = vor.u32 %v820_v16, %v819_v57  ;;  %v824_v42 = vrot.slane %v819_v57, 4  ;;  %v7653_v14 = vrot.slane %v2911_v56, 1  ;;  %v1413_v28 = vrot.slane %v1411_v43, 1  ;;  %v5636_v37 = vld [vmem:[%s7124_s25 + $0x60] sm:$0xff]  }
  0x85   : > { %v7656_v17 = vsel %vm1298_vm8, %v1401_v32, %v1405_v63  ;;  %v1409_v8 = vor.u32 %v1407_v31, %v1405_v63  ;;  %v1039_v46 = vsel %vm7154_vm5, %v814_v27, %v1038_v44  ;;  %v7663_v54 = vrot.slane %v826_v36, 7  ;;  %v494_v44 = vld [vmem:[#allocation2 + $0x9c] sm:$0x1] }
  0x86   : > { %8603 = vst [vmem:[#allocation23_spill] sm:$0xff] %v7653_v14  ;;  %8604 = vst [vmem:[#allocation24_spill] sm:$0xff] %v7656_v17  ;;  %5983 = vmatprep.mubr.bf16.mxu1 %v7656_v17  ;;  %v823_v15 = vsel %vm7204_vm7, %v815_v7, %v822_v49  ;;  %v1043_v16 = vsel %vm7144_vm4, %v824_v42, %v1042_v24  ;;  %v2914_v32 = vsel %vm1298_vm8, %v7605_v5, %v7653_v14 }
  0x87   : > { %v7672_v31 = vsel %vm1298_vm8, %v1409_v8, %v1413_v28  ;;  %1040 = vst [vmem:[#allocation2 + $0x78] sm:$0xf] %v1039_v46  ;;  %1041 = vst [vmem:[#allocation2 + $0x7c] sm:$0xf] %v823_v15  ;;  %v1415_v49 = vshrl.u32 %v7644_v29, 16  ;;  %v433_v57 = vmax.f32 %v401_v60, 0.0  ;;  %6236 = vmatmul.mubr.bf16.gmra.mrb[20].mxu0 %v2914_v32  ;;  %v831_v42 = vor.u32 %v829_v11, %v7663_v54 }
  0x88   : > { %8605 = vst [vmem:[#allocation25_spill] sm:$0xff] %v7672_v31  ;;  %1044 = vst [vmem:[#allocation2 + $0x80] sm:$0x1] %v1043_v16  ;;  %5984 = vmatmul.mubr.bf16.gmra.mrb[24].mxu1 %v7672_v31  ;;  %v832_v24 = vrot.slane %v7663_v54, 4  ;;  %v364_v36 = vmul.f32 %v7496_v25, %v5527_v58  ;;  %v365_v5 = vmul.f32 %v7496_v25, %v5528_v35  ;;  %6279 = vmatprep.mubr.bf16.mxu0 %v7557_v21  ;;  %v542_v35 = vld [vmem:[#allocation2 + $0x98] sm:$0xf] }
  0x89   : > { %v5438_v56 = vpack.c.bf16 %v433_v57, %v433_v57  ;;  %v492_v63 = vsel %vm7144_vm4, 0, %v491_v33  ;;  %v3350_v60 = vrot.slane %v7390_v1, 1  ;;  %v8549_v43 = vrot.slane %v7443_v10, 1  ;;  %v545_v8 = vld [vmem:[#allocation2 + $0xa4] sm:$0xf] }
  0x8a   : > { %v1046_v27 = vsel %vm7154_vm5, %v831_v42, %v1045_v2  ;;  %v402_v11 = vadd.f32 %v7519_v20, %v364_v36  ;;  %v403_v7 = vadd.f32 %v7519_v20, %v365_v5  ;;  %493 = vst [vmem:[#allocation2 + $0x90] sm:$0x1] %v492_v63  ;;  %v5531_v58 = vunpack.c.l.bf16 %v5636_v37  ;;  %v1049_v16 = vld [vmem:[#allocation2 + $0x8c] sm:$0x1] }
  0x8b   : > { %v1417_v21 = vor.u32 %v1415_v49, %v1413_v28  ;;  %1047 = vst [vmem:[#allocation2 + $0x84] sm:$0xf] %v1046_v27  ;;  %v834_v15 = vshrl.u32 %v5438_v56, 16  ;;  %v837_v46 = vshll.u32 %v5438_v56, 16  ;;  %v8606_v33 = vrot.slane %v7361_v18, 1  ;;  %v6960_v28 = vld [vmem:[%s8531_s3 + $0x188] sm:$0xff]  }
  0x8c   : > { %v434_v32 = vmax.f32 %v402_v11, 0.0  ;;  %v435_v2 = vmax.f32 %v403_v7, 0.0  ;;  %v366_v57 = vmul.f32 %v7496_v25, %v5531_v58  ;;  %v495_v42 = vsel %vm7144_vm4, 0, %v494_v44 }
  0x8d   : > { %v7692_v54 = vsel %vm2074_vm9, %v8606_v33, %v3350_v60  ;;  %v836_v49 = vrot.slane %v834_v15, 7  ;;  %496 = vst [vmem:[#allocation2 + $0x9c] sm:$0x1] %v495_v42  ;;  %v543_v36 = vsel %vm7154_vm5, 0, %v542_v35  ;;  %v5532_v5 = vunpack.c.h.bf16 %v5636_v37  ;;  %v7722_v42 = vld [vmem:[%s7124_s25 + $0x68] sm:$0xff]  }
  0x8e   : > { %v546_v56 = vsel %vm7154_vm5, 0, %v545_v8  ;;  %v7704_v63 = vld [vmem:[#allocation2 + $0x78] sm:$0xf]  ;;  %v7706_v27 = vld [vmem:[#allocation2 + $0x7c] sm:$0xf]  ;;  %v5439_v44 = vpack.c.bf16 %v434_v32, %v434_v32  ;;  %v5440_v7 = vpack.c.bf16 %v435_v2, %v435_v2  ;;  %v7713_v58 = vsel %vm2074_vm9, %v3350_v60, %v8549_v43 }
  0x8f   : > { %v7708_v11 = vld [vmem:[#allocation2 + $0x80] sm:$0xf]  ;;  %v404_v35 = vadd.f32 %v7519_v20, %v366_v57  ;;  %544 = vst [vmem:[#allocation2 + $0x98] sm:$0xf] %v543_v36  ;;  %547 = vst [vmem:[#allocation2 + $0xa4] sm:$0xf] %v546_v56  ;;  %v7718_v37 = vcombine.low %v7704_v63, %v7706_v27  ;;  %v839_v8 = vor.u32 %v837_v46, %v836_v49  ;;  %6280 = vmatmul.mubr.bf16.vlgmr.msra.gmra.mrb[0].mxu0 %v7612_v12 }
  0x90   : > { %v841_v15 = vrot.slane %v836_v49, 4  ;;  %v367_v33 = vmul.f32 %v7496_v25, %v5532_v5  ;;  %v843_v32 = vshrl.u32 %v5439_v44, 16  ;;  %v846_v2 = vshll.u32 %v5439_v44, 16  ;;  %6328 = vmatpush3.bf16.msra.mxu0 %v7466_v38  ;;  %6283 = vmatprep.mubr.bf16.mxu0 %v7628_v59  ;;  %v6966_v44 = vld [vmem:[%s8531_s3 + $0x190] sm:$0xff]  }
  0x91   : > { %v851_v60 = vshrl.u32 %v5440_v7, 16  ;;  %v854_v43 = vshll.u32 %v5440_v7, 16  ;;  %v1419_v57 = vshll.u32 %v7718_v37, 16  ;;  %v1423_v36 = vshrl.u32 %v7718_v37, 16  ;;  %6329 = vmatprep.subr.bf16.mxu0 %v6960_v28 }
  0x92   : > { %v840_v46 = vsel %vm7204_vm7, %v832_v24, %v839_v8  ;;  %v1050_v49 = vsel %vm7144_vm4, %v841_v15, %v1049_v16  ;;  %v7733_v5 = vld [vmem:[#allocation2 + $0x84] sm:$0xf]  ;;  %v845_v12 = vrot.slane %v843_v32, 7  ;;  %v436_v38 = vmax.f32 %v404_v35, 0.0  ;;  %v1052_v16 = vld [vmem:[#allocation2 + $0x90] sm:$0xf] }
  0x93   : > { %1048 = vst [vmem:[#allocation2 + $0x88] sm:$0xf] %v840_v46  ;;  %1051 = vst [vmem:[#allocation2 + $0x8c] sm:$0x1] %v1050_v49  ;;  %v853_v56 = vrot.slane %v851_v60, 7  ;;  %v5535_v59 = vunpack.c.l.bf16 %v7722_v42  ;;  %v1421_v7 = vrot.slane %v1419_v57, 1  ;;  %v7741_v24 = vcombine.low %v7708_v11, %v7733_v5 }
  0x94   : > { %v405_v8 = vadd.f32 %v7519_v20, %v367_v33  ;;  %v848_v46 = vor.u32 %v846_v2, %v845_v12  ;;  %v849_v32 = vrot.slane %v845_v12, 4  ;;  %v5441_v35 = vpack.c.bf16 %v436_v38, %v436_v38  ;;  %6330 = vmatpush3.bf16.msra.mxu0 %v6960_v28  ;;  %v6970_v28 = vld [vmem:[%s8531_s3 + $0x198] sm:$0xff]  }
  0x95   : > { %8607 = vst [vmem:[#allocation26_spill] sm:$0xff] %v7741_v24  ;;  %v856_v60 = vor.u32 %v854_v43, %v853_v56  ;;  %v7746_v49 = vsel %vm1298_vm8, %v1417_v21, %v1421_v7  ;;  %v1425_v14 = vor.u32 %v1423_v36, %v1421_v7  ;;  %v1427_v1 = vshll.u32 %v7741_v24, 16  ;;  %6331 = vmatprep.subr.bf16.mxu0 %v6966_v44  ;;  %v497_v21 = vld [vmem:[#allocation2 + $0xa8] sm:$0x1] }
  0x96   : > { %8608 = vst [vmem:[#allocation27_spill] sm:$0xff] %v7746_v49  ;;  %v1431_v57 = vshrl.u32 %v7741_v24, 16  ;;  %v1056_v18 = vld [vmem:[#allocation2 + $0x98] sm:$0x1]  ;;  %5987 = vmatprep.mubr.bf16.mxu1 %v7746_v49  ;;  %v1053_v2 = vsel %vm7154_vm5, %v848_v46, %v1052_v16  ;;  %v858_v43 = vrot.slane %v853_v56, 4  ;;  %v860_v12 = vshrl.u32 %v5441_v35, 16 }
  0x97   : > { %v857_v33 = vsel %vm7204_vm7, %v849_v32, %v856_v60  ;;  %v1429_v36 = vrot.slane %v1427_v1, 1  ;;  %1054 = vst [vmem:[#allocation2 + $0x90] sm:$0xf] %v1053_v2  ;;  %v863_v38 = vshll.u32 %v5441_v35, 16  ;;  %v437_v7 = vmax.f32 %v405_v8, 0.0  ;;  %6284 = vmatmul.mubr.bf16.gmra.mrb[4].mxu0 %v7638_v4  ;;  %v7771_v35 = vld [vmem:[%s7124_s25 + $0x70] sm:$0xff]  }
  0x98   : > { %1055 = vst [vmem:[#allocation2 + $0x94] sm:$0xf] %v857_v33  ;;  %v7760_v32 = vrot.slane %v860_v12, 7  ;;  %v1057_v56 = vsel %vm7144_vm4, %v858_v43, %v1056_v18  ;;  %v1059_v16 = vld [vmem:[#allocation2 + $0x9c] sm:$0xf]  ;;  %v8609_v46 = vrot.slane %v7478_v55, 1  ;;  %v5536_v33 = vunpack.c.h.bf16 %v7722_v42  ;;  %6287 = vmatprep.mubr.bf16.mxu0 %v7692_v54  ;;  %6332 = vmatpush3.bf16.msra.mxu0 %v6966_v44 }
  0x99   : > { %v8610_v60 = vrot.slane %v7443_v10, 1  ;;  %v7774_v8 = vsel %vm1298_vm8, %v1425_v14, %v1429_v36  ;;  %v1433_v12 = vor.u32 %v1431_v57, %v1429_v36  ;;  %1058 = vst [vmem:[#allocation2 + $0x98] sm:$0x1] %v1057_v56  ;;  %v5442_v18 = vpack.c.bf16 %v437_v7, %v437_v7  ;;  %v500_v54 = vld [vmem:[#allocation2 + $0xb4] sm:$0x1]  ;;  %6333 = vmatprep.subr.bf16.mxu0 %v6970_v28  ;;  %v6974_v44 = vld [vmem:[%s8531_s3 + $0x1a0] sm:$0xff]  }
  0x9a   : > { %8611 = vst [vmem:[#allocation28_spill] sm:$0xff] %v7774_v8  ;;  %v7776_v4 = vld [vmem:[#allocation2 + $0x88] sm:$0xf]  ;;  %v7778_v2 = vld [vmem:[#allocation2 + $0x8c] sm:$0xf]  ;;  %v498_v43 = vsel %vm7144_vm4, 0, %v497_v21  ;;  %5988 = vmatmul.mubr.bf16.gmra.mrb[28].mxu1 %v7774_v8  ;;  %v865_v14 = vor.u32 %v863_v38, %v7760_v32  ;;  %v368_v57 = vmul.f32 %v7496_v25, %v5535_v59  ;;  %v369_v7 = vmul.f32 %v7496_v25, %v5536_v33 }
  0x9b   : > { %v3355_v1 = vsel %vm2074_vm9, %v8610_v60, %v8609_v46  ;;  %v7786_v42 = vcombine.low %v7776_v4, %v7778_v2  ;;  %v866_v46 = vrot.slane %v7760_v32, 4  ;;  %499 = vst [vmem:[#allocation2 + $0xa8] sm:$0x1] %v498_v43  ;;  %v868_v21 = vshrl.u32 %v5442_v18, 16  ;;  %v1063_v15 = vld [vmem:[#allocation2 + $0xa4] sm:$0x1] }
  0x9c   : > { %v871_v36 = vshll.u32 %v5442_v18, 16  ;;  %v5539_v56 = vunpack.c.l.bf16 %v7771_v35  ;;  %v1060_v59 = vsel %vm7154_vm5, %v865_v14, %v1059_v16  ;;  %v406_v60 = vadd.f32 %v7519_v20, %v368_v57  ;;  %6334 = vmatpush3.bf16.msra.mxu0 %v6970_v28  ;;  %v7806_v8 = vld [vmem:[%s7124_s25 + $0x78] sm:$0xff]  }
  0x9d   : > { %8612 = vst [vmem:[#allocation29_spill] sm:$0xff] %v7786_v42  ;;  %v1435_v38 = vshll.u32 %v7786_v42, 16  ;;  %v1439_v32 = vshrl.u32 %v7786_v42, 16  ;;  %1061 = vst [vmem:[#allocation2 + $0x9c] sm:$0xf] %v1060_v59  ;;  %v870_v43 = vrot.slane %v868_v21, 7  ;;  %v407_v10 = vadd.f32 %v7519_v20, %v369_v7  ;;  %6335 = vmatprep.subr.bf16.mxu0 %v6974_v44 }
  0x9e   : > { %v370_v18 = vmul.f32 %v7496_v25, %v5539_v56  ;;  %v501_v33 = vsel %vm7144_vm4, 0, %v500_v54  ;;  %v7808_v31 = vld [vmem:[#allocation2 + $0x90] sm:$0xf]  ;;  %v8613_v16 = vrot.slane %v7508_v52, 1  ;;  %v8614_v14 = vrot.slane %v7478_v55, 1  ;;  %v6976_v59 = vld [vmem:[%s8531_s3 + $0x1a8] sm:$0xff]  }
  0x9f   : > { %v1437_v49 = vrot.slane %v1435_v38, 1  ;;  %v7810_v17 = vld [vmem:[#allocation2 + $0x94] sm:$0xf]  ;;  %v438_v21 = vmax.f32 %v406_v60, 0.0  ;;  %502 = vst [vmem:[#allocation2 + $0xb4] sm:$0x1] %v501_v33  ;;  %v873_v54 = vor.u32 %v871_v36, %v870_v43  ;;  %6288 = vmatmul.mubr.bf16.gmra.mrb[8].mxu0 %v7713_v58 }
  0xa0   : > { %v3357_v57 = vsel %vm2074_vm9, %v8614_v14, %v8613_v16  ;;  %v7820_v28 = vcombine.low %v7808_v31, %v7810_v17  ;;  %v875_v56 = vrot.slane %v870_v43, 4  ;;  %v439_v38 = vmax.f32 %v407_v10, 0.0  ;;  %v548_v16 = vld [vmem:[#allocation2 + $0xb0] sm:$0xf]  ;;  %6291 = vmatprep.mubr.bf16.mxu0 %v3355_v1  ;;  %v7837_v7 = vld [vmem:[#allocation2 + $0x98] sm:$0xf]  ;;  %6336 = vmatpush3.bf16.msra.mxu0 %v6974_v44 }
  0xa1   : > { %v7826_v55 = vsel %vm1298_vm8, %v1433_v12, %v1437_v49  ;;  %v5443_v60 = vpack.c.bf16 %v438_v21, %v438_v21  ;;  %v408_v33 = vadd.f32 %v7519_v20, %v370_v18  ;;  %v5543_v14 = vunpack.c.l.bf16 %v7806_v8  ;;  %6337 = vmatprep.subr.bf16.mxu0 %v6976_v59 }
  0xa2   : > { %8615 = vst [vmem:[#allocation30_spill] sm:$0xff] %v7820_v28  ;;  %8616 = vst [vmem:[#allocation31_spill] sm:$0xff] %v7826_v55  ;;  %5991 = vmatprep.mubr.bf16.mxu1 %v7826_v55  ;;  %v1441_v36 = vor.u32 %v1439_v32, %v1437_v49  ;;  %v1443_v10 = vshll.u32 %v7820_v28, 16  ;;  %v874_v43 = vsel %vm7204_vm7, %v866_v46, %v873_v54  ;;  %v1447_v49 = vshrl.u32 %v7820_v28, 16 }
  0xa3   : > { %v1064_v12 = vsel %vm7144_vm4, %v875_v56, %v1063_v15  ;;  %1062 = vst [vmem:[#allocation2 + $0xa0] sm:$0xf] %v874_v43  ;;  %v5444_v58 = vpack.c.bf16 %v439_v38, %v439_v38  ;;  %v877_v18 = vshrl.u32 %v5443_v60, 16  ;;  %v880_v21 = vshll.u32 %v5443_v60, 16  ;;  %v6978_v15 = vld [vmem:[%s8531_s3 + $0x1b0] sm:$0xff]  }
  0xa4   : > { %1065 = vst [vmem:[#allocation2 + $0xa4] sm:$0x1] %v1064_v12  ;;  %v440_v39 = vmax.f32 %v408_v33, 0.0  ;;  %v1445_v55 = vrot.slane %v1443_v10, 1  ;;  %v549_v32 = vsel %vm7154_vm5, 0, %v548_v16  ;;  %v3358_v46 = vrot.slane %v7544_v62, 1  ;;  %6338 = vmatpush3.bf16.msra.mxu0 %v6976_v59 }
  0xa5   : > { %v7846_v1 = vld [vmem:[#allocation2 + $0x9c] sm:$0xf]  ;;  %v879_v54 = vrot.slane %v877_v18, 7  ;;  %v885_v56 = vshrl.u32 %v5444_v58, 16  ;;  %v888_v38 = vshll.u32 %v5444_v58, 16  ;;  %v8618_v10 = vrot.slane %v7508_v52, 1  ;;  %6339 = vmatprep.subr.bf16.mxu0 %v6978_v15 }
  0xa6   : > { %550 = vst [vmem:[#allocation2 + $0xb0] sm:$0xf] %v549_v32  ;;  %v5445_v44 = vpack.c.bf16 %v440_v39, %v440_v39  ;;  %v7849_v60 = vsel %vm1298_vm8, %v1441_v36, %v1445_v55  ;;  %v7853_v33 = vcombine.low %v7837_v7, %v7846_v1  ;;  %v1066_v16 = vld [vmem:[#allocation2 + $0xa8] sm:$0xf]  ;;  %v3360_v12 = vrot.slane %v7564_v30, 1 }
  0xa7   : > { %8617 = vst [vmem:[#allocation32_spill] sm:$0xff] %v7849_v60  ;;  %v3359_v43 = vsel %vm2074_vm9, %v8618_v10, %v3358_v46  ;;  %5992 = vmatmul.mubr.bf16.gmra.mrb[32].mxu1 %v7849_v60  ;;  %v882_v18 = vor.u32 %v880_v21, %v879_v54  ;;  %v883_v58 = vrot.slane %v879_v54, 4  ;;  %v887_v32 = vrot.slane %v885_v56, 7  ;;  %v551_v62 = vld [vmem:[#allocation2 + $0xbc] sm:$0xf]  ;;  %6292 = vmatmul.mubr.bf16.gmra.mrb[12].mxu0 %v3357_v57 }
  0xa8   : > { %v894_v39 = vshrl.u32 %v5445_v44, 16  ;;  %v1449_v36 = vor.u32 %v1447_v49, %v1445_v55  ;;  %v1451_v28 = vshll.u32 %v7853_v33, 16  ;;  %v1455_v42 = vshrl.u32 %v7853_v33, 16  ;;  %v6980_v10 = vld [vmem:[%s8531_s3 + $0x1b8] sm:$0xff]   ;;  %v1073_v59 = vld [vmem:[#allocation2 + $0xb4] sm:$0xf]  ;;  %6295 = vmatprep.mubr.bf16.mxu0 %v3359_v43  ;;  %6340 = vmatpush3.bf16.msra.mxu0 %v6978_v15 }
  0xa9   : > { %v897_v24 = vshll.u32 %v5445_v44, 16  ;;  %v890_v30 = vor.u32 %v888_v38, %v887_v32  ;;  %v1067_v21 = vsel %vm7154_vm5, %v882_v18, %v1066_v16  ;;  %v892_v54 = vrot.slane %v887_v32, 4  ;;  %v503_v43 = vld [vmem:[#allocation2 + $0xc0] sm:$0x1]  ;;  %6341 = vmatprep.subr.bf16.mxu0 %v6980_v10 }
  0xaa   : > { %v7867_v56 = vrot.slane %v894_v39, 7  ;;  %v1453_v55 = vrot.slane %v1451_v28, 1  ;;  %v7869_v49 = vld [vmem:[#allocation2 + $0xa0] sm:$0xf]  ;;  %1068 = vst [vmem:[#allocation2 + $0xa8] sm:$0xf] %v1067_v21  ;;  %v8619_v44 = vunpack.c.h.bf16 %v7771_v35  ;;  %v372_v38 = vmul.f32 %v7496_v25, %v5543_v14 }
  0xab   : > { %v7871_v52 = vld [vmem:[#allocation2 + $0xa4] sm:$0xf]  ;;  %v552_v57 = vsel %vm7154_vm5, 0, %v551_v62  ;;  %v891_v28 = vsel %vm7204_vm7, %v883_v58, %v890_v30  ;;  %v3361_v62 = vsel %vm2074_vm9, %v3358_v46, %v3360_v12  ;;  %v504_v39 = vsel %vm7144_vm4, 0, %v503_v43 }
  0xac   : > { %v371_v60 = vmul.f32 %v7496_v25, %v8619_v44  ;;  %v7881_v16 = vcombine.low %v7869_v49, %v7871_v52  ;;  %v899_v18 = vor.u32 %v897_v24, %v7867_v56  ;;  %553 = vst [vmem:[#allocation2 + $0xbc] sm:$0xf] %v552_v57  ;;  %v7887_v35 = vsel %vm1298_vm8, %v1449_v36, %v1453_v55  ;;  %v7895_v30 = vld [vmem:[%s8531_s3 + $0x1c0] sm:$0xff]  }
  0xad   : > { %1069 = vst [vmem:[#allocation2 + $0xac] sm:$0xf] %v891_v28  ;;  %v1070_v32 = vld [vmem:[#allocation2 + $0xb0] sm:$0x1]  ;;  %v410_v14 = vadd.f32 %v7519_v20, %v372_v38  ;;  %5995 = vmatprep.mubr.bf16.mxu1 %v7887_v35  ;;  %v1457_v24 = vor.u32 %v1455_v42, %v1453_v55  ;;  %v3362_v36 = vrot.slane %v7577_v13, 1  ;;  %v7908_v42 = vcombine.low %v7640_v47, %v7704_v63 }
  0xae   : > { %v409_v25 = vadd.f32 %v7519_v20, %v371_v60  ;;  %v1459_v15 = vshll.u32 %v7881_v16, 16  ;;  %v1071_v58 = vsel %vm7144_vm4, %v892_v54, %v1070_v32  ;;  %v1074_v46 = vsel %vm7154_vm5, %v899_v18, %v1073_v59  ;;  %505 = vst [vmem:[#allocation2 + $0xc0] sm:$0x1] %v504_v39  ;;  %6342 = vmatpush3.bf16.msra.mxu0 %v6980_v10 }
  0xaf   : > { %1072 = vst [vmem:[#allocation2 + $0xb0] sm:$0x1] %v1071_v58  ;;  %1075 = vst [vmem:[#allocation2 + $0xb4] sm:$0xf] %v1074_v46  ;;  %v442_v60 = vmax.f32 %v410_v14, 0.0  ;;  %v3363_v59 = vsel %vm2074_vm9, %v3360_v12, %v3362_v36  ;;  %6391 = vmatprep.subr.bf16.mxu0 %v7895_v30  ;;  %v1463_v38 = vshrl.u32 %v7881_v16, 16  ;;  %6296 = vmatmul.mubr.bf16.gmra.mrb[16].mxu0 %v3361_v62 }
  0xb0   : > { %v441_v20 = vmax.f32 %v409_v25, 0.0  ;;  %v1461_v21 = vrot.slane %v1459_v15, 1  ;;  %8620 = vst [vmem:[#allocation33_spill] sm:$0xff] %v7908_v42  ;;  %v3364_v28 = vrot.slane %v7646_v50, 1  ;;  %6299 = vmatprep.mubr.bf16.mxu0 %v3363_v59  ;;  %v3366_v43 = vrot.slane %v7908_v42, 1 }
  0xb1   : > { %v5447_v55 = vpack.c.bf16 %v442_v60, %v442_v60  ;;  %v7915_v57 = vld [vmem:[#allocation2 + $0xa8] sm:$0xf]  ;;  %v900_v25 = vrot.slane %v7867_v56, 4 }
  0xb2   : > { %v5446_v54 = vpack.c.bf16 %v441_v20, %v441_v20  ;;  %v7913_v44 = vsel %vm1298_vm8, %v1457_v24, %v1461_v21  ;;  %v1465_v24 = vor.u32 %v1463_v38, %v1461_v21  ;;  %v3365_v46 = vsel %vm2074_vm9, %v3362_v36, %v3364_v28  ;;  %v554_v42 = vld [vmem:[#allocation2 + $0xc8] sm:$0xf] }
  0xb3   : > { %5996 = vmatmul.mubr.bf16.gmra.mrb[36].mxu1 %v7913_v44  ;;  %v911_v10 = vshrl.u32 %v5447_v55, 16  ;;  %v914_v12 = vshll.u32 %v5447_v55, 16  ;;  %v7937_v20 = vcombine.low %v7706_v27, %v7708_v11  ;;  %v1077_v21 = vld [vmem:[#allocation2 + $0xbc] sm:$0x1]  ;;  %v3367_v36 = vsel %vm2074_vm9, %v3364_v28, %v3366_v43 }
  0xb4   : > { %v902_v47 = vshrl.u32 %v5446_v54, 16  ;;  %v905_v63 = vshll.u32 %v5446_v54, 16  ;;  %v7920_v18 = vld [vmem:[#allocation2 + $0xac] sm:$0xf]  ;;  %v7949_v27 = vcombine.low %v7733_v5, %v7776_v4 }
  0xb5   : > { %v7925_v32 = vcombine.low %v7915_v57, %v7920_v18  ;;  %v7928_v14 = vrot.slane %v911_v10, 7  ;;  %v1080_v55 = vld [vmem:[#allocation2 + $0xc0] sm:$0xf] }
  0xb6   : > { %v904_v62 = vrot.slane %v902_v47, 7  ;;  %v7930_v15 = vld [vmem:[#allocation2 + $0xb0] sm:$0xf]  ;;  %v7932_v58 = vld [vmem:[#allocation2 + $0xb4] sm:$0xf] }
  0xb7   : > { %v1467_v60 = vshll.u32 %v7925_v32, 16  ;;  %v7942_v39 = vcombine.low %v7930_v15, %v7932_v58  ;;  %v1471_v56 = vshrl.u32 %v7925_v32, 16  ;;  %v916_v38 = vor.u32 %v914_v12, %v7928_v14  ;;  %6300 = vmatmul.mubr.bf16.gmra.mrb[20].mxu0 %v3365_v46 }
  0xb8   : > { %v907_v54 = vor.u32 %v905_v63, %v904_v62  ;;  %v909_v59 = vrot.slane %v904_v62, 4  ;;  %6303 = vmatprep.mubr.bf16.mxu0 %v3367_v36  ;;  %v3368_v62 = vrot.slane %v7937_v20, 1 }
  0xb9   : > { %v1469_v11 = vrot.slane %v1467_v60, 1  ;;  %v1475_v47 = vshll.u32 %v7942_v39, 16  ;;  %v1081_v12 = vsel %vm7154_vm5, %v916_v38, %v1080_v55  ;;  %v5544_v60 = vunpack.c.h.bf16 %v7806_v8 }
  0xba   : > { %v908_v10 = vsel %vm7204_vm7, %v900_v25, %v907_v54  ;;  %v1078_v63 = vsel %vm7144_vm4, %v909_v59, %v1077_v21  ;;  %1082 = vst [vmem:[#allocation2 + $0xc0] sm:$0xf] %v1081_v12  ;;  %v3370_v25 = vrot.slane %v7949_v27, 1  ;;  %v555_v54 = vsel %vm7154_vm5, 0, %v554_v42  ;;  %v7017_v42 = vld [vmem:[%s8530_s2] ss:$0 sm:$0xff] }
  0xbb   : > { %1076 = vst [vmem:[#allocation2 + $0xb8] sm:$0xf] %v908_v10  ;;  %v7959_v28 = vsel %vm1298_vm8, %v1465_v24, %v1469_v11  ;;  %v1473_v5 = vor.u32 %v1471_v56, %v1469_v11  ;;  %v1477_v4 = vrot.slane %v1475_v47, 1  ;;  %1079 = vst [vmem:[#allocation2 + $0xbc] sm:$0x1] %v1078_v63  ;;  %v3369_v21 = vsel %vm2074_vm9, %v3366_v43, %v3368_v62 }
  0xbc   : > { %5999 = vmatprep.mubr.bf16.mxu1 %v7959_v28  ;;  %556 = vst [vmem:[#allocation2 + $0xc8] sm:$0xf] %v555_v54  ;;  %v7016_v24 = vld [vmem:[%s8529_s1] ss:$0 sm:$0xff]  ;;  %v7977_v55 = vcombine.low %v7778_v2, %v7808_v31  ;;  %v3371_v23 = vsel %vm2074_vm9, %v3368_v62, %v3370_v25  ;;  %v7982_v8 = vcombine.low %v7810_v17, %v7837_v7  ;;  %v1479_v36 = vshrl.u32 %v7942_v39, 16 }
  0xbd   : > { %v7968_v46 = vsel %vm1298_vm8, %v1473_v5, %v1477_v4  ;;  %v373_v56 = vmul.f32 %v7016_v24, %v5544_v60 }
  0xbe   : > { %6000 = vmatmul.mubr.bf16.gmra.mrb[40].mxu1 %v7968_v46  ;;  %v3372_v17 = vrot.slane %v7977_v55, 1  ;;  %v3374_v7 = vrot.slane %v7982_v8, 1  ;;  %v1481_v63 = vor.u32 %v1479_v36, %v1477_v4  ;;  %v8005_v4 = vcombine.low %v7871_v52, %v7915_v57 }
  0xbf   : > { %v411_v59 = vadd.f32 %v7017_v42, %v373_v56  ;;  %6304 = vmatmul.mubr.bf16.gmra.mrb[24].mxu0 %v3369_v21 }
  0xc0   : > { %6307 = vmatprep.mubr.bf16.mxu0 %v3371_v23  ;;  %v3373_v21 = vsel %vm2074_vm9, %v3370_v25, %v3372_v17  ;;  %v8000_v23 = vcombine.low %v7846_v1, %v7869_v49  ;;  %v3375_v42 = vsel %vm2074_vm9, %v3372_v17, %v3374_v7  ;;  %v3378_v57 = vrot.slane %v8005_v4, 1 }
  0xc1   : > { %v1135_v43 = vld [vmem:[#allocation2 + $0xc0] sm:$0xf]  ;;  %v443_v47 = vmax.f32 %v411_v59, 0.0  ;;  %v917_v59 = vrot.slane %v7928_v14, 4 }
  0xc2   : > { %v1133_v38 = vld [vmem:[#allocation2 + $0xb8] sm:$0xf]  ;;  %v1134_v11 = vld [vmem:[#allocation2 + $0xbc] sm:$0xf]  ;;  %v7990_v2 = vcombine.low %v1135_v43, %v1135_v43  ;;  %v3376_v52 = vrot.slane %v8000_v23, 1 }
  0xc3   : > { %v7988_v31 = vcombine.low %v1133_v38, %v1134_v11  ;;  %v5448_v10 = vpack.c.bf16 %v443_v47, %v443_v47  ;;  %v8032_v3 = vcombine.low %v7932_v58, %v1133_v38  ;;  %v6977_v38 = vld [vmem:[%s8531_s3 + $0x90] sm:$0xff]  }
  0xc4   : > { %v1491_v62 = vshll.u32 %v7990_v2, 16 }
  0xc5   : > { %v1483_v12 = vshll.u32 %v7988_v31, 16  ;;  %v1487_v5 = vshrl.u32 %v7988_v31, 16  ;;  %v919_v60 = vshrl.u32 %v5448_v10, 16  ;;  %v922_v54 = vshll.u32 %v5448_v10, 16 }
  0xc6   : > { %v1493_v56 = vrot.slane %v1491_v62, 1  ;;  %v8028_v62 = vcombine.low %v7920_v18, %v7930_v15  ;;  %v7019_v18 = vld [vmem:[%s8531_s3 + $0x80] sm:$0xff]  }
  0xc7   : > { %v1485_v24 = vrot.slane %v1483_v12, 1  ;;  %v921_v36 = vrot.slane %v919_v60, 7  ;;  %v1084_v12 = vld [vmem:[#allocation2 + $0xc8] sm:$0x1]  ;;  %6308 = vmatmul.mubr.bf16.gmra.mrb[28].mxu0 %v3373_v21  ;;  %v3379_v60 = vsel %vm2074_vm9, %v3376_v52, %v3378_v57 }
  0xc8   : > { %6311 = vmatprep.mubr.bf16.mxu0 %v3375_v42 }
  0xc9   : > { %v8009_v47 = vsel %vm1298_vm8, %v1481_v63, %v1485_v24  ;;  %v8011_v10 = vor.u32 %v1487_v5, %v1485_v24  ;;  %v924_v1 = vor.u32 %v922_v54, %v921_v36  ;;  %v926_v49 = vrot.slane %v921_v36, 4  ;;  %v8022_v63 = vld [vmem:[#allocation2] sm:$0xff]   ;;  %v1138_v36 = vld [vmem:[#allocation2 + $0xcc] sm:$0xf] }
  0xca   : > { %6003 = vmatprep.mubr.bf16.mxu1 %v8009_v47  ;;  %v3377_v5 = vsel %vm2074_vm9, %v3374_v7, %v3376_v52  ;;  %v3380_v54 = vrot.slane %v8028_v62, 1  ;;  %v3382_v7 = vrot.slane %v8032_v3, 1  ;;  %v8068_v52 = vcombine.low %v1138_v36, %v1138_v36 }
  0xcb   : > { %v1494_v25 = vsel %vm1298_vm8, %v8011_v10, %v1493_v56  ;;  %v925_v14 = vsel %vm7204_vm7, %v917_v59, %v924_v1  ;;  %v1085_v17 = vsel %vm7144_vm4, %v926_v49, %v1084_v12  ;;  %v8049_v56 = vcombine.low %v1134_v11, %v1135_v43  ;;  %v6979_v12 = vld [vmem:[%s8531_s3 + $0x98] sm:$0xff]   ;;  %v6983_v49 = vld [vmem:[%s8531_s3 + $0xa0] sm:$0xff]  }
  0xcc   : > { %6004 = vmatmul.mubr.bf16.gmra.mrb[44].mxu1 %v1494_v25  ;;  %1083 = vst [vmem:[#allocation2 + $0xc4] sm:$0xf] %v925_v14  ;;  %1086 = vst [vmem:[#allocation2 + $0xc8] sm:$0x1] %v1085_v17  ;;  %v3381_v21 = vsel %vm2074_vm9, %v3378_v57, %v3380_v54  ;;  %v3383_v42 = vsel %vm2074_vm9, %v3380_v54, %v3382_v7  ;;  %v6985_v14 = vld [vmem:[%s8531_s3 + $0xa8] sm:$0xff]   ;;  %v3388_v17 = vrot.slane %v8068_v52, 1 }
  0xcd   : > { %6023 = vmatprep.mubr.bf16.mxu1 %v8022_v63  ;;  %v3384_v11 = vrot.slane %v8049_v56, 1  ;;  %v8090_v54 = vld [vmem:[%s8531_s3 + $0xc0] sm:$0xff]  }
  0xcf   : > { %6312 = vmatmul.mubr.bf16.gmra.mrb[32].mxu0 %v3377_v5  ;;  %v3385_v25 = vsel %vm2074_vm9, %v3382_v7, %v3384_v11  ;;  %v6987_v5 = vld [vmem:[%s8531_s3 + $0xb0] sm:$0xff]   ;;  %v6986_v7 = vld [vmem:[%s8531_s3 + $0x1c8] sm:$0xff]  }
  0xd0   : > { %6315 = vmatprep.mubr.bf16.mxu0 %v3379_v60 }
  0xd3   : > { %v1136_v24 = vld [vmem:[#allocation2 + $0xc4] sm:$0xf]  ;;  %v1137_v15 = vld [vmem:[#allocation2 + $0xc8] sm:$0xf] }
  0xd4   : > { %6024 = vmatmul.mubr.bf16.vlgmr.msra.gmra.mrb[0].mxu1 %v7251_v40  ;;  %v8044_v58 = vcombine.low %v1135_v43, %v1136_v24  ;;  %v8053_v59 = vcombine.low %v1136_v24, %v1137_v15  ;;  %v8058_v1 = vcombine.low %v1137_v15, %v1138_v36  ;;  %v6988_v24 = vld [vmem:[%s8531_s3 + $0x1d0] sm:$0xff]   ;;  %v6994_v15 = vld [vmem:[%s8531_s3 + $0x1e8] sm:$0xff]   ;;  %v8621_v36 = vld [vmem:[#allocation26_spill] sm:$0xff] }
  0xd5   : > { %6072 = vmatpush3.bf16.msra.mxu1 %v7019_v18  ;;  %6027 = vmatprep.mubr.bf16.mxu1 %v7253_v48  ;;  %v6990_v18 = vld [vmem:[%s8531_s3 + $0x1d8] sm:$0xff]  }
  0xd6   : > { %6073 = vmatprep.subr.bf16.mxu1 %v6975_v19  ;;  %v3386_v43 = vrot.slane %v8053_v59, 1 }
  0xd7   : > { %6316 = vmatmul.mubr.bf16.gmra.mrb[36].mxu0 %v3381_v21  ;;  %v6998_v21 = vld [vmem:[%s8531_s3 + $0x1f8] sm:$0xff]  }
  0xd8   : > { %6319 = vmatprep.mubr.bf16.mxu0 %v3383_v42  ;;  %v3387_v57 = vsel %vm2074_vm9, %v3384_v11, %v3386_v43  ;;  %v3389_v60 = vsel %vm2074_vm9, %v3386_v43, %v3388_v17  ;;  %v8133_v42 = vld [vmem:[%s8531_s3 + $0x200] sm:$0xff]   ;;  %v2075_v43 = vrot.slane %v8022_v63, 1  ;;  %v6995_v63 = vld [vmem:[%s8531_s3 + $0xd0] sm:$0xff]  }
  0xd9   : > { %6074 = vmatpush3.bf16.msra.mxu1 %v6975_v19  ;;  %v6989_v19 = vld [vmem:[%s8531_s3 + $0xb8] sm:$0xff]  }
  0xda   : > { %6075 = vmatprep.subr.bf16.mxu1 %v6977_v38  ;;  %v8623_v11 = vld [vmem:[#allocation30_spill] sm:$0xff] }
  0xdc   : > { %6028 = vmatmul.mubr.bf16.gmra.mrb[4].mxu1 %v7270_v41 }
  0xdd   : > { %6031 = vmatprep.mubr.bf16.mxu1 %v7290_v6  ;;  %6076 = vmatpush3.bf16.msra.mxu1 %v6977_v38  ;;  %v6996_v38 = vld [vmem:[%s8531_s3 + $0x1f0] sm:$0xff]  }
  0xde   : > { %6077 = vmatprep.subr.bf16.mxu1 %v6979_v12 }
  0xdf   : > { %6320 = vmatmul.mubr.bf16.gmra.mrb[40].mxu0 %v3385_v25 }
  0xe0   : > { %6323 = vmatprep.mubr.bf16.mxu0 %v3387_v57  ;;  %v2078_v57 = vrot.slane %v7253_v48, 1  ;;  %v2082_v48 = vrot.slane %v7290_v6, 1 }
  0xe1   : > { %6078 = vmatpush3.bf16.msra.mxu1 %v6979_v12  ;;  %v8622_v12 = vld [vmem:[#allocation29_spill] sm:$0xff] }
  0xe2   : > { %6079 = vmatprep.subr.bf16.mxu1 %v6983_v49 }
  0xe4   : > { %6032 = vmatmul.mubr.bf16.gmra.mrb[8].mxu1 %v7358_v26 }
  0xe5   : > { %6035 = vmatprep.mubr.bf16.mxu1 %v7384_v0  ;;  %6080 = vmatpush3.bf16.msra.mxu1 %v6983_v49  ;;  %v2076_v49 = vrot.slane %v7251_v40, 1  ;;  %v6993_v40 = vld [vmem:[%s8531_s3 + $0xc8] sm:$0xff]  }
  0xe6   : > { %6081 = vmatprep.subr.bf16.mxu1 %v6985_v14 }
  0xe7   : > { %6324 = vmatmul.mubr.bf16.gmra.mrb[44].mxu0 %v3389_v60  ;;  %v2077_v25 = vsel %vm2074_vm9, %v2075_v43, %v2076_v49  ;;  %v2079_v17 = vsel %vm2074_vm9, %v2076_v49, %v2078_v57  ;;  %v2094_v49 = vrot.slane %v7506_v51, 1 }
  0xe8   : > { %6343 = vmatprep.mubr.bf16.mxu0 %v7270_v41 }
  0xe9   : > { %6082 = vmatpush3.bf16.msra.mxu1 %v6985_v14  ;;  %v2080_v14 = vrot.slane %v7270_v41, 1  ;;  %v2084_v41 = vrot.slane %v7358_v26, 1 }
  0xea   : > { %6083 = vmatprep.subr.bf16.mxu1 %v6987_v5 }
  0xeb   : > { %v8171_v60 = vsel %vm2074_vm9, %v2080_v14, %v2082_v48 }
  0xec   : > { %6036 = vmatmul.mubr.bf16.gmra.mrb[12].mxu1 %v7427_v45 }
  0xed   : > { %6039 = vmatprep.mubr.bf16.mxu1 %v7441_v9  ;;  %6084 = vmatpush3.bf16.msra.mxu1 %v6987_v5  ;;  %v2081_v5 = vsel %vm2074_vm9, %v2078_v57, %v2080_v14  ;;  %v7004_v57 = vld [vmem:[%s8531_s3 + $0x208] sm:$0xff]  }
  0xee   : > { %6085 = vmatprep.subr.bf16.mxu1 %v6989_v19 }
  0xef   : > { %6344 = vmatmul.mubr.bf16.vlgmr.msra.gmra.mrb[0].mxu0 %v7290_v6  ;;  %v6997_v6 = vld [vmem:[%s8531_s3 + $0xd8] sm:$0xff]  }
  0xf0   : > { %6392 = vmatpush3.bf16.msra.mxu0 %v7895_v30  ;;  %6347 = vmatprep.mubr.bf16.mxu0 %v7358_v26  ;;  %v6992_v30 = vld [vmem:[%s8531_s3 + $0x1e0] sm:$0xff]   ;;  %v2086_v26 = vrot.slane %v7384_v0, 1 }
  0xf1   : > { %6086 = vmatpush3.bf16.msra.mxu1 %v6989_v19  ;;  %6393 = vmatprep.subr.bf16.mxu0 %v6986_v7  ;;  %v8174_v19 = vsel %vm2074_vm9, %v2082_v48, %v2084_v41  ;;  %v2098_v48 = vrot.slane %v7567_v53, 1 }
  0xf2   : > { %6135 = vmatprep.subr.bf16.mxu1 %v8090_v54 }
  0xf4   : > { %6040 = vmatmul.mubr.bf16.gmra.mrb[16].mxu1 %v7502_v34  ;;  %6394 = vmatpush3.bf16.msra.mxu0 %v6986_v7  ;;  %v7001_v7 = vld [vmem:[%s8531_s3 + $0xe0] sm:$0xff]  }
  0xf5   : > { %6043 = vmatprep.mubr.bf16.mxu1 %v7506_v51  ;;  %6395 = vmatprep.subr.bf16.mxu0 %v6988_v24 }
  0xf7   : > { %6348 = vmatmul.mubr.bf16.gmra.mrb[4].mxu0 %v7384_v0  ;;  %v7003_v0 = vld [vmem:[%s8531_s3 + $0xe8] sm:$0xff]  }
  0xf8   : > { %6351 = vmatprep.mubr.bf16.mxu0 %v7427_v45  ;;  %6396 = vmatpush3.bf16.msra.mxu0 %v6988_v24  ;;  %v8189_v24 = vsel %vm2074_vm9, %v2084_v41, %v2086_v26  ;;  %v2100_v41 = vrot.slane %v7633_v61, 1 }
  0xf9   : > { %6397 = vmatprep.subr.bf16.mxu0 %v6990_v18 }
  0xfc   : > { %6044 = vmatmul.mubr.bf16.gmra.mrb[20].mxu1 %v7562_v22  ;;  %6398 = vmatpush3.bf16.msra.mxu0 %v6990_v18 }
  0xfd   : > { %6047 = vmatprep.mubr.bf16.mxu1 %v7567_v53  ;;  %6399 = vmatprep.subr.bf16.mxu0 %v6992_v30 }
  0xff   : > { %6352 = vmatmul.mubr.bf16.gmra.mrb[8].mxu0 %v7441_v9 }
 0x100   : > { %6355 = vmatprep.mubr.bf16.mxu0 %v7502_v34  ;;  %6400 = vmatpush3.bf16.msra.mxu0 %v6992_v30  ;;  %v2092_v30 = vrot.slane %v7502_v34, 1  ;;  %v8624_v34 = vld [vmem:[#allocation6_spill] sm:$0xff] }
 0x101   : > { %6401 = vmatprep.subr.bf16.mxu0 %v6994_v15 }
 0x102   : > { %v8227_v14 = vsel %vm2074_vm9, %v2092_v30, %v2094_v49 }
 0x104   : > { %6048 = vmatmul.mubr.bf16.gmra.mrb[24].mxu1 %v7633_v61  ;;  %6402 = vmatpush3.bf16.msra.mxu0 %v6994_v15  ;;  %v8203_v15 = vld [vmem:[#allocation2 + $0xd0] sm:$0xff]  }
 0x105   : > { %6051 = vmatprep.mubr.bf16.mxu1 %v7644_v29  ;;  %6403 = vmatprep.subr.bf16.mxu0 %v6996_v38 }
 0x107   : > { %6356 = vmatmul.mubr.bf16.gmra.mrb[12].mxu0 %v7506_v51  ;;  %v8236_v51 = vld [vmem:[%s8531_s3 + $0x100] sm:$0xff]  }
 0x108   : > { %6359 = vmatprep.mubr.bf16.mxu0 %v7562_v22  ;;  %6404 = vmatpush3.bf16.msra.mxu0 %v6996_v38  ;;  %v7005_v38 = vld [vmem:[%s8531_s3 + $0xf0] sm:$0xff]  }
 0x109   : > { %6405 = vmatprep.subr.bf16.mxu0 %v6998_v21 }
 0x10c   : > { %6052 = vmatmul.mubr.bf16.gmra.mrb[28].mxu1 %v7718_v37  ;;  %6406 = vmatpush3.bf16.msra.mxu0 %v6998_v21 }
 0x10d   : > { %6055 = vmatprep.mubr.bf16.mxu1 %v8621_v36  ;;  %6455 = vmatprep.subr.bf16.mxu0 %v8133_v42 }
 0x10f   : > { %6360 = vmatmul.mubr.bf16.gmra.mrb[16].mxu0 %v7567_v53  ;;  %v7009_v53 = vld [vmem:[%s8531_s3 + $0x220] sm:$0xff]  }
 0x110   : > { %6363 = vmatprep.mubr.bf16.mxu0 %v7633_v61  ;;  %v2102_v61 = vrot.slane %v7644_v29, 1 }
 0x114   : > { %6056 = vmatmul.mubr.bf16.gmra.mrb[32].mxu1 %v8622_v12 }
 0x115   : > { %6059 = vmatprep.mubr.bf16.mxu1 %v8623_v11 }
 0x117   : > { %6364 = vmatmul.mubr.bf16.gmra.mrb[20].mxu0 %v7644_v29  ;;  %v7011_v29 = vld [vmem:[%s8531_s3 + $0x230] sm:$0xff]  }
 0x118   : > { %6367 = vmatprep.mubr.bf16.mxu0 %v7718_v37 }
 0x11c   : > { %6060 = vmatmul.mubr.bf16.gmra.mrb[36].mxu1 %v7853_v33 }
 0x11d   : > { %6063 = vmatprep.mubr.bf16.mxu1 %v7881_v16 }
 0x11f   : > { %6368 = vmatmul.mubr.bf16.gmra.mrb[24].mxu0 %v8621_v36 }
 0x120   : > { %6371 = vmatprep.mubr.bf16.mxu0 %v8622_v12 }
 0x124   : > { %6064 = vmatmul.mubr.bf16.gmra.mrb[40].mxu1 %v7925_v32 }
 0x125   : > { %6067 = vmatprep.mubr.bf16.mxu1 %v7942_v39 }
 0x127   : > { %6372 = vmatmul.mubr.bf16.gmra.mrb[28].mxu0 %v8623_v11 }
 0x128   : > { %6375 = vmatprep.mubr.bf16.mxu0 %v7853_v33 }
 0x12c   : > { %6068 = vmatmul.mubr.bf16.gmra.mrb[44].mxu1 %v7988_v31 }
 0x12d   : > { %6087 = vmatprep.mubr.bf16.mxu1 %v2077_v25  ;;  %v2096_v25 = vrot.slane %v7562_v22, 1  ;;  %v8626_v22 = vld [vmem:[#allocation11_spill] sm:$0xff] }
 0x12f   : > { %6376 = vmatmul.mubr.bf16.gmra.mrb[32].mxu0 %v7881_v16 }
 0x130   : > { %6379 = vmatprep.mubr.bf16.mxu0 %v7925_v32 }
 0x134   : > { %6088 = vmatmul.mubr.bf16.vlgmr.msra.gmra.mrb[0].mxu1 %v2079_v17  ;;  %v8230_v17 = vsel %vm2074_vm9, %v2094_v49, %v2096_v25  ;;  %v7012_v49 = vld [vmem:[%s8531_s3 + $0x238] sm:$0xff]  }
 0x135   : > { %6136 = vmatpush3.bf16.msra.mxu1 %v8090_v54  ;;  %6091 = vmatprep.mubr.bf16.mxu1 %v2081_v5  ;;  %v2088_v54 = vrot.slane %v7427_v45, 1  ;;  %v2090_v45 = vrot.slane %v7441_v9, 1  ;;  %v7007_v9 = vld [vmem:[%s8531_s3 + $0xf8] sm:$0xff]  }
 0x136   : > { %6137 = vmatprep.subr.bf16.mxu1 %v6993_v40  ;;  %v8625_v5 = vld [vmem:[#allocation9_spill] sm:$0xff] }
 0x137   : > { %6380 = vmatmul.mubr.bf16.gmra.mrb[36].mxu0 %v7942_v39  ;;  %v8192_v18 = vsel %vm2074_vm9, %v2086_v26, %v2088_v54  ;;  %v8209_v21 = vsel %vm2074_vm9, %v2088_v54, %v2090_v45  ;;  %v8212_v43 = vsel %vm2074_vm9, %v2090_v45, %v2092_v30  ;;  %v8627_v26 = vld [vmem:[#allocation13_spill] sm:$0xff]  ;;  %v8628_v54 = vld [vmem:[#allocation14_spill] sm:$0xff]  ;;  %v8270_v45 = vsel %vm2074_vm9, %v2100_v41, %v2102_v61 }
 0x138   : > { %6383 = vmatprep.mubr.bf16.mxu0 %v7988_v31 }
 0x139   : > { %6138 = vmatpush3.bf16.msra.mxu1 %v6993_v40  ;;  %v7006_v40 = vld [vmem:[%s8531_s3 + $0x210] sm:$0xff]  }
 0x13a   : > { %6139 = vmatprep.subr.bf16.mxu1 %v6995_v63 }
 0x13c   : > { %6092 = vmatmul.mubr.bf16.gmra.mrb[4].mxu1 %v8171_v60 }
 0x13d   : > { %6095 = vmatprep.mubr.bf16.mxu1 %v8174_v19  ;;  %6140 = vmatpush3.bf16.msra.mxu1 %v6995_v63  ;;  %v8252_v63 = vsel %vm2074_vm9, %v2096_v25, %v2098_v48 }
 0x13e   : > { %6141 = vmatprep.subr.bf16.mxu1 %v6997_v6 }
 0x13f   : > { %6384 = vmatmul.mubr.bf16.gmra.mrb[40].mxu0 %v8044_v58 }
 0x140   : > { %6387 = vmatprep.mubr.bf16.mxu0 %v8058_v1 }
 0x141   : > { %6142 = vmatpush3.bf16.msra.mxu1 %v6997_v6  ;;  %v8255_v6 = vsel %vm2074_vm9, %v2098_v48, %v2100_v41  ;;  %v8633_v41 = vld [vmem:[#allocation24_spill] sm:$0xff] }
 0x142   : > { %6143 = vmatprep.subr.bf16.mxu1 %v7001_v7 }
 0x144   : > { %6096 = vmatmul.mubr.bf16.gmra.mrb[8].mxu1 %v8189_v24 }
 0x145   : > { %6099 = vmatprep.mubr.bf16.mxu1 %v8192_v18  ;;  %6144 = vmatpush3.bf16.msra.mxu1 %v7001_v7  ;;  %v2104_v7 = vrot.slane %v7718_v37, 1  ;;  %v2106_v37 = vrot.slane %v8621_v36, 1  ;;  %v2110_v36 = vrot.slane %v8623_v11, 1  ;;  %v2116_v11 = vrot.slane %v7925_v32, 1 }
 0x146   : > { %6145 = vmatprep.subr.bf16.mxu1 %v7003_v0 }
 0x147   : > { %6388 = vmatmul.mubr.bf16.gmra.mrb[44].mxu0 %v8203_v15  ;;  %v8273_v30 = vsel %vm2074_vm9, %v2102_v61, %v2104_v7  ;;  %v8288_v25 = vsel %vm2074_vm9, %v2104_v7, %v2106_v37  ;;  %v8636_v61 = vld [vmem:[#allocation28_spill] sm:$0xff]  ;;  %v2118_v7 = vrot.slane %v7942_v39, 1  ;;  %v2122_v39 = vrot.slane %v7990_v2, 1  ;;  %v8641_v2 = vld [vmem:[#allocation5_spill] sm:$0xff] }
 0x148   : > { %6407 = vmatprep.mubr.bf16.mxu0 %v8624_v34  ;;  %v2108_v34 = vrot.slane %v8622_v12, 1  ;;  %v2112_v12 = vrot.slane %v7853_v33, 1 }
 0x149   : > { %6146 = vmatpush3.bf16.msra.mxu1 %v7003_v0  ;;  %v7010_v0 = vld [vmem:[%s8531_s3 + $0x228] sm:$0xff]   ;;  %v8326_v32 = vsel %vm2074_vm9, %v2116_v11, %v2118_v7 }
 0x14a   : > { %6147 = vmatprep.subr.bf16.mxu1 %v7005_v38  ;;  %v8303_v48 = vsel %vm2074_vm9, %v2110_v36, %v2112_v12 }
 0x14c   : > { %6100 = vmatmul.mubr.bf16.gmra.mrb[12].mxu1 %v8209_v21 }
 0x14d   : > { %6103 = vmatprep.mubr.bf16.mxu1 %v8212_v43  ;;  %6148 = vmatpush3.bf16.msra.mxu1 %v7005_v38  ;;  %v8629_v38 = vld [vmem:[#allocation17_spill] sm:$0xff] }
 0x14e   : > { %6149 = vmatprep.subr.bf16.mxu1 %v7007_v9 }
 0x14f   : > { %6408 = vmatmul.mubr.bf16.vlgmr.msra.gmra.mrb[0].mxu0 %v8625_v5  ;;  %v8631_v5 = vld [vmem:[#allocation21_spill] sm:$0xff] }
 0x150   : > { %6456 = vmatpush3.bf16.msra.mxu0 %v8133_v42  ;;  %6411 = vmatprep.mubr.bf16.mxu0 %v8626_v22  ;;  %v7008_v42 = vld [vmem:[%s8531_s3 + $0x218] sm:$0xff]  }
 0x151   : > { %6150 = vmatpush3.bf16.msra.mxu1 %v7007_v9  ;;  %6457 = vmatprep.subr.bf16.mxu0 %v7004_v57  ;;  %v8630_v9 = vld [vmem:[#allocation18_spill] sm:$0xff] }
 0x152   : > { %6519 = vmatprep.subr.bf16.mxu1 %v8236_v51  ;;  %v8632_v22 = vld [vmem:[#allocation22_spill] sm:$0xff] }
 0x154   : > { %6104 = vmatmul.mubr.bf16.gmra.mrb[16].mxu1 %v8227_v14  ;;  %6458 = vmatpush3.bf16.msra.mxu0 %v7004_v57  ;;  %v8291_v57 = vsel %vm2074_vm9, %v2106_v37, %v2108_v34  ;;  %v4040_v37 = vshll.u32 %v8044_v58, 16 }
 0x155   : > { %6107 = vmatprep.mubr.bf16.mxu1 %v8230_v17  ;;  %6459 = vmatprep.subr.bf16.mxu0 %v7006_v40 }
 0x157   : > { %6412 = vmatmul.mubr.bf16.gmra.mrb[4].mxu0 %v8627_v26  ;;  %v2114_v26 = vrot.slane %v7881_v16, 1  ;;  %v8323_v16 = vrot.slane %v7988_v31, 1 }
 0x158   : > { %6415 = vmatprep.mubr.bf16.mxu0 %v8628_v54  ;;  %6460 = vmatpush3.bf16.msra.mxu0 %v7006_v40  ;;  %v8300_v40 = vsel %vm2074_vm9, %v2108_v34, %v2110_v36  ;;  %v8640_v34 = vld [vmem:[#allocation4_spill] sm:$0xff] }
 0x159   : > { %6461 = vmatprep.subr.bf16.mxu0 %v7008_v42  ;;  %v8312_v33 = vsel %vm2074_vm9, %v2112_v12, %v2114_v26  ;;  %v8315_v54 = vsel %vm2074_vm9, %v2114_v26, %v2116_v11  ;;  %v2123_v31 = vsel %vm2074_vm9, %v8323_v16, %v2122_v39  ;;  %v8643_v11 = vld [vmem:[#allocation8_spill] sm:$0xff] }
 0x15c   : > { %6108 = vmatmul.mubr.bf16.gmra.mrb[20].mxu1 %v8252_v63  ;;  %6462 = vmatpush3.bf16.msra.mxu0 %v7008_v42  ;;  %v8634_v42 = vld [vmem:[#allocation25_spill] sm:$0xff] }
 0x15d   : > { %6111 = vmatprep.mubr.bf16.mxu1 %v8255_v6  ;;  %6463 = vmatprep.subr.bf16.mxu0 %v7009_v53 }
 0x15f   : > { %6416 = vmatmul.mubr.bf16.gmra.mrb[8].mxu0 %v8629_v38  ;;  %v8637_v38 = vld [vmem:[#allocation31_spill] sm:$0xff] }
 0x160   : > { %6419 = vmatprep.mubr.bf16.mxu0 %v8630_v9  ;;  %6464 = vmatpush3.bf16.msra.mxu0 %v7009_v53  ;;  %v8635_v53 = vld [vmem:[#allocation27_spill] sm:$0xff]  ;;  %v8638_v9 = vld [vmem:[#allocation32_spill] sm:$0xff] }
 0x161   : > { %6465 = vmatprep.subr.bf16.mxu0 %v7010_v0 }
 0x164   : > { %6112 = vmatmul.mubr.bf16.gmra.mrb[24].mxu1 %v8270_v45  ;;  %6466 = vmatpush3.bf16.msra.mxu0 %v7010_v0  ;;  %v8330_v0 = vsel %vm2074_vm9, %v2118_v7, %v8323_v16 }
 0x165   : > { %6115 = vmatprep.mubr.bf16.mxu1 %v8273_v30  ;;  %6467 = vmatprep.subr.bf16.mxu0 %v7011_v29 }
 0x167   : > { %6420 = vmatmul.mubr.bf16.gmra.mrb[12].mxu0 %v8631_v5  ;;  %v4044_v5 = vshrl.u32 %v8044_v58, 16 }
 0x168   : > { %6423 = vmatprep.mubr.bf16.mxu0 %v8632_v22  ;;  %6468 = vmatpush3.bf16.msra.mxu0 %v7011_v29  ;;  %v8639_v29 = vld [vmem:[#allocation3_spill] sm:$0xff]  ;;  %v4056_v22 = vshll.u32 %v8203_v15, 16 }
 0x169   : > { %6469 = vmatprep.subr.bf16.mxu0 %v7012_v49 }
 0x16a   : > { %v4058_v26 = vrot.slane %v4056_v22, 1  ;;  %v2939_v22 = vshrl.u32 %v7949_v27, 16 }
 0x16c   : > { %6116 = vmatmul.mubr.bf16.gmra.mrb[28].mxu1 %v8288_v25  ;;  %6470 = vmatpush3.bf16.msra.mxu0 %v7012_v49  ;;  %v4042_v49 = vrot.slane %v4040_v37, 1  ;;  %v8645_v37 = vld [vmem:[#allocation12_spill] sm:$0xff] }
 0x16d   : > { %6119 = vmatprep.mubr.bf16.mxu1 %v8291_v57 }
 0x16e   : > { %v4046_v12 = vor.u32 %v4044_v5, %v4042_v49  ;;  %v7027_v5 = vld [vmem:[%s8531_s3 + $0x138] sm:$0xff]  }
 0x16f   : > { %6424 = vmatmul.mubr.bf16.gmra.mrb[16].mxu0 %v8633_v41  ;;  %v8361_v41 = vld [vmem:[#allocation2 + $0xd8] ss:$0 sps:$4 sm:$0xff]  }
 0x170   : > { %6427 = vmatprep.mubr.bf16.mxu0 %v8634_v42  ;;  %v8642_v42 = vld [vmem:[#allocation7_spill] sm:$0xff]  ;;  %v4064_v7 = vshll.u32 %v8361_v41, 16 }
 0x174   : > { %6120 = vmatmul.mubr.bf16.gmra.mrb[32].mxu1 %v8300_v40 }
 0x175   : > { %6123 = vmatprep.mubr.bf16.mxu1 %v8303_v48 }
 0x177   : > { %6428 = vmatmul.mubr.bf16.gmra.mrb[20].mxu0 %v8635_v53  ;;  %v7023_v53 = vld [vmem:[%s8531_s3 + $0x118] sm:$0xff]  }
 0x178   : > { %6431 = vmatprep.mubr.bf16.mxu0 %v8636_v61 }
 0x17c   : > { %6124 = vmatmul.mubr.bf16.gmra.mrb[36].mxu1 %v8312_v33 }
 0x17d   : > { %6127 = vmatprep.mubr.bf16.mxu1 %v8315_v54 }
 0x17f   : > { %6432 = vmatmul.mubr.bf16.gmra.mrb[24].mxu0 %v8637_v38 }
 0x180   : > { %6435 = vmatprep.mubr.bf16.mxu0 %v8638_v9  ;;  %v7024_v9 = vld [vmem:[%s8531_s3 + $0x120] sm:$0xff]  }
 0x184   : > { %6128 = vmatmul.mubr.bf16.gmra.mrb[40].mxu1 %v8326_v32 }
 0x185   : > { %6131 = vmatprep.mubr.bf16.mxu1 %v8330_v0 }
 0x187   : > { %6436 = vmatmul.mubr.bf16.gmra.mrb[28].mxu0 %v7887_v35  ;;  %v7021_v35 = vld [vmem:[%s8531_s3 + $0x108] sm:$0xff]  }
 0x188   : > { %6439 = vmatprep.mubr.bf16.mxu0 %v7913_v44  ;;  %v4048_v44 = vshll.u32 %v8058_v1, 16 }
 0x18a   : > { %v4050_v36 = vrot.slane %v4048_v44, 1  ;;  %v8647_v44 = vld [vmem:[#allocation16_spill] sm:$0xff] }
 0x18c   : > { %6132 = vmatmul.mubr.bf16.gmra.mrb[44].mxu1 %v2123_v31  ;;  %v4051_v61 = vsel %vm1298_vm8, %v4046_v12, %v4050_v36  ;;  %v4066_v31 = vrot.slane %v4064_v7, 1 }
 0x18d   : > { %6151 = vmatprep.mubr.bf16.mxu1 %v8639_v29  ;;  %v8644_v29 = vld [vmem:[#allocation10_spill] sm:$0xff] }
 0x18f   : > { %6440 = vmatmul.mubr.bf16.gmra.mrb[32].mxu0 %v7959_v28  ;;  %v4043_v28 = vsel %vm1298_vm8, %v8011_v10, %v4042_v49 }
 0x190   : > { %6443 = vmatprep.mubr.bf16.mxu0 %v7968_v46  ;;  %v4052_v46 = vshrl.u32 %v8058_v1, 16 }
 0x192   : > { %v4054_v10 = vor.u32 %v4052_v46, %v4050_v36  ;;  %v8649_v46 = vld [vmem:[#allocation20_spill] sm:$0xff]  ;;  %v4378_v36 = vrot.slane %v8044_v58, 1  ;;  %v4380_v58 = vrot.slane %v8058_v1, 1 }
 0x194   : > { %6152 = vmatmul.mubr.bf16.vlgmr.msra.gmra.mrb[0].mxu1 %v8640_v34  ;;  %v4059_v38 = vsel %vm1298_vm8, %v4054_v10, %v4058_v26  ;;  %v7025_v34 = vld [vmem:[%s8531_s3 + $0x128] sm:$0xff]  }
 0x195   : > { %6527 = vmatpush3.bf16.msra.mxu1 %v8236_v51  ;;  %6155 = vmatprep.mubr.bf16.mxu1 %v8641_v2  ;;  %v7022_v51 = vld [vmem:[%s8531_s3 + $0x110] sm:$0xff]  }
 0x196   : > { %6520 = vmatprep.subr.bf16.mxu1 %v7021_v35  ;;  %v7026_v2 = vld [vmem:[%s8531_s3 + $0x130] sm:$0xff]  }
 0x197   : > { %6444 = vmatmul.mubr.bf16.gmra.mrb[36].mxu0 %v8009_v47  ;;  %v4060_v47 = vshrl.u32 %v8203_v15, 16 }
 0x198   : > { %6447 = vmatprep.mubr.bf16.mxu0 %v4043_v28  ;;  %v8648_v28 = vld [vmem:[#allocation19_spill] sm:$0xff] }
 0x199   : > { %6528 = vmatpush3.bf16.msra.mxu1 %v7021_v35  ;;  %v4062_v39 = vor.u32 %v4060_v47, %v4058_v26  ;;  %v8646_v35 = vld [vmem:[#allocation15_spill] sm:$0xff]  ;;  %v4379_v26 = vsel %vm2074_vm9, %v8323_v16, %v4378_v36  ;;  %v4382_v47 = vrot.slane %v8203_v15, 1  ;;  %v2983_v15 = vshll.u32 %v8032_v3, 16 }
 0x19a   : > { %6521 = vmatprep.subr.bf16.mxu1 %v7022_v51 }
 0x19b   : > { %v4067_v49 = vsel %vm1298_vm8, %v4062_v39, %v4066_v31  ;;  %v2979_v31 = vshrl.u32 %v8028_v62, 16 }
 0x19c   : > { %6156 = vmatmul.mubr.bf16.gmra.mrb[4].mxu1 %v8642_v42 }
 0x19d   : > { %6159 = vmatprep.mubr.bf16.mxu1 %v8643_v11  ;;  %6529 = vmatpush3.bf16.msra.mxu1 %v7022_v51  ;;  %v2947_v51 = vshrl.u32 %v7977_v55, 16  ;;  %v2955_v11 = vshrl.u32 %v7982_v8, 16 }
 0x19e   : > { %6522 = vmatprep.subr.bf16.mxu1 %v7023_v53 }
 0x19f   : > { %6448 = vmatmul.mubr.bf16.gmra.mrb[40].mxu0 %v4051_v61 }
 0x1a0   : > { %6451 = vmatprep.mubr.bf16.mxu0 %v4059_v38 }
 0x1a1   : > { %6530 = vmatpush3.bf16.msra.mxu1 %v7023_v53  ;;  %v2967_v53 = vshll.u32 %v8005_v4, 16 }
 0x1a2   : > { %6523 = vmatprep.subr.bf16.mxu1 %v7024_v9 }
 0x1a3   : > { %v2969_v38 = vrot.slane %v2967_v53, 1 }
 0x1a4   : > { %6160 = vmatmul.mubr.bf16.gmra.mrb[8].mxu1 %v8644_v29  ;;  %v4384_v29 = vrot.slane %v8361_v41, 1  ;;  %v2999_v41 = vshll.u32 %v8053_v59, 16 }
 0x1a5   : > { %6163 = vmatprep.mubr.bf16.mxu1 %v8645_v37  ;;  %6531 = vmatpush3.bf16.msra.mxu1 %v7024_v9  ;;  %v2975_v9 = vshll.u32 %v8028_v62, 16 }
 0x1a6   : > { %6524 = vmatprep.subr.bf16.mxu1 %v7025_v34 }
 0x1a7   : > { %6452 = vmatmul.mubr.bf16.gmra.mrb[44].mxu0 %v4067_v49  ;;  %v2977_v37 = vrot.slane %v2975_v9, 1 }
 0x1a8   : > { %6471 = vmatprep.mubr.bf16.mxu0 %v8171_v60  ;;  %v8650_v60 = vld [vmem:[#allocation33_spill] sm:$0xff] }
 0x1a9   : > { %6532 = vmatpush3.bf16.msra.mxu1 %v7025_v34  ;;  %v2981_v49 = vor.u32 %v2979_v31, %v2977_v37 }
 0x1aa   : > { %6525 = vmatprep.subr.bf16.mxu1 %v7026_v2 }
 0x1ac   : > { %6164 = vmatmul.mubr.bf16.gmra.mrb[12].mxu1 %v8646_v35  ;;  %v4385_v35 = vsel %vm2074_vm9, %v4382_v47, %v4384_v29 }
 0x1ad   : > { %6167 = vmatprep.mubr.bf16.mxu1 %v8647_v44  ;;  %6533 = vmatpush3.bf16.msra.mxu1 %v7026_v2  ;;  %v2985_v2 = vrot.slane %v2983_v15, 1 }
 0x1ae   : > { %6526 = vmatprep.subr.bf16.mxu1 %v7027_v5 }
 0x1af   : > { %6472 = vmatmul.mubr.bf16.vlgmr.msra.gmra.mrb[0].mxu0 %v8174_v19  ;;  %v2919_v19 = vshll.u32 %v8650_v60, 16 }
 0x1b0   : > { %6475 = vmatprep.mubr.bf16.mxu0 %v8189_v24  ;;  %v8651_v24 = vld [vmem:[#allocation23_spill] sm:$0xff] }
 0x1b1   : > { %6534 = vmatpush3.bf16.msra.mxu1 %v7027_v5  ;;  %v2986_v5 = vsel %vm1298_vm8, %v2981_v49, %v2985_v2 }
 0x1b4   : > { %6168 = vmatmul.mubr.bf16.gmra.mrb[16].mxu1 %v8648_v28  ;;  %v2995_v28 = vshrl.u32 %v8049_v56, 16 }
 0x1b5   : > { %6171 = vmatprep.mubr.bf16.mxu1 %v8649_v46 }
 0x1b7   : > { %6476 = vmatmul.mubr.bf16.gmra.mrb[4].mxu0 %v8192_v18 }
 0x1b8   : > { %6479 = vmatprep.mubr.bf16.mxu0 %v8209_v21  ;;  %v2921_v21 = vrot.slane %v2919_v19, 1  ;;  %v3001_v19 = vrot.slane %v2999_v41, 1 }
 0x1bc   : > { %6172 = vmatmul.mubr.bf16.gmra.mrb[20].mxu1 %v7577_v13  ;;  %v2915_v13 = vshrl.u32 %v7646_v50, 16 }
 0x1bd   : > { %6175 = vmatprep.mubr.bf16.mxu1 %v7646_v50  ;;  %v2931_v50 = vshrl.u32 %v7937_v20, 16 }
 0x1be   : > { %v2917_v18 = vor.u32 %v2915_v13, %v8651_v24 }
 0x1bf   : > { %6480 = vmatmul.mubr.bf16.gmra.mrb[8].mxu0 %v8212_v43  ;;  %v2927_v43 = vshll.u32 %v7937_v20, 16 }
 0x1c0   : > { %6483 = vmatprep.mubr.bf16.mxu0 %v8227_v14  ;;  %v2923_v14 = vshrl.u32 %v8650_v60, 16 }
 0x1c4   : > { %6176 = vmatmul.mubr.bf16.gmra.mrb[24].mxu1 %v8650_v60 }
 0x1c5   : > { %6179 = vmatprep.mubr.bf16.mxu1 %v7937_v20 }
 0x1c7   : > { %6484 = vmatmul.mubr.bf16.gmra.mrb[12].mxu0 %v8230_v17  ;;  %v2922_v17 = vsel %vm1298_vm8, %v2917_v18, %v2921_v21  ;;  %v3003_v18 = vshrl.u32 %v8053_v59, 16 }
 0x1c8   : > { %6487 = vmatprep.mubr.bf16.mxu0 %v8252_v63  ;;  %v2935_v63 = vshll.u32 %v7949_v27, 16 }
 0x1cc   : > { %6180 = vmatmul.mubr.bf16.gmra.mrb[28].mxu1 %v7949_v27  ;;  %v2959_v27 = vshll.u32 %v8000_v23, 16 }
 0x1cd   : > { %6183 = vmatprep.mubr.bf16.mxu1 %v7977_v55 }
 0x1ce   : > { %v2961_v61 = vrot.slane %v2959_v27, 1 }
 0x1cf   : > { %6488 = vmatmul.mubr.bf16.gmra.mrb[16].mxu0 %v8255_v6  ;;  %v2929_v6 = vrot.slane %v2927_v43, 1 }
 0x1d0   : > { %6491 = vmatprep.mubr.bf16.mxu0 %v8270_v45  ;;  %v2925_v45 = vor.u32 %v2923_v14, %v2921_v21  ;;  %v3007_v21 = vshll.u32 %v8068_v52, 16 }
 0x1d2   : > { %v3009_v43 = vrot.slane %v3007_v21, 1 }
 0x1d4   : > { %6184 = vmatmul.mubr.bf16.gmra.mrb[32].mxu1 %v7982_v8 }
 0x1d5   : > { %6187 = vmatprep.mubr.bf16.mxu1 %v8000_v23 }
 0x1d7   : > { %6492 = vmatmul.mubr.bf16.gmra.mrb[20].mxu0 %v8273_v30  ;;  %v2933_v30 = vor.u32 %v2931_v50, %v2929_v6 }
 0x1d8   : > { %6495 = vmatprep.mubr.bf16.mxu0 %v8288_v25  ;;  %v2937_v25 = vrot.slane %v2935_v63, 1 }
 0x1da   : > { %v2938_v20 = vsel %vm1298_vm8, %v2933_v30, %v2937_v25  ;;  %v2941_v12 = vor.u32 %v2939_v22, %v2937_v25 }
 0x1dc   : > { %6188 = vmatmul.mubr.bf16.gmra.mrb[36].mxu1 %v8005_v4 }
 0x1dd   : > { %6191 = vmatprep.mubr.bf16.mxu1 %v8028_v62  ;;  %v2987_v62 = vshrl.u32 %v8032_v3, 16 }
 0x1df   : > { %6496 = vmatmul.mubr.bf16.gmra.mrb[24].mxu0 %v8291_v57  ;;  %v2943_v57 = vshll.u32 %v7977_v55, 16  ;;  %v2989_v60 = vor.u32 %v2987_v62, %v2985_v2 }
 0x1e0   : > { %6499 = vmatprep.mubr.bf16.mxu0 %v8300_v40  ;;  %v2930_v40 = vsel %vm1298_vm8, %v2925_v45, %v2929_v6 }
 0x1e4   : > { %6192 = vmatmul.mubr.bf16.gmra.mrb[40].mxu1 %v8032_v3 }
 0x1e5   : > { %6195 = vmatprep.mubr.bf16.mxu1 %v8049_v56 }
 0x1e7   : > { %6500 = vmatmul.mubr.bf16.gmra.mrb[28].mxu0 %v8303_v48  ;;  %v2951_v48 = vshll.u32 %v7982_v8, 16  ;;  %v4381_v8 = vsel %vm2074_vm9, %v4378_v36, %v4380_v58 }
 0x1e8   : > { %6503 = vmatprep.mubr.bf16.mxu0 %v8312_v33  ;;  %v2945_v33 = vrot.slane %v2943_v57, 1 }
 0x1e9   : > { %v2953_v10 = vrot.slane %v2951_v48, 1 }
 0x1ea   : > { %v2949_v42 = vor.u32 %v2947_v51, %v2945_v33  ;;  %v2946_v55 = vsel %vm1298_vm8, %v2941_v12, %v2945_v33 }
 0x1eb   : > { %v2957_v16 = vor.u32 %v2955_v11, %v2953_v10 }
 0x1ec   : > { %6196 = vmatmul.mubr.bf16.gmra.mrb[44].mxu1 %v8053_v59 }
 0x1ed   : > { %6239 = vmatprep.mubr.bf16.mxu1 %v2922_v17  ;;  %v2962_v39 = vsel %vm1298_vm8, %v2957_v16, %v2961_v61 }
 0x1ef   : > { %6504 = vmatmul.mubr.bf16.gmra.mrb[32].mxu0 %v8315_v54  ;;  %v2954_v54 = vsel %vm1298_vm8, %v2949_v42, %v2953_v10 }
 0x1f0   : > { %6507 = vmatprep.mubr.bf16.mxu0 %v8326_v32  ;;  %v2963_v32 = vshrl.u32 %v8000_v23, 16  ;;  %v4383_v23 = vsel %vm2074_vm9, %v4380_v58, %v4382_v47 }
 0x1f2   : > { %v2965_v7 = vor.u32 %v2963_v32, %v2961_v61 }
 0x1f4   : > { %6240 = vmatmul.mubr.bf16.vlgmr.msra.gmra.mrb[24].mxu1 %v2930_v40  ;;  %v2970_v1 = vsel %vm1298_vm8, %v2965_v7, %v2969_v38 }
 0x1f5   : > { %6243 = vmatprep.mubr.bf16.mxu1 %v2938_v20 }
 0x1f7   : > { %6508 = vmatmul.mubr.bf16.gmra.mrb[36].mxu0 %v8330_v0  ;;  %v2971_v0 = vshrl.u32 %v8005_v4, 16  ;;  %v2991_v4 = vshll.u32 %v8049_v56, 16  ;;  %v3005_v56 = vor.u32 %v3003_v18, %v3001_v19 }
 0x1f8   : > { %6511 = vmatprep.mubr.bf16.mxu0 %v4379_v26 }
 0x1f9   : > { %v2973_v34 = vor.u32 %v2971_v0, %v2969_v38  ;;  %v2993_v46 = vrot.slane %v2991_v4, 1  ;;  %v3010_v14 = vsel %vm1298_vm8, %v3005_v56, %v3009_v43 }
 0x1fb   : > { %v2978_v44 = vsel %vm1298_vm8, %v2973_v34, %v2977_v37  ;;  %v2997_v13 = vor.u32 %v2995_v28, %v2993_v46  ;;  %v2994_v24 = vsel %vm1298_vm8, %v2989_v60, %v2993_v46 }
 0x1fc   : > { %6244 = vmatmul.mubr.bf16.gmra.mrb[28].mxu1 %v2946_v55 }
 0x1fd   : > { %6247 = vmatprep.mubr.bf16.mxu1 %v2954_v54  ;;  %v3002_v3 = vsel %vm1298_vm8, %v2997_v13, %v3001_v19 }
 0x1ff   : > { %6512 = vmatmul.mubr.bf16.gmra.mrb[40].mxu0 %v4381_v8 }
 0x200   : > { %6515 = vmatprep.mubr.bf16.mxu0 %v4383_v23 }
 0x204   : > { %6248 = vmatmul.mubr.bf16.gmra.mrb[32].mxu1 %v2962_v39 }
 0x205   : > { %6251 = vmatprep.mubr.bf16.mxu1 %v2970_v1 }
 0x207   : > { %6516 = vmatmul.mubr.bf16.gmra.mrb[44].mxu0 %v4385_v35 }
 0x20c   : > { %6252 = vmatmul.mubr.bf16.gmra.mrb[36].mxu1 %v2978_v44 }
 0x20d   : > { %6255 = vmatprep.mubr.bf16.mxu1 %v2986_v5 }
 0x214   : > { %6256 = vmatmul.mubr.bf16.gmra.mrb[40].mxu1 %v2994_v24 }
 0x215   : > { %6259 = vmatprep.mubr.bf16.mxu1 %v3002_v3 }
 0x21c   : > { %6260 = vmatmul.mubr.bf16.gmra.mrb[44].mxu1 %v3010_v14 }
 0x267   : > { %v6153_v17 = vpop.f32.mrb[0].mxu1 }
 0x268   : > { %v2588_v50 = vpop.f32.mrb[1].mxu1 }
 0x269   : > { %v6154_v63 = vpop.f32.mrb[2].mxu1 }
 0x26a   : > { %v2591_v6 = vpop.f32.mrb[3].mxu1 }
 0x26f   : > { %v6157_v45 = vpop.f32.mrb[4].mxu1 }
 0x270   : > { %v2603_v30 = vpop.f32.mrb[5].mxu1 }
 0x271   : > { %v6158_v25 = vpop.f32.mrb[6].mxu1 }
 0x272   : > { %v2606_v57 = vpop.f32.mrb[7].mxu1 }
 0x277   : > { %v6161_v59 = vpop.f32.mrb[8].mxu1 }
 0x278   : > { %v2618_v40 = vpop.f32.mrb[9].mxu1 }
 0x279   : > { %v6162_v52 = vpop.f32.mrb[10].mxu1 }
 0x27a   : > { %v2620_v22 = vpop.f32.mrb[11].mxu1 }
 0x27f   : > { %v6165_v20 = vpop.f32.mrb[12].mxu1 }
 0x280   : > { %v8470_v51 = vpop.f32.mrb[13].mxu1 }
 0x281   : > { %v8472_v48 = vpop.f32.mrb[14].mxu1 }
 0x282   : > { %v8474_v33 = vpop.f32.mrb[15].mxu1  ;;  %v6473_v36 = vpop.f32.mrb[0].mxu0 }
 0x283   : > { %v4472_v12 = vpop.f32.mrb[1].mxu0 }
 0x284   : > { %v6535_v10 = vadd.f32 %v4472_v12, %v2588_v50  ;;  %v6474_v27 = vpop.f32.mrb[2].mxu0 }
 0x285   : > { %v6536_v55 = vadd.f32 %v6474_v27, %v6154_v63  ;;  %v4475_v11 = vpop.f32.mrb[3].mxu0 }
 0x286   : > { %v6537_v32 = vadd.f32 %v4475_v11, %v2591_v6 }
 0x287   : > { %v8476_v42 = vpop.f32.mrb[16].mxu1 }
 0x288   : > { %v8478_v26 = vpop.f32.mrb[17].mxu1  ;;  %v4679_v58 = vpack.c.bf16 %v6537_v32, %v6535_v10 }
 0x289   : > { %v8480_v54 = vpop.f32.mrb[18].mxu1 }
 0x28a   : > { %v2650_v53 = vpop.f32.mrb[19].mxu1  ;;  %5549 = vst [vmem:[%s8487_s13] sm:$0xff] %v4679_v58   ;;  %v4839_v61 = vunpack.c.l.bf16 %v4679_v58  ;;  %v4840_v47 = vunpack.c.h.bf16 %v4679_v58  ;;  %v6477_v16 = vpop.f32.mrb[4].mxu0 }
 0x28b   : > { %v6538_v7 = vadd.f32 %v6477_v16, %v6157_v45  ;;  %v4487_v38 = vpop.f32.mrb[5].mxu0 }
 0x28c   : > { %v6539_v9 = vadd.f32 %v4487_v38, %v2603_v30  ;;  %v6478_v23 = vpop.f32.mrb[6].mxu0  ;;  %v4909_v15 = vmul.f32 %v4839_v61, %v4839_v61  ;;  %v4910_v29 = vmul.f32 %v4840_v47, %v4840_v47  ;;  %v4871_v2 = vadd.f32 %v4840_v47, %v4839_v61 }
 0x28d   : > { %v6540_v0 = vadd.f32 %v6478_v23, %v6158_v25  ;;  %v4490_v1 = vpop.f32.mrb[7].mxu0 }
 0x28e   : > { %v4680_v37 = vpack.c.bf16 %v6539_v9, %v6536_v55  ;;  %v4941_v44 = vadd.f32 %v4910_v29, %v4909_v15 }
 0x28f   : > { %v8490_v8 = vpop.f32.mrb[20].mxu1  ;;  %v4681_v49 = vpack.c.bf16 %v6540_v0, %v6538_v7 }
 0x290   : > { %v2662_v39 = vpop.f32.mrb[21].mxu1  ;;  %5640 = vst [vmem:[%s8487_s13 + $0x8] sm:$0xff] %v4680_v37   ;;  %v4841_v35 = vunpack.c.l.bf16 %v4680_v37  ;;  %v4842_v4 = vunpack.c.h.bf16 %v4680_v37 }
 0x291   : > { %v6174_v31 = vpop.f32.mrb[22].mxu1  ;;  %5641 = vst [vmem:[%s8487_s13 + $0x10] sm:$0xff] %v4681_v49   ;;  %v4843_v28 = vunpack.c.l.bf16 %v4681_v49  ;;  %v4844_v18 = vunpack.c.h.bf16 %v4681_v49 }
 0x292   : > { %v8492_v34 = vpop.f32.mrb[23].mxu1  ;;  %v4872_v62 = vadd.f32 %v4871_v2, %v4841_v35  ;;  %v4911_v5 = vmul.f32 %v4841_v35, %v4841_v35  ;;  %v6481_v41 = vpop.f32.mrb[8].mxu0  ;;  %v4912_v19 = vmul.f32 %v4842_v4, %v4842_v4 }
 0x293   : > { %v6541_v46 = vadd.f32 %v6481_v41, %v6161_v59  ;;  %v4502_v60 = vpop.f32.mrb[9].mxu0  ;;  %v4913_v14 = vmul.f32 %v4843_v28, %v4843_v28  ;;  %v4914_v63 = vmul.f32 %v4844_v18, %v4844_v18 }
 0x294   : > { %v4873_v13 = vadd.f32 %v4872_v62, %v4842_v4  ;;  %v4942_v24 = vadd.f32 %v4941_v44, %v4911_v5  ;;  %v6482_v21 = vpop.f32.mrb[10].mxu0 }
 0x295   : > { %v4504_v3 = vpop.f32.mrb[11].mxu0 }
 0x296   : > { %v4943_v56 = vadd.f32 %v4942_v24, %v4912_v19  ;;  %v4874_v43 = vadd.f32 %v4873_v13, %v4843_v28  ;;  %v6542_v17 = vadd.f32 %v4504_v3, %v2620_v22 }
 0x298   : > { %v4875_v50 = vadd.f32 %v4874_v43, %v4844_v18  ;;  %v4944_v6 = vadd.f32 %v4943_v56, %v4913_v14  ;;  %v4682_v45 = vpack.c.bf16 %v6541_v46, %v6542_v17 }
 0x29a   : > { %v4945_v30 = vadd.f32 %v4944_v6, %v4914_v63  ;;  %5642 = vst [vmem:[%s8487_s13 + $0x18] sm:$0xff] %v4682_v45   ;;  %v4845_v25 = vunpack.c.l.bf16 %v4682_v45  ;;  %v4846_v57 = vunpack.c.h.bf16 %v4682_v45  ;;  %v6485_v59 = vpop.f32.mrb[12].mxu0 }
 0x29b   : > { %v4516_v40 = vpop.f32.mrb[13].mxu0 }
 0x29c   : > { %v4876_v52 = vadd.f32 %v4875_v50, %v4845_v25  ;;  %v4915_v20 = vmul.f32 %v4845_v25, %v4845_v25  ;;  %v6543_v36 = vadd.f32 %v4516_v40, %v8470_v51  ;;  %v6486_v12 = vpop.f32.mrb[14].mxu0  ;;  %v4916_v55 = vmul.f32 %v4846_v57, %v4846_v57 }
 0x29d   : > { %v6544_v10 = vadd.f32 %v6486_v12, %v8472_v48  ;;  %v4519_v27 = vpop.f32.mrb[15].mxu0 }
 0x29e   : > { %v4877_v22 = vadd.f32 %v4876_v52, %v4846_v57  ;;  %v4946_v11 = vadd.f32 %v4945_v30, %v4915_v20  ;;  %v6545_v32 = vadd.f32 %v4519_v27, %v8474_v33 }
 0x2a0   : > { %v4947_v53 = vadd.f32 %v4946_v11, %v4916_v55  ;;  %v4683_v58 = vpack.c.bf16 %v6545_v32, %v6543_v36 }
 0x2a2   : > { %5643 = vst [vmem:[%s8487_s13 + $0x20] sm:$0xff] %v4683_v58   ;;  %v4847_v61 = vunpack.c.l.bf16 %v4683_v58  ;;  %v4848_v47 = vunpack.c.h.bf16 %v4683_v58  ;;  %v6489_v16 = vpop.f32.mrb[16].mxu0 }
 0x2a3   : > { %v6546_v7 = vadd.f32 %v6489_v16, %v8476_v42  ;;  %v4531_v38 = vpop.f32.mrb[17].mxu0 }
 0x2a4   : > { %v4878_v51 = vadd.f32 %v4877_v22, %v4847_v61  ;;  %v4917_v9 = vmul.f32 %v4847_v61, %v4847_v61  ;;  %v6547_v48 = vadd.f32 %v4531_v38, %v8478_v26  ;;  %v6490_v23 = vpop.f32.mrb[18].mxu0  ;;  %v4918_v1 = vmul.f32 %v4848_v47, %v4848_v47 }
 0x2a5   : > { %v6548_v39 = vadd.f32 %v6490_v23, %v8480_v54  ;;  %v4534_v0 = vpop.f32.mrb[19].mxu0 }
 0x2a6   : > { %v4879_v33 = vadd.f32 %v4878_v51, %v4848_v47  ;;  %v4948_v31 = vadd.f32 %v4947_v53, %v4917_v9  ;;  %v4684_v15 = vpack.c.bf16 %v6547_v48, %v6544_v10 }
 0x2a7   : > { %v4685_v29 = vpack.c.bf16 %v6548_v39, %v6546_v7 }
 0x2a8   : > { %v4949_v37 = vadd.f32 %v4948_v31, %v4918_v1  ;;  %5644 = vst [vmem:[%s8487_s13 + $0x28] sm:$0xff] %v4684_v15   ;;  %v4849_v49 = vunpack.c.l.bf16 %v4684_v15  ;;  %v4850_v2 = vunpack.c.h.bf16 %v4684_v15 }
 0x2a9   : > { %5645 = vst [vmem:[%s8487_s13 + $0x30] sm:$0xff] %v4685_v29   ;;  %v4851_v4 = vunpack.c.l.bf16 %v4685_v29  ;;  %v4852_v41 = vunpack.c.h.bf16 %v4685_v29 }
 0x2aa   : > { %v4880_v42 = vadd.f32 %v4879_v33, %v4849_v49  ;;  %v4919_v35 = vmul.f32 %v4849_v49, %v4849_v49  ;;  %v6493_v44 = vpop.f32.mrb[20].mxu0  ;;  %v4920_v5 = vmul.f32 %v4850_v2, %v4850_v2 }
 0x2ab   : > { %v6549_v26 = vadd.f32 %v6493_v44, %v8490_v8  ;;  %v4546_v62 = vpop.f32.mrb[21].mxu0  ;;  %v4921_v24 = vmul.f32 %v4851_v4, %v4851_v4  ;;  %v4922_v3 = vmul.f32 %v4852_v41, %v4852_v41 }
 0x2ac   : > { %v4881_v54 = vadd.f32 %v4880_v42, %v4850_v2  ;;  %v4950_v28 = vadd.f32 %v4949_v37, %v4919_v35  ;;  %v6494_v46 = vpop.f32.mrb[22].mxu0 }
 0x2ad   : > { %v4548_v60 = vpop.f32.mrb[23].mxu0 }
 0x2ae   : > { %v4951_v13 = vadd.f32 %v4950_v28, %v4920_v5  ;;  %v4882_v19 = vadd.f32 %v4881_v54, %v4851_v4  ;;  %v6550_v18 = vadd.f32 %v4548_v60, %v8492_v34 }
 0x2b0   : > { %v4883_v21 = vadd.f32 %v4882_v19, %v4852_v41  ;;  %v4952_v56 = vadd.f32 %v4951_v13, %v4921_v24  ;;  %v4686_v43 = vpack.c.bf16 %v6549_v26, %v6550_v18 }
 0x2b2   : > { %v4953_v14 = vadd.f32 %v4952_v56, %v4922_v3  ;;  %5646 = vst [vmem:[%s8487_s13 + $0x38] sm:$0xff] %v4686_v43   ;;  %v4853_v8 = vunpack.c.l.bf16 %v4686_v43  ;;  %v4854_v17 = vunpack.c.h.bf16 %v4686_v43  ;;  %v6497_v50 = vpop.f32.mrb[24].mxu0 }
 0x2b3   : > { %v4560_v63 = vpop.f32.mrb[25].mxu0 }
 0x2b4   : > { %v4884_v6 = vadd.f32 %v4883_v21, %v4853_v8  ;;  %v4923_v45 = vmul.f32 %v4853_v8, %v4853_v8  ;;  %v6498_v30 = vpop.f32.mrb[26].mxu0  ;;  %v4924_v59 = vmul.f32 %v4854_v17, %v4854_v17 }
 0x2b5   : > { %v4563_v25 = vpop.f32.mrb[27].mxu0 }
 0x2b6   : > { %v4885_v57 = vadd.f32 %v4884_v6, %v4854_v17  ;;  %v4954_v40 = vadd.f32 %v4953_v14, %v4923_v45 }
 0x2b8   : > { %v4955_v52 = vadd.f32 %v4954_v40, %v4924_v59 }
 0x2ba   : > { %v6501_v20 = vpop.f32.mrb[28].mxu0 }
 0x2bb   : > { %v4575_v34 = vpop.f32.mrb[29].mxu0 }
 0x2bc   : > { %v6502_v36 = vpop.f32.mrb[30].mxu0 }
 0x2bd   : > { %v4578_v12 = vpop.f32.mrb[31].mxu0 }
 0x2c2   : > { %v6505_v10 = vpop.f32.mrb[32].mxu0 }
 0x2c3   : > { %v4590_v27 = vpop.f32.mrb[33].mxu0 }
 0x2c4   : > { %v6506_v55 = vpop.f32.mrb[34].mxu0 }
 0x2c5   : > { %v4592_v32 = vpop.f32.mrb[35].mxu0 }
 0x2c7   : > { %v6241_v22 = vpop.f32.mrb[24].mxu1 }
 0x2c8   : > { %v3205_v11 = vpop.f32.mrb[25].mxu1 }
 0x2c9   : > { %v6242_v53 = vpop.f32.mrb[26].mxu1  ;;  %v6551_v58 = vadd.f32 %v4560_v63, %v3205_v11 }
 0x2ca   : > { %v3208_v61 = vpop.f32.mrb[27].mxu1  ;;  %v6552_v47 = vadd.f32 %v6498_v30, %v6242_v53  ;;  %v6509_v38 = vpop.f32.mrb[36].mxu0 }
 0x2cb   : > { %v6553_v16 = vadd.f32 %v4563_v25, %v3208_v61  ;;  %v4604_v51 = vpop.f32.mrb[37].mxu0 }
 0x2cc   : > { %v6510_v39 = vpop.f32.mrb[38].mxu0 }
 0x2cd   : > { %v4687_v7 = vpack.c.bf16 %v6553_v16, %v6551_v58  ;;  %v4607_v1 = vpop.f32.mrb[39].mxu0 }
 0x2cf   : > { %5647 = vst [vmem:[%s8487_s13 + $0x40] sm:$0xff] %v4687_v7   ;;  %v4855_v9 = vunpack.c.l.bf16 %v4687_v7  ;;  %v4856_v48 = vunpack.c.h.bf16 %v4687_v7  ;;  %v6245_v23 = vpop.f32.mrb[28].mxu1 }
 0x2d0   : > { %v3220_v0 = vpop.f32.mrb[29].mxu1  ;;  %v6554_v33 = vadd.f32 %v6501_v20, %v6245_v23 }
 0x2d1   : > { %v4886_v31 = vadd.f32 %v4885_v57, %v4855_v9  ;;  %v4925_v15 = vmul.f32 %v4855_v9, %v4855_v9  ;;  %v6246_v29 = vpop.f32.mrb[30].mxu1  ;;  %v6555_v37 = vadd.f32 %v4575_v34, %v3220_v0  ;;  %v4926_v35 = vmul.f32 %v4856_v48, %v4856_v48 }
 0x2d2   : > { %v3223_v49 = vpop.f32.mrb[31].mxu1  ;;  %v6556_v2 = vadd.f32 %v6502_v36, %v6246_v29  ;;  %v6513_v28 = vpop.f32.mrb[40].mxu0 }
 0x2d3   : > { %v4887_v42 = vadd.f32 %v4886_v31, %v4856_v48  ;;  %v4956_v4 = vadd.f32 %v4955_v52, %v4925_v15  ;;  %v4688_v44 = vpack.c.bf16 %v6555_v37, %v6552_v47  ;;  %v4619_v41 = vpop.f32.mrb[41].mxu0 }
 0x2d4   : > { %v4689_v26 = vpack.c.bf16 %v6556_v2, %v6554_v33  ;;  %v6514_v24 = vpop.f32.mrb[42].mxu0 }
 0x2d5   : > { %v4957_v62 = vadd.f32 %v4956_v4, %v4926_v35  ;;  %5648 = vst [vmem:[%s8487_s13 + $0x48] sm:$0xff] %v4688_v44   ;;  %v4857_v54 = vunpack.c.l.bf16 %v4688_v44  ;;  %v4858_v5 = vunpack.c.h.bf16 %v4688_v44  ;;  %v4622_v3 = vpop.f32.mrb[43].mxu0 }
 0x2d6   : > { %5649 = vst [vmem:[%s8487_s13 + $0x50] sm:$0xff] %v4689_v26   ;;  %v4859_v13 = vunpack.c.l.bf16 %v4689_v26  ;;  %v4860_v8 = vunpack.c.h.bf16 %v4689_v26 }
 0x2d7   : > { %v4888_v46 = vadd.f32 %v4887_v42, %v4857_v54  ;;  %v4927_v60 = vmul.f32 %v4857_v54, %v4857_v54  ;;  %v6249_v19 = vpop.f32.mrb[32].mxu1  ;;  %v4928_v43 = vmul.f32 %v4858_v5, %v4858_v5 }
 0x2d8   : > { %v3235_v18 = vpop.f32.mrb[33].mxu1  ;;  %v6557_v21 = vadd.f32 %v6505_v10, %v6249_v19  ;;  %v4929_v45 = vmul.f32 %v4859_v13, %v4859_v13  ;;  %v4930_v57 = vmul.f32 %v4860_v8, %v4860_v8 }
 0x2d9   : > { %v4889_v56 = vadd.f32 %v4888_v46, %v4858_v5  ;;  %v4958_v14 = vadd.f32 %v4957_v62, %v4927_v60  ;;  %v6250_v17 = vpop.f32.mrb[34].mxu1 }
 0x2da   : > { %v3237_v50 = vpop.f32.mrb[35].mxu1  ;;  %v6517_v52 = vpop.f32.mrb[44].mxu0 }
 0x2db   : > { %v4959_v63 = vadd.f32 %v4958_v14, %v4928_v43  ;;  %v4890_v6 = vadd.f32 %v4889_v56, %v4859_v13  ;;  %v6558_v30 = vadd.f32 %v4592_v32, %v3237_v50  ;;  %v4634_v20 = vpop.f32.mrb[45].mxu0 }
 0x2dc   : > { %v6518_v27 = vpop.f32.mrb[46].mxu0 }
 0x2dd   : > { %v4891_v25 = vadd.f32 %v4890_v6, %v4860_v8  ;;  %v4960_v59 = vadd.f32 %v4959_v63, %v4929_v45  ;;  %v4690_v40 = vpack.c.bf16 %v6557_v21, %v6558_v30  ;;  %v4636_v55 = vpop.f32.mrb[47].mxu0 }
 0x2df   : > { %v4961_v34 = vadd.f32 %v4960_v59, %v4930_v57  ;;  %5650 = vst [vmem:[%s8487_s13 + $0x58] sm:$0xff] %v4690_v40   ;;  %v4861_v36 = vunpack.c.l.bf16 %v4690_v40  ;;  %v4862_v12 = vunpack.c.h.bf16 %v4690_v40  ;;  %v6253_v10 = vpop.f32.mrb[36].mxu1 }
 0x2e0   : > { %v3249_v22 = vpop.f32.mrb[37].mxu1 }
 0x2e1   : > { %v4892_v11 = vadd.f32 %v4891_v25, %v4861_v36  ;;  %v4931_v53 = vmul.f32 %v4861_v36, %v4861_v36  ;;  %v6254_v58 = vpop.f32.mrb[38].mxu1  ;;  %v6559_v61 = vadd.f32 %v4604_v51, %v3249_v22  ;;  %v4932_v7 = vmul.f32 %v4862_v12, %v4862_v12 }
 0x2e2   : > { %v3252_v32 = vpop.f32.mrb[39].mxu1  ;;  %v6560_v47 = vadd.f32 %v6510_v39, %v6254_v58 }
 0x2e3   : > { %v4893_v16 = vadd.f32 %v4892_v11, %v4862_v12  ;;  %v4962_v38 = vadd.f32 %v4961_v34, %v4931_v53  ;;  %v6561_v9 = vadd.f32 %v4607_v1, %v3252_v32 }
 0x2e5   : > { %v4963_v48 = vadd.f32 %v4962_v38, %v4932_v7  ;;  %v4691_v23 = vpack.c.bf16 %v6561_v9, %v6559_v61 }
 0x2e7   : > { %5651 = vst [vmem:[%s8487_s13 + $0x60] sm:$0xff] %v4691_v23   ;;  %v4863_v0 = vunpack.c.l.bf16 %v4691_v23  ;;  %v4864_v33 = vunpack.c.h.bf16 %v4691_v23  ;;  %v6257_v31 = vpop.f32.mrb[40].mxu1 }
 0x2e8   : > { %v3264_v15 = vpop.f32.mrb[41].mxu1  ;;  %v6562_v29 = vadd.f32 %v6513_v28, %v6257_v31 }
 0x2e9   : > { %v4894_v37 = vadd.f32 %v4893_v16, %v4863_v0  ;;  %v4933_v49 = vmul.f32 %v4863_v0, %v4863_v0  ;;  %v6258_v2 = vpop.f32.mrb[42].mxu1  ;;  %v6563_v51 = vadd.f32 %v4619_v41, %v3264_v15  ;;  %v4934_v4 = vmul.f32 %v4864_v33, %v4864_v33 }
 0x2ea   : > { %v3267_v42 = vpop.f32.mrb[43].mxu1  ;;  %v6564_v39 = vadd.f32 %v6514_v24, %v6258_v2 }
 0x2eb   : > { %v4895_v35 = vadd.f32 %v4894_v37, %v4864_v33  ;;  %v4964_v44 = vadd.f32 %v4963_v48, %v4933_v49  ;;  %v4692_v1 = vpack.c.bf16 %v6563_v51, %v6560_v47 }
 0x2ec   : > { %v4693_v26 = vpack.c.bf16 %v6564_v39, %v6562_v29 }
 0x2ed   : > { %v4965_v62 = vadd.f32 %v4964_v44, %v4934_v4  ;;  %5652 = vst [vmem:[%s8487_s13 + $0x68] sm:$0xff] %v4692_v1   ;;  %v4865_v54 = vunpack.c.l.bf16 %v4692_v1  ;;  %v4866_v5 = vunpack.c.h.bf16 %v4692_v1 }
 0x2ee   : > { %5653 = vst [vmem:[%s8487_s13 + $0x70] sm:$0xff] %v4693_v26   ;;  %v4867_v28 = vunpack.c.l.bf16 %v4693_v26  ;;  %v4868_v3 = vunpack.c.h.bf16 %v4693_v26 }
 0x2ef   : > { %v4896_v46 = vadd.f32 %v4895_v35, %v4865_v54  ;;  %v4935_v60 = vmul.f32 %v4865_v54, %v4865_v54  ;;  %v6261_v13 = vpop.f32.mrb[44].mxu1  ;;  %v4936_v21 = vmul.f32 %v4866_v5, %v4866_v5 }
 0x2f0   : > { %v3279_v19 = vpop.f32.mrb[45].mxu1  ;;  %v6565_v18 = vadd.f32 %v6517_v52, %v6261_v13  ;;  %v4937_v17 = vmul.f32 %v4867_v28, %v4867_v28  ;;  %v4938_v6 = vmul.f32 %v4868_v3, %v4868_v3 }
 0x2f1   : > { %v4897_v41 = vadd.f32 %v4896_v46, %v4866_v5  ;;  %v4966_v24 = vadd.f32 %v4965_v62, %v4935_v60  ;;  %v6262_v56 = vpop.f32.mrb[46].mxu1 }
 0x2f2   : > { %v3281_v43 = vpop.f32.mrb[47].mxu1 }
 0x2f3   : > { %v4967_v14 = vadd.f32 %v4966_v24, %v4936_v21  ;;  %v4898_v8 = vadd.f32 %v4897_v41, %v4867_v28  ;;  %v6566_v50 = vadd.f32 %v4636_v55, %v3281_v43 }
 0x2f5   : > { %v4899_v63 = vadd.f32 %v4898_v8, %v4868_v3  ;;  %v4968_v45 = vadd.f32 %v4967_v14, %v4937_v17  ;;  %v4694_v30 = vpack.c.bf16 %v6565_v18, %v6566_v50 }
 0x2f7   : > { %v4969_v25 = vadd.f32 %v4968_v45, %v4938_v6  ;;  %5654 = vst [vmem:[%s8487_s13 + $0x78] sm:$0xff] %v4694_v30   ;;  %v4869_v57 = vunpack.c.l.bf16 %v4694_v30  ;;  %v4870_v59 = vunpack.c.h.bf16 %v4694_v30 }
 0x2f9   : > { %v4900_v40 = vadd.f32 %v4899_v63, %v4869_v57  ;;  %v4939_v52 = vmul.f32 %v4869_v57, %v4869_v57  ;;  %v4940_v34 = vmul.f32 %v4870_v59, %v4870_v59 }
 0x2fb   : > { %v4901_v20 = vadd.f32 %v4900_v40, %v4870_v59  ;;  %v4970_v36 = vadd.f32 %v4969_v25, %v4939_v52 }
 0x2fd   : > { %v4902_v12 = vrot.slane %v4901_v20, 4  ;;  %v4971_v10 = vadd.f32 %v4970_v36, %v4940_v34 }
 0x2ff   : > { %v4903_v27 = vadd.f32 %v4902_v12, %v4901_v20  ;;  %v4972_v22 = vrot.slane %v4971_v10, 4 }
 0x301   : > { %v4904_v55 = vrot.slane %v4903_v27, 2  ;;  %v4973_v11 = vadd.f32 %v4972_v22, %v4971_v10 }
 0x303   : > { %v4905_v53 = vadd.f32 %v4904_v55, %v4903_v27  ;;  %v4974_v58 = vrot.slane %v4973_v11, 2 }
 0x305   : > { %v4906_v61 = vrot.slane %v4905_v53, 1  ;;  %v4975_v32 = vadd.f32 %v4974_v58, %v4973_v11 }
 0x307   : > { %v4907_v47 = vadd.f32 %v4906_v61, %v4905_v53  ;;  %v4976_v16 = vrot.slane %v4975_v32, 1 }
 0x309   : > { %4908 = vst [vmem:[%s265_s15] sm:$0x1] %v4907_v47  ;;  %v4977_v7 = vadd.f32 %v4976_v16, %v4975_v32 }
 0x30b   : > { %4978 = vst [vmem:[%s268_s19] sm:$0x1] %v4977_v7 }
 0x30c PF: > { %s17_s21 = sadd.s32 1, %s7034_s21  }
 0x30d   : > { %p14_p4 = scmp.ge.s32.totalorder %s17_s21, 4  }
 0x30f   :  { %16 = sbr.rel (!%p14_p4) target bundleno = 1 (0x1), region = 100 }

</bundles_post_ra>
